<compile_context>
chip_gen: v7x
topology: tpu7x:2x2x1
jax: 0.10.0
libtpu: 0.0.40
codegen_flags: <defaults>
</compile_context>

<pallas_src>
import functools
import math

import jax
import jax.numpy as jnp
from jax.experimental import pallas as pl
from jax.experimental.pallas import tpu as pltpu

MAX_PAD = 3                    # largest conv padding among the branches (kernel 7)
N_TAPS = 2 * MAX_PAD + 1       # 7 distinct time shifts cover all three branches
NEG_SLOPE = 0.01               # nn.LeakyReLU default negative_slope
BN_EPS = 1e-5


# --------------------------------------------------------------------------
# Fused kernel: 3 x {Conv1d + BN(eval) + LeakyReLU} -> sum -> MultiheadAttention
# --------------------------------------------------------------------------
def _fused_kernel(x_ref, w3_ref, w5_ref, w7_ref, shift_ref,
                  wq_ref, wk_ref, wv_ref, bqkv_ref, wo_ref, bo_ref,
                  o_ref,
                  xp_ref, q_ref, k_ref, v_ref,
                  *, ksizes, L, TB, num_heads, head_dim, scale):
    # x_ref       : (TB, L, D) bf16     input block (TB batch elements)
    # w{3,5,7}    : (K, D, D)  bf16     per-tap conv weights, BN scale folded in
    # shift_ref   : (3, 1, D)  f32      fused (conv bias + eval-BN shift)
    # wq/wk/wv    : (D, D) bf16, bqkv (3,1,D) f32
    # wo_ref      : (H, dh, D) bf16     output projection split per head
    # bo_ref      : (1, D) f32
    # o_ref       : (TB, L, D) f32
    # scratch     : xp (TB, L+2P, D) bf16; q/k/v (H, TB, L, dh) bf16
    D = x_ref.shape[-1]
    P = MAX_PAD
    H, dh = num_heads, head_dim

    # ---- zero halo + body copy into the padded bf16 scratch (no HBM pad) ----
    # Halo rewritten every step: with a "parallel" grid axis program_id==0 is
    # not guaranteed to execute on every core, so guarding it would be unsafe.
    xp_ref[:, :P, :] = jnp.zeros((TB, P, D), jnp.bfloat16)
    xp_ref[:, P + L:P + L + P, :] = jnp.zeros((TB, P, D), jnp.bfloat16)
    xp_ref[:, P:P + L, :] = x_ref[...]

    # ---- 3 x {Conv1d + folded eval-BN}: per-tap MXU matmuls, no slab ----
    w_refs = (w3_ref, w5_ref, w7_ref)
    branch = [None] * len(ksizes)
    for j in range(N_TAPS):
        xs = xp_ref[:, j:j + L, :].reshape(TB * L, D)          # bf16 shifted view
        for bi, K in enumerate(ksizes):
            kk = j - (P - K // 2)                               # branch-local tap
            if 0 <= kk < K:
                c = jnp.dot(xs, w_refs[bi][kk],
                            preferred_element_type=jnp.float32)
                branch[bi] = c if branch[bi] is None else branch[bi] + c

    acc = jnp.zeros((TB * L, D), jnp.float32)
    for bi in range(len(ksizes)):
        y = branch[bi] + shift_ref[bi]                          # bias + BN shift
        acc = acc + jnp.maximum(y, NEG_SLOPE * y)               # LeakyReLU, x1+x2+x3
    # Dropout: identity in eval mode.
    acc_bf = acc.astype(jnp.bfloat16)

    # ---- fused multi-head self-attention (nn.MultiheadAttention) ----
    q = jnp.dot(acc_bf, wq_ref[...], preferred_element_type=jnp.float32) + bqkv_ref[0]
    k = jnp.dot(acc_bf, wk_ref[...], preferred_element_type=jnp.float32) + bqkv_ref[1]
    v = jnp.dot(acc_bf, wv_ref[...], preferred_element_type=jnp.float32) + bqkv_ref[2]

    # Head-major scatter into (H, TB, L, dh) scratch (leading-axis slots).
    for h in range(H):
        lo = h * dh
        q_ref[h] = q[:, lo:lo + dh].reshape(TB, L, dh).astype(jnp.bfloat16)
        k_ref[h] = k[:, lo:lo + dh].reshape(TB, L, dh).astype(jnp.bfloat16)
        v_ref[h] = v[:, lo:lo + dh].reshape(TB, L, dh).astype(jnp.bfloat16)

    # One batched attention over all H*TB (query, key) pairs.
    qf = q_ref[...].reshape(H * TB, L, dh)
    kf = k_ref[...].reshape(H * TB, L, dh)
    vf = v_ref[...].reshape(H * TB, L, dh)
    s = jnp.einsum("bqd,bkd->bqk", qf, kf,
                   preferred_element_type=jnp.float32) * scale
    s = s - jnp.max(s, axis=-1, keepdims=True)
    p = jnp.exp(s)
    p = p * pl.reciprocal(jnp.sum(p, axis=-1, keepdims=True))   # exact reciprocal
    ctx = jnp.einsum("bqk,bkd->bqd", p.astype(jnp.bfloat16), vf,
                     preferred_element_type=jnp.float32)        # (H*TB, L, dh)
    ctx = ctx.reshape(H, TB * L, dh)

    # Output projection: head concat folded into per-head Wo slices.
    out = jnp.dot(ctx[0].astype(jnp.bfloat16), wo_ref[0],
                  preferred_element_type=jnp.float32)
    for h in range(1, H):
        out = out + jnp.dot(ctx[h].astype(jnp.bfloat16), wo_ref[h],
                            preferred_element_type=jnp.float32)
    out = out + bo_ref[...]
    o_ref[...] = out.reshape(TB, L, D).astype(o_ref.dtype)


# --------------------------------------------------------------------------
# VMEM-aware tiling
# --------------------------------------------------------------------------
def _physical_vmem_bytes():
    """Per-core VMEM capacity; falls back to the v7x floor (64 MiB)."""
    try:
        cap = int(pltpu.get_tpu_info().vmem_capacity_bytes)
        if cap > 0:
            return cap
    except Exception:
        pass
    return 64 * 1024 * 1024


def _pick_batch_tile(B, L, D, num_heads, budget_bytes):
    """Largest divisor of B whose per-step VMEM footprint fits the budget,
    preferring >= 4 grid steps (megacore sharding + pipeline overlap) when each
    step still flattens to a large matmul M-dim (TB*L >= 512)."""
    # Conservative bytes per batch element per step: in/out blocks (double
    # buffered), padded-x + head-major q/k/v scratch, f32 transients, scores.
    per_tb = 60 * L * D + 8 * num_heads * L * L + 16 * D
    # Weights (bf16), counted double-buffered in case single-buffering is off.
    weight_bytes = 80 * D * D + 64 * D
    avail = budget_bytes - weight_bytes - (2 << 20)
    cap = max(1, avail // per_tb) if avail > per_tb else 1

    divs = [d for d in range(1, B + 1) if B % d == 0]
    feasible = [d for d in divs if d <= cap] or [1]
    tb = max(feasible)
    for d in sorted(feasible, reverse=True):
        if B // d >= 4 and d * L >= 512:
            tb = d
            break
    return int(tb)


# --------------------------------------------------------------------------
# Wrapper: fold BN into conv weights, lay out MHA weights, call the kernel
# --------------------------------------------------------------------------
def forward(x, params, hidden_dim, num_heads, ksizes):
    D, H = hidden_dim, num_heads
    dh = D // H
    B, L, _ = x.shape

    # ---- fold conv + eval-BatchNorm into per-tap bf16 weights / f32 shift ----
    w_branches, shifts = [], []
    for K in ksizes:
        w = params[f"conv{K}_w"]                                  # (D_out, D_in, K)
        bn_scale = params[f"bn{K}_gamma"] / jnp.sqrt(params[f"bn{K}_var"] + BN_EPS)
        wt = jnp.transpose(w * bn_scale[:, None, None], (2, 1, 0))  # (K, D_in, D_out)
        w_branches.append(wt.astype(jnp.bfloat16))
        shifts.append(params[f"bn{K}_beta"]
                      + (params[f"conv{K}_b"] - params[f"bn{K}_mean"]) * bn_scale)
    shift_stack = jnp.stack(shifts)[:, None, :]                   # (3, 1, D) f32

    # ---- MHA params in x @ W layout, bf16 operands / f32 biases ----
    wq = params["in_proj_w"][:D].T.astype(jnp.bfloat16)            # (D, D)
    wk = params["in_proj_w"][D:2 * D].T.astype(jnp.bfloat16)
    wv = params["in_proj_w"][2 * D:].T.astype(jnp.bfloat16)
    bqkv = params["in_proj_b"].reshape(3, 1, D)                    # f32
    wo = params["out_proj_w"].T.reshape(H, dh, D).astype(jnp.bfloat16)
    bo = params["out_proj_b"].reshape(1, D)                        # f32

    # ---- per-generation VMEM budget -> scoped limit + batch tile ----
    vmem_cap = _physical_vmem_bytes()
    vmem_limit = int(max(32 * 1024 * 1024,
                         min(vmem_cap * 3 // 4, 100 * 1024 * 1024)))
    TB = _pick_batch_tile(B, L, D, H, int(vmem_limit * 0.8))

    kern = functools.partial(
        _fused_kernel, ksizes=ksizes, L=L, TB=TB, num_heads=H,
        head_dim=dh, scale=1.0 / math.sqrt(dh))

    args = (x.astype(jnp.bfloat16), w_branches[0], w_branches[1], w_branches[2],
            shift_stack, wq, wk, wv, bqkv, wo, bo)

    def build(single_buffer_weights):
        wmode = pl.Buffered(1) if single_buffer_weights else None

        def wspec(shape):
            return pl.BlockSpec(shape, lambda *_: (0,) * len(shape),
                                pipeline_mode=wmode)

        return pl.pallas_call(
            kern,
            out_shape=jax.ShapeDtypeStruct((B, L, D), jnp.float32),
            grid=(B // TB,),
            in_specs=[pl.BlockSpec((TB, L, D), lambda b: (b, 0, 0))]
                     + [wspec(a.shape) for a in args[1:]],
            out_specs=pl.BlockSpec((TB, L, D), lambda b: (b, 0, 0)),
            scratch_shapes=[
                pltpu.VMEM((TB, L + 2 * MAX_PAD, D), jnp.bfloat16),  # padded x
                pltpu.VMEM((H, TB, L, dh), jnp.bfloat16),            # q (head-major)
                pltpu.VMEM((H, TB, L, dh), jnp.bfloat16),            # k
                pltpu.VMEM((H, TB, L, dh), jnp.bfloat16),            # v
            ],
            compiler_params=pltpu.CompilerParams(
                dimension_semantics=("parallel",),
                vmem_limit_bytes=vmem_limit),
        )

    try:
        # Weights have constant index maps -> single-buffer them to save VMEM.
        return build(True)(*args)
    except Exception:
        # Fallback: default (double-buffered) weight pipelining.
        return build(False)(*args)


# --------------------------------------------------------------------------
# Parameter construction (deterministic, PyTorch module shapes)
# --------------------------------------------------------------------------
def init_params(key, hidden_dim, num_heads):
    D = hidden_dim
    ksizes = (3, 5, 7)
    keys = jax.random.split(key, 24)
    p = {}
    ki = 0
    for K in ksizes:
        bound = 1.0 / math.sqrt(D * K)
        p[f"conv{K}_w"] = jax.random.uniform(keys[ki], (D, D, K), jnp.float32,
                                             -bound, bound); ki += 1
        p[f"conv{K}_b"] = jax.random.uniform(keys[ki], (D,), jnp.float32,
                                             -bound, bound); ki += 1
        # BatchNorm1d params / running stats (non-trivial, eval mode)
        p[f"bn{K}_gamma"] = 0.5 + jax.random.uniform(keys[ki], (D,)); ki += 1
        p[f"bn{K}_beta"] = 0.1 * jax.random.normal(keys[ki], (D,)); ki += 1
        p[f"bn{K}_mean"] = 0.1 * jax.random.normal(keys[ki], (D,)); ki += 1
        p[f"bn{K}_var"] = 0.5 + jax.random.uniform(keys[ki], (D,)); ki += 1
    # nn.MultiheadAttention params
    b = 1.0 / math.sqrt(D)
    p["in_proj_w"] = jax.random.uniform(keys[ki], (3 * D, D), jnp.float32, -b, b); ki += 1
    p["in_proj_b"] = jax.random.uniform(keys[ki], (3 * D,), jnp.float32, -b, b); ki += 1
    p["out_proj_w"] = jax.random.uniform(keys[ki], (D, D), jnp.float32, -b, b); ki += 1
    p["out_proj_b"] = jax.random.uniform(keys[ki], (D,), jnp.float32, -b, b); ki += 1
    return p, ksizes


# --------------------------------------------------------------------------
# Pure-JAX reference (for self-check)
# --------------------------------------------------------------------------
def ref_forward(x, params, hidden_dim, num_heads, ksizes):
    D = hidden_dim
    dh = D // num_heads
    hi = jax.lax.Precision.HIGHEST

    def tcn(x, K):
        w, b = params[f"conv{K}_w"], params[f"conv{K}_b"]
        pad = K // 2
        xp = jnp.pad(x, ((0, 0), (pad, pad), (0, 0)))
        L = x.shape[1]
        out = jnp.zeros_like(x)
        for k in range(K):
            out = out + jnp.einsum("blc,oc->blo", xp[:, k:k + L, :], w[:, :, k],
                                   precision=hi)
        out = out + b
        out = ((out - params[f"bn{K}_mean"]) /
               jnp.sqrt(params[f"bn{K}_var"] + BN_EPS) *
               params[f"bn{K}_gamma"] + params[f"bn{K}_beta"])
        return jnp.where(out >= 0, out, NEG_SLOPE * out)

    x_tcn = tcn(x, 3) + tcn(x, 5) + tcn(x, 7)

    B, L, _ = x_tcn.shape
    q = jnp.matmul(x_tcn, params["in_proj_w"][:D].T, precision=hi) + params["in_proj_b"][:D]
    k = jnp.matmul(x_tcn, params["in_proj_w"][D:2 * D].T, precision=hi) + params["in_proj_b"][D:2 * D]
    v = jnp.matmul(x_tcn, params["in_proj_w"][2 * D:].T, precision=hi) + params["in_proj_b"][2 * D:]
    q = q.reshape(B, L, num_heads, dh).transpose(0, 2, 1, 3)
    k = k.reshape(B, L, num_heads, dh).transpose(0, 2, 1, 3)
    v = v.reshape(B, L, num_heads, dh).transpose(0, 2, 1, 3)
    s = jnp.einsum("bhqd,bhkd->bhqk", q, k, precision=hi) / math.sqrt(dh)
    p = jax.nn.softmax(s, axis=-1)
    ctx = jnp.einsum("bhqk,bhkd->bhqd", p, v, precision=hi)
    ctx = ctx.transpose(0, 2, 1, 3).reshape(B, L, D)
    return jnp.matmul(ctx, params["out_proj_w"].T, precision=hi) + params["out_proj_b"]


if __name__ == "__main__":
    B, L, hidden_dim, num_heads = 2, 8, 32, 4
    key = jax.random.PRNGKey(0)
    kx, kp = jax.random.split(key)
    x = jax.random.normal(kx, (B, L, hidden_dim), jnp.float32)
    params, ksizes = init_params(kp, hidden_dim, num_heads)

    out = jax.block_until_ready(forward(x, params, hidden_dim, num_heads, ksizes))
    ref = jax.block_until_ready(ref_forward(x, params, hidden_dim, num_heads, ksizes))

    assert out.shape == (B, L, hidden_dim), out.shape
    # Tolerance sized for bf16 operand rounding (~2^-8 relative) chained through
    # the conv branches and attention, with f32 accumulation throughout.
    max_err = float(jnp.max(jnp.abs(out - ref)))
    assert bool(jnp.allclose(out, ref, atol=5e-2, rtol=5e-2)), max_err
    print("KERNEL_OK")
</pallas_src>

<mosaic_0001>
module attributes {stable_mosaic.version = 11 : i64} {
  func.func @_fused_kernel(%arg0: i32, %arg1: memref<2x8x32xbf16, #tpu.memory_space<vmem>>, %arg2: memref<3x32x32xbf16, #tpu.memory_space<vmem>>, %arg3: memref<5x32x32xbf16, #tpu.memory_space<vmem>>, %arg4: memref<7x32x32xbf16, #tpu.memory_space<vmem>>, %arg5: memref<3x1x32xf32, #tpu.memory_space<vmem>>, %arg6: memref<32x32xbf16, #tpu.memory_space<vmem>>, %arg7: memref<32x32xbf16, #tpu.memory_space<vmem>>, %arg8: memref<32x32xbf16, #tpu.memory_space<vmem>>, %arg9: memref<3x1x32xf32, #tpu.memory_space<vmem>>, %arg10: memref<4x8x32xbf16, #tpu.memory_space<vmem>>, %arg11: memref<1x32xf32, #tpu.memory_space<vmem>>, %arg12: memref<2x8x32xf32, #tpu.memory_space<vmem>>, %arg13: memref<2x14x32xbf16, #tpu.memory_space<vmem>>, %arg14: memref<4x2x8x8xbf16, #tpu.memory_space<vmem>>, %arg15: memref<4x2x8x8xbf16, #tpu.memory_space<vmem>>, %arg16: memref<4x2x8x8xbf16, #tpu.memory_space<vmem>>) attributes {dimension_semantics = [#tpu.dimension_semantics<parallel>], iteration_bounds = array<i64: 1>, scalar_prefetch = 0 : i64, scratch_operands = 4 : i64, tpu.core_type = #tpu.core_type<tc>, window_params = [{transform_indices = @transform_0, window_bounds = array<i64: 2, 8, 32>}, {pipeline_mode = #tpu.pipeline_mode<synchronous>, transform_indices = @transform_1, window_bounds = array<i64: 3, 32, 32>}, {pipeline_mode = #tpu.pipeline_mode<synchronous>, transform_indices = @transform_2, window_bounds = array<i64: 5, 32, 32>}, {pipeline_mode = #tpu.pipeline_mode<synchronous>, transform_indices = @transform_3, window_bounds = array<i64: 7, 32, 32>}, {pipeline_mode = #tpu.pipeline_mode<synchronous>, transform_indices = @transform_4, window_bounds = array<i64: 3, 1, 32>}, {pipeline_mode = #tpu.pipeline_mode<synchronous>, transform_indices = @transform_5, window_bounds = array<i64: 32, 32>}, {pipeline_mode = #tpu.pipeline_mode<synchronous>, transform_indices = @transform_6, window_bounds = array<i64: 32, 32>}, {pipeline_mode = #tpu.pipeline_mode<synchronous>, transform_indices = @transform_7, window_bounds = array<i64: 32, 32>}, {pipeline_mode = #tpu.pipeline_mode<synchronous>, transform_indices = @transform_8, window_bounds = array<i64: 3, 1, 32>}, {pipeline_mode = #tpu.pipeline_mode<synchronous>, transform_indices = @transform_9, window_bounds = array<i64: 4, 8, 32>}, {pipeline_mode = #tpu.pipeline_mode<synchronous>, transform_indices = @transform_10, window_bounds = array<i64: 1, 32>}, {transform_indices = @transform_11, window_bounds = array<i64: 2, 8, 32>}]} {
    %cst = arith.constant 0.000000e+00 : bf16
    %0 = vector.broadcast %cst : bf16 to vector<2x3x32xbf16>
    %c0 = arith.constant 0 : index
    %c0_0 = arith.constant 0 : index
    %c0_1 = arith.constant 0 : index
    %1 = vector.load %arg13[%c0, %c0_0, %c0_1] : memref<2x14x32xbf16, #tpu.memory_space<vmem>>, vector<2x3x32xbf16>
    tpu.vector_store %arg13[%c0, %c0_0, %c0_1], %0 {strides = array<i32>} : memref<2x14x32xbf16, #tpu.memory_space<vmem>>, vector<2x3x32xbf16>,
    %cst_2 = arith.constant 0.000000e+00 : bf16
    %2 = vector.broadcast %cst_2 : bf16 to vector<2x3x32xbf16>
    %c0_3 = arith.constant 0 : index
    %c11 = arith.constant 11 : index
    %c0_4 = arith.constant 0 : index
    %3 = vector.load %arg13[%c0_3, %c11, %c0_4] : memref<2x14x32xbf16, #tpu.memory_space<vmem>>, vector<2x3x32xbf16>
    tpu.vector_store %arg13[%c0_3, %c11, %c0_4], %2 {strides = array<i32>} : memref<2x14x32xbf16, #tpu.memory_space<vmem>>, vector<2x3x32xbf16>,
    %c0_5 = arith.constant 0 : index
    %c0_6 = arith.constant 0 : index
    %c0_7 = arith.constant 0 : index
    %4 = vector.load %arg1[%c0_5, %c0_6, %c0_7] : memref<2x8x32xbf16, #tpu.memory_space<vmem>>, vector<2x8x32xbf16>
    %c0_8 = arith.constant 0 : index
    %c3 = arith.constant 3 : index
    %c0_9 = arith.constant 0 : index
    %5 = vector.load %arg13[%c0_8, %c3, %c0_9] : memref<2x14x32xbf16, #tpu.memory_space<vmem>>, vector<2x8x32xbf16>
    tpu.vector_store %arg13[%c0_8, %c3, %c0_9], %4 {strides = array<i32>} : memref<2x14x32xbf16, #tpu.memory_space<vmem>>, vector<2x8x32xbf16>,
    %c0_10 = arith.constant 0 : index
    %c0_11 = arith.constant 0 : index
    %c0_12 = arith.constant 0 : index
    %6 = vector.load %arg13[%c0_10, %c0_11, %c0_12] : memref<2x14x32xbf16, #tpu.memory_space<vmem>>, vector<2x8x32xbf16>
    %7 = vector.shape_cast %6 : vector<2x8x32xbf16> to vector<16x32xbf16>
    %c0_13 = arith.constant 0 : index
    %c0_14 = arith.constant 0 : index
    %c0_15 = arith.constant 0 : index
    %8 = vector.load %arg4[%c0_13, %c0_14, %c0_15] : memref<7x32x32xbf16, #tpu.memory_space<vmem>>, vector<1x32x32xbf16>
    %9 = vector.shape_cast %8 : vector<1x32x32xbf16> to vector<32x32xbf16>
    %cst_16 = arith.constant dense<0.000000e+00> : vector<16x32xf32>
    %10 = tpu.matmul %7, %9, %cst_16 {dimension_numbers = #tpu.dot_dimension_numbers<[1], [0], [0], [1], [0, 0, 1, 1], [], []>} : vector<16x32xbf16>, vector<32x32xbf16>, vector<16x32xf32> -> vector<16x32xf32>
    %c0_17 = arith.constant 0 : index
    %c1 = arith.constant 1 : index
    %c0_18 = arith.constant 0 : index
    %11 = vector.load %arg13[%c0_17, %c1, %c0_18] : memref<2x14x32xbf16, #tpu.memory_space<vmem>>, vector<2x8x32xbf16>
    %12 = vector.shape_cast %11 : vector<2x8x32xbf16> to vector<16x32xbf16>
    %c0_19 = arith.constant 0 : index
    %c0_20 = arith.constant 0 : index
    %c0_21 = arith.constant 0 : index
    %13 = vector.load %arg3[%c0_19, %c0_20, %c0_21] : memref<5x32x32xbf16, #tpu.memory_space<vmem>>, vector<1x32x32xbf16>
    %14 = vector.shape_cast %13 : vector<1x32x32xbf16> to vector<32x32xbf16>
    %cst_22 = arith.constant dense<0.000000e+00> : vector<16x32xf32>
    %15 = tpu.matmul %12, %14, %cst_22 {dimension_numbers = #tpu.dot_dimension_numbers<[1], [0], [0], [1], [0, 0, 1, 1], [], []>} : vector<16x32xbf16>, vector<32x32xbf16>, vector<16x32xf32> -> vector<16x32xf32>
    %c1_23 = arith.constant 1 : index
    %c0_24 = arith.constant 0 : index
    %c0_25 = arith.constant 0 : index
    %16 = vector.load %arg4[%c1_23, %c0_24, %c0_25] : memref<7x32x32xbf16, #tpu.memory_space<vmem>>, vector<1x32x32xbf16>
    %17 = vector.shape_cast %16 : vector<1x32x32xbf16> to vector<32x32xbf16>
    %cst_26 = arith.constant dense<0.000000e+00> : vector<16x32xf32>
    %18 = tpu.matmul %12, %17, %cst_26 {dimension_numbers = #tpu.dot_dimension_numbers<[1], [0], [0], [1], [0, 0, 1, 1], [], []>} : vector<16x32xbf16>, vector<32x32xbf16>, vector<16x32xf32> -> vector<16x32xf32>
    %19 = arith.addf %10, %18 : vector<16x32xf32>
    %c0_27 = arith.constant 0 : index
    %c2 = arith.constant 2 : index
    %c0_28 = arith.constant 0 : index
    %20 = vector.load %arg13[%c0_27, %c2, %c0_28] : memref<2x14x32xbf16, #tpu.memory_space<vmem>>, vector<2x8x32xbf16>
    %21 = vector.shape_cast %20 : vector<2x8x32xbf16> to vector<16x32xbf16>
    %c0_29 = arith.constant 0 : index
    %c0_30 = arith.constant 0 : index
    %c0_31 = arith.constant 0 : index
    %22 = vector.load %arg2[%c0_29, %c0_30, %c0_31] : memref<3x32x32xbf16, #tpu.memory_space<vmem>>, vector<1x32x32xbf16>
    %23 = vector.shape_cast %22 : vector<1x32x32xbf16> to vector<32x32xbf16>
    %cst_32 = arith.constant dense<0.000000e+00> : vector<16x32xf32>
    %24 = tpu.matmul %21, %23, %cst_32 {dimension_numbers = #tpu.dot_dimension_numbers<[1], [0], [0], [1], [0, 0, 1, 1], [], []>} : vector<16x32xbf16>, vector<32x32xbf16>, vector<16x32xf32> -> vector<16x32xf32>
    %c1_33 = arith.constant 1 : index
    %c0_34 = arith.constant 0 : index
    %c0_35 = arith.constant 0 : index
    %25 = vector.load %arg3[%c1_33, %c0_34, %c0_35] : memref<5x32x32xbf16, #tpu.memory_space<vmem>>, vector<1x32x32xbf16>
    %26 = vector.shape_cast %25 : vector<1x32x32xbf16> to vector<32x32xbf16>
    %cst_36 = arith.constant dense<0.000000e+00> : vector<16x32xf32>
    %27 = tpu.matmul %21, %26, %cst_36 {dimension_numbers = #tpu.dot_dimension_numbers<[1], [0], [0], [1], [0, 0, 1, 1], [], []>} : vector<16x32xbf16>, vector<32x32xbf16>, vector<16x32xf32> -> vector<16x32xf32>
    %28 = arith.addf %15, %27 : vector<16x32xf32>
    %c2_37 = arith.constant 2 : index
    %c0_38 = arith.constant 0 : index
    %c0_39 = arith.constant 0 : index
    %29 = vector.load %arg4[%c2_37, %c0_38, %c0_39] : memref<7x32x32xbf16, #tpu.memory_space<vmem>>, vector<1x32x32xbf16>
    %30 = vector.shape_cast %29 : vector<1x32x32xbf16> to vector<32x32xbf16>
    %cst_40 = arith.constant dense<0.000000e+00> : vector<16x32xf32>
    %31 = tpu.matmul %21, %30, %cst_40 {dimension_numbers = #tpu.dot_dimension_numbers<[1], [0], [0], [1], [0, 0, 1, 1], [], []>} : vector<16x32xbf16>, vector<32x32xbf16>, vector<16x32xf32> -> vector<16x32xf32>
    %32 = arith.addf %19, %31 : vector<16x32xf32>
    %c0_41 = arith.constant 0 : index
    %c3_42 = arith.constant 3 : index
    %c0_43 = arith.constant 0 : index
    %33 = vector.load %arg13[%c0_41, %c3_42, %c0_43] : memref<2x14x32xbf16, #tpu.memory_space<vmem>>, vector<2x8x32xbf16>
    %34 = vector.shape_cast %33 : vector<2x8x32xbf16> to vector<16x32xbf16>
    %c1_44 = arith.constant 1 : index
    %c0_45 = arith.constant 0 : index
    %c0_46 = arith.constant 0 : index
    %35 = vector.load %arg2[%c1_44, %c0_45, %c0_46] : memref<3x32x32xbf16, #tpu.memory_space<vmem>>, vector<1x32x32xbf16>
    %36 = vector.shape_cast %35 : vector<1x32x32xbf16> to vector<32x32xbf16>
    %cst_47 = arith.constant dense<0.000000e+00> : vector<16x32xf32>
    %37 = tpu.matmul %34, %36, %cst_47 {dimension_numbers = #tpu.dot_dimension_numbers<[1], [0], [0], [1], [0, 0, 1, 1], [], []>} : vector<16x32xbf16>, vector<32x32xbf16>, vector<16x32xf32> -> vector<16x32xf32>
    %38 = arith.addf %24, %37 : vector<16x32xf32>
    %c2_48 = arith.constant 2 : index
    %c0_49 = arith.constant 0 : index
    %c0_50 = arith.constant 0 : index
    %39 = vector.load %arg3[%c2_48, %c0_49, %c0_50] : memref<5x32x32xbf16, #tpu.memory_space<vmem>>, vector<1x32x32xbf16>
    %40 = vector.shape_cast %39 : vector<1x32x32xbf16> to vector<32x32xbf16>
    %cst_51 = arith.constant dense<0.000000e+00> : vector<16x32xf32>
    %41 = tpu.matmul %34, %40, %cst_51 {dimension_numbers = #tpu.dot_dimension_numbers<[1], [0], [0], [1], [0, 0, 1, 1], [], []>} : vector<16x32xbf16>, vector<32x32xbf16>, vector<16x32xf32> -> vector<16x32xf32>
    %42 = arith.addf %28, %41 : vector<16x32xf32>
    %c3_52 = arith.constant 3 : index
    %c0_53 = arith.constant 0 : index
    %c0_54 = arith.constant 0 : index
    %43 = vector.load %arg4[%c3_52, %c0_53, %c0_54] : memref<7x32x32xbf16, #tpu.memory_space<vmem>>, vector<1x32x32xbf16>
    %44 = vector.shape_cast %43 : vector<1x32x32xbf16> to vector<32x32xbf16>
    %cst_55 = arith.constant dense<0.000000e+00> : vector<16x32xf32>
    %45 = tpu.matmul %34, %44, %cst_55 {dimension_numbers = #tpu.dot_dimension_numbers<[1], [0], [0], [1], [0, 0, 1, 1], [], []>} : vector<16x32xbf16>, vector<32x32xbf16>, vector<16x32xf32> -> vector<16x32xf32>
    %46 = arith.addf %32, %45 : vector<16x32xf32>
    %c0_56 = arith.constant 0 : index
    %c4 = arith.constant 4 : index
    %c0_57 = arith.constant 0 : index
    %47 = vector.load %arg13[%c0_56, %c4, %c0_57] : memref<2x14x32xbf16, #tpu.memory_space<vmem>>, vector<2x8x32xbf16>
    %48 = vector.shape_cast %47 : vector<2x8x32xbf16> to vector<16x32xbf16>
    %c2_58 = arith.constant 2 : index
    %c0_59 = arith.constant 0 : index
    %c0_60 = arith.constant 0 : index
    %49 = vector.load %arg2[%c2_58, %c0_59, %c0_60] : memref<3x32x32xbf16, #tpu.memory_space<vmem>>, vector<1x32x32xbf16>
    %50 = vector.shape_cast %49 : vector<1x32x32xbf16> to vector<32x32xbf16>
    %cst_61 = arith.constant dense<0.000000e+00> : vector<16x32xf32>
    %51 = tpu.matmul %48, %50, %cst_61 {dimension_numbers = #tpu.dot_dimension_numbers<[1], [0], [0], [1], [0, 0, 1, 1], [], []>} : vector<16x32xbf16>, vector<32x32xbf16>, vector<16x32xf32> -> vector<16x32xf32>
    %52 = arith.addf %38, %51 : vector<16x32xf32>
    %c3_62 = arith.constant 3 : index
    %c0_63 = arith.constant 0 : index
    %c0_64 = arith.constant 0 : index
    %53 = vector.load %arg3[%c3_62, %c0_63, %c0_64] : memref<5x32x32xbf16, #tpu.memory_space<vmem>>, vector<1x32x32xbf16>
    %54 = vector.shape_cast %53 : vector<1x32x32xbf16> to vector<32x32xbf16>
    %cst_65 = arith.constant dense<0.000000e+00> : vector<16x32xf32>
    %55 = tpu.matmul %48, %54, %cst_65 {dimension_numbers = #tpu.dot_dimension_numbers<[1], [0], [0], [1], [0, 0, 1, 1], [], []>} : vector<16x32xbf16>, vector<32x32xbf16>, vector<16x32xf32> -> vector<16x32xf32>
    %56 = arith.addf %42, %55 : vector<16x32xf32>
    %c4_66 = arith.constant 4 : index
    %c0_67 = arith.constant 0 : index
    %c0_68 = arith.constant 0 : index
    %57 = vector.load %arg4[%c4_66, %c0_67, %c0_68] : memref<7x32x32xbf16, #tpu.memory_space<vmem>>, vector<1x32x32xbf16>
    %58 = vector.shape_cast %57 : vector<1x32x32xbf16> to vector<32x32xbf16>
    %cst_69 = arith.constant dense<0.000000e+00> : vector<16x32xf32>
    %59 = tpu.matmul %48, %58, %cst_69 {dimension_numbers = #tpu.dot_dimension_numbers<[1], [0], [0], [1], [0, 0, 1, 1], [], []>} : vector<16x32xbf16>, vector<32x32xbf16>, vector<16x32xf32> -> vector<16x32xf32>
    %60 = arith.addf %46, %59 : vector<16x32xf32>
    %c0_70 = arith.constant 0 : index
    %c5 = arith.constant 5 : index
    %c0_71 = arith.constant 0 : index
    %61 = vector.load %arg13[%c0_70, %c5, %c0_71] : memref<2x14x32xbf16, #tpu.memory_space<vmem>>, vector<2x8x32xbf16>
    %62 = vector.shape_cast %61 : vector<2x8x32xbf16> to vector<16x32xbf16>
    %c4_72 = arith.constant 4 : index
    %c0_73 = arith.constant 0 : index
    %c0_74 = arith.constant 0 : index
    %63 = vector.load %arg3[%c4_72, %c0_73, %c0_74] : memref<5x32x32xbf16, #tpu.memory_space<vmem>>, vector<1x32x32xbf16>
    %64 = vector.shape_cast %63 : vector<1x32x32xbf16> to vector<32x32xbf16>
    %cst_75 = arith.constant dense<0.000000e+00> : vector<16x32xf32>
    %65 = tpu.matmul %62, %64, %cst_75 {dimension_numbers = #tpu.dot_dimension_numbers<[1], [0], [0], [1], [0, 0, 1, 1], [], []>} : vector<16x32xbf16>, vector<32x32xbf16>, vector<16x32xf32> -> vector<16x32xf32>
    %66 = arith.addf %56, %65 : vector<16x32xf32>
    %c5_76 = arith.constant 5 : index
    %c0_77 = arith.constant 0 : index
    %c0_78 = arith.constant 0 : index
    %67 = vector.load %arg4[%c5_76, %c0_77, %c0_78] : memref<7x32x32xbf16, #tpu.memory_space<vmem>>, vector<1x32x32xbf16>
    %68 = vector.shape_cast %67 : vector<1x32x32xbf16> to vector<32x32xbf16>
    %cst_79 = arith.constant dense<0.000000e+00> : vector<16x32xf32>
    %69 = tpu.matmul %62, %68, %cst_79 {dimension_numbers = #tpu.dot_dimension_numbers<[1], [0], [0], [1], [0, 0, 1, 1], [], []>} : vector<16x32xbf16>, vector<32x32xbf16>, vector<16x32xf32> -> vector<16x32xf32>
    %70 = arith.addf %60, %69 : vector<16x32xf32>
    %c0_80 = arith.constant 0 : index
    %c6 = arith.constant 6 : index
    %c0_81 = arith.constant 0 : index
    %71 = vector.load %arg13[%c0_80, %c6, %c0_81] : memref<2x14x32xbf16, #tpu.memory_space<vmem>>, vector<2x8x32xbf16>
    %72 = vector.shape_cast %71 : vector<2x8x32xbf16> to vector<16x32xbf16>
    %c6_82 = arith.constant 6 : index
    %c0_83 = arith.constant 0 : index
    %c0_84 = arith.constant 0 : index
    %73 = vector.load %arg4[%c6_82, %c0_83, %c0_84] : memref<7x32x32xbf16, #tpu.memory_space<vmem>>, vector<1x32x32xbf16>
    %74 = vector.shape_cast %73 : vector<1x32x32xbf16> to vector<32x32xbf16>
    %cst_85 = arith.constant dense<0.000000e+00> : vector<16x32xf32>
    %75 = tpu.matmul %72, %74, %cst_85 {dimension_numbers = #tpu.dot_dimension_numbers<[1], [0], [0], [1], [0, 0, 1, 1], [], []>} : vector<16x32xbf16>, vector<32x32xbf16>, vector<16x32xf32> -> vector<16x32xf32>
    %76 = arith.addf %70, %75 : vector<16x32xf32>
    %cst_86 = arith.constant 0.000000e+00 : f32
    %77 = vector.broadcast %cst_86 : f32 to vector<16x32xf32>
    %c0_87 = arith.constant 0 : index
    %c0_88 = arith.constant 0 : index
    %c0_89 = arith.constant 0 : index
    %78 = vector.load %arg5[%c0_87, %c0_88, %c0_89] : memref<3x1x32xf32, #tpu.memory_space<vmem>>, vector<1x1x32xf32>
    %79 = vector.shape_cast %78 : vector<1x1x32xf32> to vector<1x32xf32>
    %80 = vector.broadcast %79 : vector<1x32xf32> to vector<16x32xf32>
    %81 = arith.addf %52, %80 : vector<16x32xf32>
    %cst_90 = arith.constant 0.00999999977 : f32
    %82 = vector.broadcast %cst_90 : f32 to vector<16x32xf32>
    %83 = arith.mulf %82, %81 : vector<16x32xf32>
    %84 = arith.maximumf %81, %83 : vector<16x32xf32>
    %85 = arith.addf %77, %84 : vector<16x32xf32>
    %c1_91 = arith.constant 1 : index
    %c0_92 = arith.constant 0 : index
    %c0_93 = arith.constant 0 : index
    %86 = vector.load %arg5[%c1_91, %c0_92, %c0_93] : memref<3x1x32xf32, #tpu.memory_space<vmem>>, vector<1x1x32xf32>
    %87 = vector.shape_cast %86 : vector<1x1x32xf32> to vector<1x32xf32>
    %88 = vector.broadcast %87 : vector<1x32xf32> to vector<16x32xf32>
    %89 = arith.addf %66, %88 : vector<16x32xf32>
    %cst_94 = arith.constant 0.00999999977 : f32
    %90 = vector.broadcast %cst_94 : f32 to vector<16x32xf32>
    %91 = arith.mulf %90, %89 : vector<16x32xf32>
    %92 = arith.maximumf %89, %91 : vector<16x32xf32>
    %93 = arith.addf %85, %92 : vector<16x32xf32>
    %c2_95 = arith.constant 2 : index
    %c0_96 = arith.constant 0 : index
    %c0_97 = arith.constant 0 : index
    %94 = vector.load %arg5[%c2_95, %c0_96, %c0_97] : memref<3x1x32xf32, #tpu.memory_space<vmem>>, vector<1x1x32xf32>
    %95 = vector.shape_cast %94 : vector<1x1x32xf32> to vector<1x32xf32>
    %96 = vector.broadcast %95 : vector<1x32xf32> to vector<16x32xf32>
    %97 = arith.addf %76, %96 : vector<16x32xf32>
    %cst_98 = arith.constant 0.00999999977 : f32
    %98 = vector.broadcast %cst_98 : f32 to vector<16x32xf32>
    %99 = arith.mulf %98, %97 : vector<16x32xf32>
    %100 = arith.maximumf %97, %99 : vector<16x32xf32>
    %101 = arith.addf %93, %100 : vector<16x32xf32>
    %102 = arith.truncf %101 : vector<16x32xf32> to vector<16x32xbf16>
    %c0_99 = arith.constant 0 : index
    %c0_100 = arith.constant 0 : index
    %103 = vector.load %arg6[%c0_99, %c0_100] : memref<32x32xbf16, #tpu.memory_space<vmem>>, vector<32x32xbf16>
    %cst_101 = arith.constant dense<0.000000e+00> : vector<16x32xf32>
    %104 = tpu.matmul %102, %103, %cst_101 {dimension_numbers = #tpu.dot_dimension_numbers<[1], [0], [0], [1], [0, 0, 1, 1], [], []>} : vector<16x32xbf16>, vector<32x32xbf16>, vector<16x32xf32> -> vector<16x32xf32>
    %c0_102 = arith.constant 0 : index
    %c0_103 = arith.constant 0 : index
    %c0_104 = arith.constant 0 : index
    %105 = vector.load %arg9[%c0_102, %c0_103, %c0_104] : memref<3x1x32xf32, #tpu.memory_space<vmem>>, vector<1x1x32xf32>
    %106 = vector.shape_cast %105 : vector<1x1x32xf32> to vector<1x32xf32>
    %107 = vector.broadcast %106 : vector<1x32xf32> to vector<16x32xf32>
    %108 = arith.addf %104, %107 : vector<16x32xf32>
    %c0_105 = arith.constant 0 : index
    %c0_106 = arith.constant 0 : index
    %109 = vector.load %arg7[%c0_105, %c0_106] : memref<32x32xbf16, #tpu.memory_space<vmem>>, vector<32x32xbf16>
    %cst_107 = arith.constant dense<0.000000e+00> : vector<16x32xf32>
    %110 = tpu.matmul %102, %109, %cst_107 {dimension_numbers = #tpu.dot_dimension_numbers<[1], [0], [0], [1], [0, 0, 1, 1], [], []>} : vector<16x32xbf16>, vector<32x32xbf16>, vector<16x32xf32> -> vector<16x32xf32>
    %c1_108 = arith.constant 1 : index
    %c0_109 = arith.constant 0 : index
    %c0_110 = arith.constant 0 : index
    %111 = vector.load %arg9[%c1_108, %c0_109, %c0_110] : memref<3x1x32xf32, #tpu.memory_space<vmem>>, vector<1x1x32xf32>
    %112 = vector.shape_cast %111 : vector<1x1x32xf32> to vector<1x32xf32>
    %113 = vector.broadcast %112 : vector<1x32xf32> to vector<16x32xf32>
    %114 = arith.addf %110, %113 : vector<16x32xf32>
    %c0_111 = arith.constant 0 : index
    %c0_112 = arith.constant 0 : index
    %115 = vector.load %arg8[%c0_111, %c0_112] : memref<32x32xbf16, #tpu.memory_space<vmem>>, vector<32x32xbf16>
    %cst_113 = arith.constant dense<0.000000e+00> : vector<16x32xf32>
    %116 = tpu.matmul %102, %115, %cst_113 {dimension_numbers = #tpu.dot_dimension_numbers<[1], [0], [0], [1], [0, 0, 1, 1], [], []>} : vector<16x32xbf16>, vector<32x32xbf16>, vector<16x32xf32> -> vector<16x32xf32>
    %c2_114 = arith.constant 2 : index
    %c0_115 = arith.constant 0 : index
    %c0_116 = arith.constant 0 : index
    %117 = vector.load %arg9[%c2_114, %c0_115, %c0_116] : memref<3x1x32xf32, #tpu.memory_space<vmem>>, vector<1x1x32xf32>
    %118 = vector.shape_cast %117 : vector<1x1x32xf32> to vector<1x32xf32>
    %119 = vector.broadcast %118 : vector<1x32xf32> to vector<16x32xf32>
    %120 = arith.addf %116, %119 : vector<16x32xf32>
    %121 = vector.extract_strided_slice %108 {offsets = [0, 0], sizes = [16, 8], strides = [1, 1]} : vector<16x32xf32> to vector<16x8xf32>
    %122 = vector.shape_cast %121 : vector<16x8xf32> to vector<2x8x8xf32>
    %123 = arith.truncf %122 : vector<2x8x8xf32> to vector<2x8x8xbf16>
    %c0_117 = arith.constant 0 : index
    %c0_118 = arith.constant 0 : index
    %c0_119 = arith.constant 0 : index
    %c0_120 = arith.constant 0 : index
    %124 = vector.load %arg14[%c0_117, %c0_118, %c0_119, %c0_120] : memref<4x2x8x8xbf16, #tpu.memory_space<vmem>>, vector<1x2x8x8xbf16>
    %125 = vector.shape_cast %124 : vector<1x2x8x8xbf16> to vector<2x8x8xbf16>
    %126 = vector.shape_cast %123 : vector<2x8x8xbf16> to vector<1x2x8x8xbf16>
    tpu.vector_store %arg14[%c0_117, %c0_118, %c0_119, %c0_120], %126 {strides = array<i32>} : memref<4x2x8x8xbf16, #tpu.memory_space<vmem>>, vector<1x2x8x8xbf16>,
    %127 = vector.extract_strided_slice %114 {offsets = [0, 0], sizes = [16, 8], strides = [1, 1]} : vector<16x32xf32> to vector<16x8xf32>
    %128 = vector.shape_cast %127 : vector<16x8xf32> to vector<2x8x8xf32>
    %129 = arith.truncf %128 : vector<2x8x8xf32> to vector<2x8x8xbf16>
    %c0_121 = arith.constant 0 : index
    %c0_122 = arith.constant 0 : index
    %c0_123 = arith.constant 0 : index
    %c0_124 = arith.constant 0 : index
    %130 = vector.load %arg15[%c0_121, %c0_122, %c0_123, %c0_124] : memref<4x2x8x8xbf16, #tpu.memory_space<vmem>>, vector<1x2x8x8xbf16>
    %131 = vector.shape_cast %130 : vector<1x2x8x8xbf16> to vector<2x8x8xbf16>
    %132 = vector.shape_cast %129 : vector<2x8x8xbf16> to vector<1x2x8x8xbf16>
    tpu.vector_store %arg15[%c0_121, %c0_122, %c0_123, %c0_124], %132 {strides = array<i32>} : memref<4x2x8x8xbf16, #tpu.memory_space<vmem>>, vector<1x2x8x8xbf16>,
    %133 = vector.extract_strided_slice %120 {offsets = [0, 0], sizes = [16, 8], strides = [1, 1]} : vector<16x32xf32> to vector<16x8xf32>
    %134 = vector.shape_cast %133 : vector<16x8xf32> to vector<2x8x8xf32>
    %135 = arith.truncf %134 : vector<2x8x8xf32> to vector<2x8x8xbf16>
    %c0_125 = arith.constant 0 : index
    %c0_126 = arith.constant 0 : index
    %c0_127 = arith.constant 0 : index
    %c0_128 = arith.constant 0 : index
    %136 = vector.load %arg16[%c0_125, %c0_126, %c0_127, %c0_128] : memref<4x2x8x8xbf16, #tpu.memory_space<vmem>>, vector<1x2x8x8xbf16>
    %137 = vector.shape_cast %136 : vector<1x2x8x8xbf16> to vector<2x8x8xbf16>
    %138 = vector.shape_cast %135 : vector<2x8x8xbf16> to vector<1x2x8x8xbf16>
    tpu.vector_store %arg16[%c0_125, %c0_126, %c0_127, %c0_128], %138 {strides = array<i32>} : memref<4x2x8x8xbf16, #tpu.memory_space<vmem>>, vector<1x2x8x8xbf16>,
    %139 = vector.extract_strided_slice %108 {offsets = [0, 8], sizes = [16, 8], strides = [1, 1]} : vector<16x32xf32> to vector<16x8xf32>
    %140 = vector.shape_cast %139 : vector<16x8xf32> to vector<2x8x8xf32>
    %141 = arith.truncf %140 : vector<2x8x8xf32> to vector<2x8x8xbf16>
    %c1_129 = arith.constant 1 : index
    %c0_130 = arith.constant 0 : index
    %c0_131 = arith.constant 0 : index
    %c0_132 = arith.constant 0 : index
    %142 = vector.load %arg14[%c1_129, %c0_130, %c0_131, %c0_132] : memref<4x2x8x8xbf16, #tpu.memory_space<vmem>>, vector<1x2x8x8xbf16>
    %143 = vector.shape_cast %142 : vector<1x2x8x8xbf16> to vector<2x8x8xbf16>
    %144 = vector.shape_cast %141 : vector<2x8x8xbf16> to vector<1x2x8x8xbf16>
    tpu.vector_store %arg14[%c1_129, %c0_130, %c0_131, %c0_132], %144 {strides = array<i32>} : memref<4x2x8x8xbf16, #tpu.memory_space<vmem>>, vector<1x2x8x8xbf16>,
    %145 = vector.extract_strided_slice %114 {offsets = [0, 8], sizes = [16, 8], strides = [1, 1]} : vector<16x32xf32> to vector<16x8xf32>
    %146 = vector.shape_cast %145 : vector<16x8xf32> to vector<2x8x8xf32>
    %147 = arith.truncf %146 : vector<2x8x8xf32> to vector<2x8x8xbf16>
    %c1_133 = arith.constant 1 : index
    %c0_134 = arith.constant 0 : index
    %c0_135 = arith.constant 0 : index
    %c0_136 = arith.constant 0 : index
    %148 = vector.load %arg15[%c1_133, %c0_134, %c0_135, %c0_136] : memref<4x2x8x8xbf16, #tpu.memory_space<vmem>>, vector<1x2x8x8xbf16>
    %149 = vector.shape_cast %148 : vector<1x2x8x8xbf16> to vector<2x8x8xbf16>
    %150 = vector.shape_cast %147 : vector<2x8x8xbf16> to vector<1x2x8x8xbf16>
    tpu.vector_store %arg15[%c1_133, %c0_134, %c0_135, %c0_136], %150 {strides = array<i32>} : memref<4x2x8x8xbf16, #tpu.memory_space<vmem>>, vector<1x2x8x8xbf16>,
    %151 = vector.extract_strided_slice %120 {offsets = [0, 8], sizes = [16, 8], strides = [1, 1]} : vector<16x32xf32> to vector<16x8xf32>
    %152 = vector.shape_cast %151 : vector<16x8xf32> to vector<2x8x8xf32>
    %153 = arith.truncf %152 : vector<2x8x8xf32> to vector<2x8x8xbf16>
    %c1_137 = arith.constant 1 : index
    %c0_138 = arith.constant 0 : index
    %c0_139 = arith.constant 0 : index
    %c0_140 = arith.constant 0 : index
    %154 = vector.load %arg16[%c1_137, %c0_138, %c0_139, %c0_140] : memref<4x2x8x8xbf16, #tpu.memory_space<vmem>>, vector<1x2x8x8xbf16>
    %155 = vector.shape_cast %154 : vector<1x2x8x8xbf16> to vector<2x8x8xbf16>
    %156 = vector.shape_cast %153 : vector<2x8x8xbf16> to vector<1x2x8x8xbf16>
    tpu.vector_store %arg16[%c1_137, %c0_138, %c0_139, %c0_140], %156 {strides = array<i32>} : memref<4x2x8x8xbf16, #tpu.memory_space<vmem>>, vector<1x2x8x8xbf16>,
    %157 = vector.extract_strided_slice %108 {offsets = [0, 16], sizes = [16, 8], strides = [1, 1]} : vector<16x32xf32> to vector<16x8xf32>
    %158 = vector.shape_cast %157 : vector<16x8xf32> to vector<2x8x8xf32>
    %159 = arith.truncf %158 : vector<2x8x8xf32> to vector<2x8x8xbf16>
    %c2_141 = arith.constant 2 : index
    %c0_142 = arith.constant 0 : index
    %c0_143 = arith.constant 0 : index
    %c0_144 = arith.constant 0 : index
    %160 = vector.load %arg14[%c2_141, %c0_142, %c0_143, %c0_144] : memref<4x2x8x8xbf16, #tpu.memory_space<vmem>>, vector<1x2x8x8xbf16>
    %161 = vector.shape_cast %160 : vector<1x2x8x8xbf16> to vector<2x8x8xbf16>
    %162 = vector.shape_cast %159 : vector<2x8x8xbf16> to vector<1x2x8x8xbf16>
    tpu.vector_store %arg14[%c2_141, %c0_142, %c0_143, %c0_144], %162 {strides = array<i32>} : memref<4x2x8x8xbf16, #tpu.memory_space<vmem>>, vector<1x2x8x8xbf16>,
    %163 = vector.extract_strided_slice %114 {offsets = [0, 16], sizes = [16, 8], strides = [1, 1]} : vector<16x32xf32> to vector<16x8xf32>
    %164 = vector.shape_cast %163 : vector<16x8xf32> to vector<2x8x8xf32>
    %165 = arith.truncf %164 : vector<2x8x8xf32> to vector<2x8x8xbf16>
    %c2_145 = arith.constant 2 : index
    %c0_146 = arith.constant 0 : index
    %c0_147 = arith.constant 0 : index
    %c0_148 = arith.constant 0 : index
    %166 = vector.load %arg15[%c2_145, %c0_146, %c0_147, %c0_148] : memref<4x2x8x8xbf16, #tpu.memory_space<vmem>>, vector<1x2x8x8xbf16>
    %167 = vector.shape_cast %166 : vector<1x2x8x8xbf16> to vector<2x8x8xbf16>
    %168 = vector.shape_cast %165 : vector<2x8x8xbf16> to vector<1x2x8x8xbf16>
    tpu.vector_store %arg15[%c2_145, %c0_146, %c0_147, %c0_148], %168 {strides = array<i32>} : memref<4x2x8x8xbf16, #tpu.memory_space<vmem>>, vector<1x2x8x8xbf16>,
    %169 = vector.extract_strided_slice %120 {offsets = [0, 16], sizes = [16, 8], strides = [1, 1]} : vector<16x32xf32> to vector<16x8xf32>
    %170 = vector.shape_cast %169 : vector<16x8xf32> to vector<2x8x8xf32>
    %171 = arith.truncf %170 : vector<2x8x8xf32> to vector<2x8x8xbf16>
    %c2_149 = arith.constant 2 : index
    %c0_150 = arith.constant 0 : index
    %c0_151 = arith.constant 0 : index
    %c0_152 = arith.constant 0 : index
    %172 = vector.load %arg16[%c2_149, %c0_150, %c0_151, %c0_152] : memref<4x2x8x8xbf16, #tpu.memory_space<vmem>>, vector<1x2x8x8xbf16>
    %173 = vector.shape_cast %172 : vector<1x2x8x8xbf16> to vector<2x8x8xbf16>
    %174 = vector.shape_cast %171 : vector<2x8x8xbf16> to vector<1x2x8x8xbf16>
    tpu.vector_store %arg16[%c2_149, %c0_150, %c0_151, %c0_152], %174 {strides = array<i32>} : memref<4x2x8x8xbf16, #tpu.memory_space<vmem>>, vector<1x2x8x8xbf16>,
    %175 = vector.extract_strided_slice %108 {offsets = [0, 24], sizes = [16, 8], strides = [1, 1]} : vector<16x32xf32> to vector<16x8xf32>
    %176 = vector.shape_cast %175 : vector<16x8xf32> to vector<2x8x8xf32>
    %177 = arith.truncf %176 : vector<2x8x8xf32> to vector<2x8x8xbf16>
    %c3_153 = arith.constant 3 : index
    %c0_154 = arith.constant 0 : index
    %c0_155 = arith.constant 0 : index
    %c0_156 = arith.constant 0 : index
    %178 = vector.load %arg14[%c3_153, %c0_154, %c0_155, %c0_156] : memref<4x2x8x8xbf16, #tpu.memory_space<vmem>>, vector<1x2x8x8xbf16>
    %179 = vector.shape_cast %178 : vector<1x2x8x8xbf16> to vector<2x8x8xbf16>
    %180 = vector.shape_cast %177 : vector<2x8x8xbf16> to vector<1x2x8x8xbf16>
    tpu.vector_store %arg14[%c3_153, %c0_154, %c0_155, %c0_156], %180 {strides = array<i32>} : memref<4x2x8x8xbf16, #tpu.memory_space<vmem>>, vector<1x2x8x8xbf16>,
    %181 = vector.extract_strided_slice %114 {offsets = [0, 24], sizes = [16, 8], strides = [1, 1]} : vector<16x32xf32> to vector<16x8xf32>
    %182 = vector.shape_cast %181 : vector<16x8xf32> to vector<2x8x8xf32>
    %183 = arith.truncf %182 : vector<2x8x8xf32> to vector<2x8x8xbf16>
    %c3_157 = arith.constant 3 : index
    %c0_158 = arith.constant 0 : index
    %c0_159 = arith.constant 0 : index
    %c0_160 = arith.constant 0 : index
    %184 = vector.load %arg15[%c3_157, %c0_158, %c0_159, %c0_160] : memref<4x2x8x8xbf16, #tpu.memory_space<vmem>>, vector<1x2x8x8xbf16>
    %185 = vector.shape_cast %184 : vector<1x2x8x8xbf16> to vector<2x8x8xbf16>
    %186 = vector.shape_cast %183 : vector<2x8x8xbf16> to vector<1x2x8x8xbf16>
    tpu.vector_store %arg15[%c3_157, %c0_158, %c0_159, %c0_160], %186 {strides = array<i32>} : memref<4x2x8x8xbf16, #tpu.memory_space<vmem>>, vector<1x2x8x8xbf16>,
    %187 = vector.extract_strided_slice %120 {offsets = [0, 24], sizes = [16, 8], strides = [1, 1]} : vector<16x32xf32> to vector<16x8xf32>
    %188 = vector.shape_cast %187 : vector<16x8xf32> to vector<2x8x8xf32>
    %189 = arith.truncf %188 : vector<2x8x8xf32> to vector<2x8x8xbf16>
    %c3_161 = arith.constant 3 : index
    %c0_162 = arith.constant 0 : index
    %c0_163 = arith.constant 0 : index
    %c0_164 = arith.constant 0 : index
    %190 = vector.load %arg16[%c3_161, %c0_162, %c0_163, %c0_164] : memref<4x2x8x8xbf16, #tpu.memory_space<vmem>>, vector<1x2x8x8xbf16>
    %191 = vector.shape_cast %190 : vector<1x2x8x8xbf16> to vector<2x8x8xbf16>
    %192 = vector.shape_cast %189 : vector<2x8x8xbf16> to vector<1x2x8x8xbf16>
    tpu.vector_store %arg16[%c3_161, %c0_162, %c0_163, %c0_164], %192 {strides = array<i32>} : memref<4x2x8x8xbf16, #tpu.memory_space<vmem>>, vector<1x2x8x8xbf16>,
    %c0_165 = arith.constant 0 : index
    %c0_166 = arith.constant 0 : index
    %c0_167 = arith.constant 0 : index
    %c0_168 = arith.constant 0 : index
    %193 = vector.load %arg14[%c0_165, %c0_166, %c0_167, %c0_168] : memref<4x2x8x8xbf16, #tpu.memory_space<vmem>>, vector<4x2x8x8xbf16>
    %194 = vector.shape_cast %193 : vector<4x2x8x8xbf16> to vector<8x8x8xbf16>
    %c0_169 = arith.constant 0 : index
    %c0_170 = arith.constant 0 : index
    %c0_171 = arith.constant 0 : index
    %c0_172 = arith.constant 0 : index
    %195 = vector.load %arg15[%c0_169, %c0_170, %c0_171, %c0_172] : memref<4x2x8x8xbf16, #tpu.memory_space<vmem>>, vector<4x2x8x8xbf16>
    %196 = vector.shape_cast %195 : vector<4x2x8x8xbf16> to vector<8x8x8xbf16>
    %c0_173 = arith.constant 0 : index
    %c0_174 = arith.constant 0 : index
    %c0_175 = arith.constant 0 : index
    %c0_176 = arith.constant 0 : index
    %197 = vector.load %arg16[%c0_173, %c0_174, %c0_175, %c0_176] : memref<4x2x8x8xbf16, #tpu.memory_space<vmem>>, vector<4x2x8x8xbf16>
    %198 = vector.shape_cast %197 : vector<4x2x8x8xbf16> to vector<8x8x8xbf16>
    "tpu.trace_start"() <{level = 10 : i32, message = "bqd,bkd->bqk"}> : () -> ()
    %cst_177 = arith.constant dense<0.000000e+00> : vector<8x8x8xf32>
    %199 = tpu.matmul %194, %196, %cst_177 {dimension_numbers = #tpu.dot_dimension_numbers<[2], [2], [1], [1], [0, 0, 0, 1, 1, 1], [0], [0]>} : vector<8x8x8xbf16>, vector<8x8x8xbf16>, vector<8x8x8xf32> -> vector<8x8x8xf32>
    "tpu.trace_stop"() : () -> ()
    %cst_178 = arith.constant 0.353553385 : f32
    %200 = vector.broadcast %cst_178 : f32 to vector<8x8x8xf32>
    %201 = arith.mulf %199, %200 : vector<8x8x8xf32>
    %cst_179 = arith.constant dense<0xFF800000> : vector<8x8xf32>
    %202 = vector.multi_reduction <maximumf>, %201, %cst_179 [2] : vector<8x8x8xf32> to vector<8x8xf32>
    %203 = vector.shape_cast %202 : vector<8x8xf32> to vector<8x8x1xf32>
    %204 = vector.broadcast %203 : vector<8x8x1xf32> to vector<8x8x8xf32>
    %205 = arith.subf %201, %204 : vector<8x8x8xf32>
    %206 = math.exp %205 : vector<8x8x8xf32>
    %cst_180 = arith.constant dense<0.000000e+00> : vector<8x8xf32>
    %207 = vector.multi_reduction <add>, %206, %cst_180 [2] : vector<8x8x8xf32> to vector<8x8xf32>
    %208 = vector.shape_cast %207 : vector<8x8xf32> to vector<8x8x1xf32>
    %209 = tpu.reciprocal %208 : vector<8x8x1xf32> -> vector<8x8x1xf32>
    %210 = vector.broadcast %209 : vector<8x8x1xf32> to vector<8x8x8xf32>
    %211 = arith.mulf %206, %210 : vector<8x8x8xf32>
    %212 = arith.truncf %211 : vector<8x8x8xf32> to vector<8x8x8xbf16>
    "tpu.trace_start"() <{level = 10 : i32, message = "bqk,bkd->bqd"}> : () -> ()
    %cst_181 = arith.constant dense<0.000000e+00> : vector<8x8x8xf32>
    %213 = tpu.matmul %212, %198, %cst_181 {dimension_numbers = #tpu.dot_dimension_numbers<[2], [1], [1], [2], [0, 0, 0, 1, 1, 2], [0], [0]>} : vector<8x8x8xbf16>, vector<8x8x8xbf16>, vector<8x8x8xf32> -> vector<8x8x8xf32>
    "tpu.trace_stop"() : () -> ()
    %214 = vector.shape_cast %213 : vector<8x8x8xf32> to vector<4x16x8xf32>
    %215 = vector.extract_strided_slice %214 {offsets = [0, 0, 0], sizes = [1, 16, 8], strides = [1, 1, 1]} : vector<4x16x8xf32> to vector<1x16x8xf32>
    %216 = vector.shape_cast %215 : vector<1x16x8xf32> to vector<16x8xf32>
    %217 = arith.truncf %216 : vector<16x8xf32> to vector<16x8xbf16>
    %c0_182 = arith.constant 0 : index
    %c0_183 = arith.constant 0 : index
    %c0_184 = arith.constant 0 : index
    %218 = vector.load %arg10[%c0_182, %c0_183, %c0_184] : memref<4x8x32xbf16, #tpu.memory_space<vmem>>, vector<1x8x32xbf16>
    %219 = vector.shape_cast %218 : vector<1x8x32xbf16> to vector<8x32xbf16>
    %cst_185 = arith.constant dense<0.000000e+00> : vector<16x32xf32>
    %220 = tpu.matmul %217, %219, %cst_185 {dimension_numbers = #tpu.dot_dimension_numbers<[1], [0], [0], [1], [0, 0, 1, 1], [], []>} : vector<16x8xbf16>, vector<8x32xbf16>, vector<16x32xf32> -> vector<16x32xf32>
    %221 = vector.extract_strided_slice %214 {offsets = [1, 0, 0], sizes = [1, 16, 8], strides = [1, 1, 1]} : vector<4x16x8xf32> to vector<1x16x8xf32>
    %222 = vector.shape_cast %221 : vector<1x16x8xf32> to vector<16x8xf32>
    %223 = arith.truncf %222 : vector<16x8xf32> to vector<16x8xbf16>
    %c1_186 = arith.constant 1 : index
    %c0_187 = arith.constant 0 : index
    %c0_188 = arith.constant 0 : index
    %224 = vector.load %arg10[%c1_186, %c0_187, %c0_188] : memref<4x8x32xbf16, #tpu.memory_space<vmem>>, vector<1x8x32xbf16>
    %225 = vector.shape_cast %224 : vector<1x8x32xbf16> to vector<8x32xbf16>
    %cst_189 = arith.constant dense<0.000000e+00> : vector<16x32xf32>
    %226 = tpu.matmul %223, %225, %cst_189 {dimension_numbers = #tpu.dot_dimension_numbers<[1], [0], [0], [1], [0, 0, 1, 1], [], []>} : vector<16x8xbf16>, vector<8x32xbf16>, vector<16x32xf32> -> vector<16x32xf32>
    %227 = arith.addf %220, %226 : vector<16x32xf32>
    %228 = vector.extract_strided_slice %214 {offsets = [2, 0, 0], sizes = [1, 16, 8], strides = [1, 1, 1]} : vector<4x16x8xf32> to vector<1x16x8xf32>
    %229 = vector.shape_cast %228 : vector<1x16x8xf32> to vector<16x8xf32>
    %230 = arith.truncf %229 : vector<16x8xf32> to vector<16x8xbf16>
    %c2_190 = arith.constant 2 : index
    %c0_191 = arith.constant 0 : index
    %c0_192 = arith.constant 0 : index
    %231 = vector.load %arg10[%c2_190, %c0_191, %c0_192] : memref<4x8x32xbf16, #tpu.memory_space<vmem>>, vector<1x8x32xbf16>
    %232 = vector.shape_cast %231 : vector<1x8x32xbf16> to vector<8x32xbf16>
    %cst_193 = arith.constant dense<0.000000e+00> : vector<16x32xf32>
    %233 = tpu.matmul %230, %232, %cst_193 {dimension_numbers = #tpu.dot_dimension_numbers<[1], [0], [0], [1], [0, 0, 1, 1], [], []>} : vector<16x8xbf16>, vector<8x32xbf16>, vector<16x32xf32> -> vector<16x32xf32>
    %234 = arith.addf %227, %233 : vector<16x32xf32>
    %235 = vector.extract_strided_slice %214 {offsets = [3, 0, 0], sizes = [1, 16, 8], strides = [1, 1, 1]} : vector<4x16x8xf32> to vector<1x16x8xf32>
    %236 = vector.shape_cast %235 : vector<1x16x8xf32> to vector<16x8xf32>
    %237 = arith.truncf %236 : vector<16x8xf32> to vector<16x8xbf16>
    %c3_194 = arith.constant 3 : index
    %c0_195 = arith.constant 0 : index
    %c0_196 = arith.constant 0 : index
    %238 = vector.load %arg10[%c3_194, %c0_195, %c0_196] : memref<4x8x32xbf16, #tpu.memory_space<vmem>>, vector<1x8x32xbf16>
    %239 = vector.shape_cast %238 : vector<1x8x32xbf16> to vector<8x32xbf16>
    %cst_197 = arith.constant dense<0.000000e+00> : vector<16x32xf32>
    %240 = tpu.matmul %237, %239, %cst_197 {dimension_numbers = #tpu.dot_dimension_numbers<[1], [0], [0], [1], [0, 0, 1, 1], [], []>} : vector<16x8xbf16>, vector<8x32xbf16>, vector<16x32xf32> -> vector<16x32xf32>
    %241 = arith.addf %234, %240 : vector<16x32xf32>
    %c0_198 = arith.constant 0 : index
    %c0_199 = arith.constant 0 : index
    %242 = vector.load %arg11[%c0_198, %c0_199] : memref<1x32xf32, #tpu.memory_space<vmem>>, vector<1x32xf32>
    %243 = vector.broadcast %242 : vector<1x32xf32> to vector<16x32xf32>
    %244 = arith.addf %241, %243 : vector<16x32xf32>
    %245 = vector.shape_cast %244 : vector<16x32xf32> to vector<2x8x32xf32>
    %c0_200 = arith.constant 0 : index
    %c0_201 = arith.constant 0 : index
    %c0_202 = arith.constant 0 : index
    %246 = vector.load %arg12[%c0_200, %c0_201, %c0_202] : memref<2x8x32xf32, #tpu.memory_space<vmem>>, vector<2x8x32xf32>
    tpu.vector_store %arg12[%c0_200, %c0_201, %c0_202], %245 {strides = array<i32>} : memref<2x8x32xf32, #tpu.memory_space<vmem>>, vector<2x8x32xf32>,
    return
  }
  func.func @transform_0(%arg0: i32) -> (i32, i32, i32) {
    %c0_i32 = arith.constant 0 : i32
    %c0_i32_0 = arith.constant 0 : i32
    %c0_i32_1 = arith.constant 0 : i32
    return %arg0, %c0_i32, %c0_i32_0 : i32, i32, i32
  }
  func.func @transform_1(%arg0: i32) -> (i32, i32, i32) {
    %c0_i32 = arith.constant 0 : i32
    %c0_i32_0 = arith.constant 0 : i32
    %c0_i32_1 = arith.constant 0 : i32
    %c0_i32_2 = arith.constant 0 : i32
    return %c0_i32, %c0_i32_0, %c0_i32_1 : i32, i32, i32
  }
  func.func @transform_2(%arg0: i32) -> (i32, i32, i32) {
    %c0_i32 = arith.constant 0 : i32
    %c0_i32_0 = arith.constant 0 : i32
    %c0_i32_1 = arith.constant 0 : i32
    %c0_i32_2 = arith.constant 0 : i32
    return %c0_i32, %c0_i32_0, %c0_i32_1 : i32, i32, i32
  }
  func.func @transform_3(%arg0: i32) -> (i32, i32, i32) {
    %c0_i32 = arith.constant 0 : i32
    %c0_i32_0 = arith.constant 0 : i32
    %c0_i32_1 = arith.constant 0 : i32
    %c0_i32_2 = arith.constant 0 : i32
    return %c0_i32, %c0_i32_0, %c0_i32_1 : i32, i32, i32
  }
  func.func @transform_4(%arg0: i32) -> (i32, i32, i32) {
    %c0_i32 = arith.constant 0 : i32
    %c0_i32_0 = arith.constant 0 : i32
    %c0_i32_1 = arith.constant 0 : i32
    %c0_i32_2 = arith.constant 0 : i32
    return %c0_i32, %c0_i32_0, %c0_i32_1 : i32, i32, i32
  }
  func.func @transform_5(%arg0: i32) -> (i32, i32) {
    %c0_i32 = arith.constant 0 : i32
    %c0_i32_0 = arith.constant 0 : i32
    %c0_i32_1 = arith.constant 0 : i32
    return %c0_i32, %c0_i32_0 : i32, i32
  }
  func.func @transform_6(%arg0: i32) -> (i32, i32) {
    %c0_i32 = arith.constant 0 : i32
    %c0_i32_0 = arith.constant 0 : i32
    %c0_i32_1 = arith.constant 0 : i32
    return %c0_i32, %c0_i32_0 : i32, i32
  }
  func.func @transform_7(%arg0: i32) -> (i32, i32) {
    %c0_i32 = arith.constant 0 : i32
    %c0_i32_0 = arith.constant 0 : i32
    %c0_i32_1 = arith.constant 0 : i32
    return %c0_i32, %c0_i32_0 : i32, i32
  }
  func.func @transform_8(%arg0: i32) -> (i32, i32, i32) {
    %c0_i32 = arith.constant 0 : i32
    %c0_i32_0 = arith.constant 0 : i32
    %c0_i32_1 = arith.constant 0 : i32
    %c0_i32_2 = arith.constant 0 : i32
    return %c0_i32, %c0_i32_0, %c0_i32_1 : i32, i32, i32
  }
  func.func @transform_9(%arg0: i32) -> (i32, i32, i32) {
    %c0_i32 = arith.constant 0 : i32
    %c0_i32_0 = arith.constant 0 : i32
    %c0_i32_1 = arith.constant 0 : i32
    %c0_i32_2 = arith.constant 0 : i32
    return %c0_i32, %c0_i32_0, %c0_i32_1 : i32, i32, i32
  }
  func.func @transform_10(%arg0: i32) -> (i32, i32) {
    %c0_i32 = arith.constant 0 : i32
    %c0_i32_0 = arith.constant 0 : i32
    %c0_i32_1 = arith.constant 0 : i32
    return %c0_i32, %c0_i32_0 : i32, i32
  }
  func.func @transform_11(%arg0: i32) -> (i32, i32, i32) {
    %c0_i32 = arith.constant 0 : i32
    %c0_i32_0 = arith.constant 0 : i32
    %c0_i32_1 = arith.constant 0 : i32
    return %arg0, %c0_i32, %c0_i32_0 : i32, i32, i32
  }
}

module attributes {stable_mosaic.version = 11 : i64} {
  func.func @_fused_kernel(%arg0: i32, %arg1: memref<2x8x32xbf16, #tpu.memory_space<vmem>>, %arg2: memref<3x32x32xbf16, #tpu.memory_space<vmem>>, %arg3: memref<5x32x32xbf16, #tpu.memory_space<vmem>>, %arg4: memref<7x32x32xbf16, #tpu.memory_space<vmem>>, %arg5: memref<3x1x32xf32, #tpu.memory_space<vmem>>, %arg6: memref<32x32xbf16, #tpu.memory_space<vmem>>, %arg7: memref<32x32xbf16, #tpu.memory_space<vmem>>, %arg8: memref<32x32xbf16, #tpu.memory_space<vmem>>, %arg9: memref<3x1x32xf32, #tpu.memory_space<vmem>>, %arg10: memref<4x8x32xbf16, #tpu.memory_space<vmem>>, %arg11: memref<1x32xf32, #tpu.memory_space<vmem>>, %arg12: memref<2x8x32xf32, #tpu.memory_space<vmem>>, %arg13: memref<2x14x32xbf16, #tpu.memory_space<vmem>>, %arg14: memref<4x2x8x8xbf16, #tpu.memory_space<vmem>>, %arg15: memref<4x2x8x8xbf16, #tpu.memory_space<vmem>>, %arg16: memref<4x2x8x8xbf16, #tpu.memory_space<vmem>>) attributes {dimension_semantics = [#tpu.dimension_semantics<parallel>], iteration_bounds = array<i64: 1>, scalar_prefetch = 0 : i64, scratch_operands = 4 : i64, tpu.core_type = #tpu.core_type<tc>, window_params = [{transform_indices = @transform_0, window_bounds = array<i64: 2, 8, 32>}, {pipeline_mode = #tpu.pipeline_mode<synchronous>, transform_indices = @transform_1, window_bounds = array<i64: 3, 32, 32>}, {pipeline_mode = #tpu.pipeline_mode<synchronous>, transform_indices = @transform_2, window_bounds = array<i64: 5, 32, 32>}, {pipeline_mode = #tpu.pipeline_mode<synchronous>, transform_indices = @transform_3, window_bounds = array<i64: 7, 32, 32>}, {pipeline_mode = #tpu.pipeline_mode<synchronous>, transform_indices = @transform_4, window_bounds = array<i64: 3, 1, 32>}, {pipeline_mode = #tpu.pipeline_mode<synchronous>, transform_indices = @transform_5, window_bounds = array<i64: 32, 32>}, {pipeline_mode = #tpu.pipeline_mode<synchronous>, transform_indices = @transform_6, window_bounds = array<i64: 32, 32>}, {pipeline_mode = #tpu.pipeline_mode<synchronous>, transform_indices = @transform_7, window_bounds = array<i64: 32, 32>}, {pipeline_mode = #tpu.pipeline_mode<synchronous>, transform_indices = @transform_8, window_bounds = array<i64: 3, 1, 32>}, {pipeline_mode = #tpu.pipeline_mode<synchronous>, transform_indices = @transform_9, window_bounds = array<i64: 4, 8, 32>}, {pipeline_mode = #tpu.pipeline_mode<synchronous>, transform_indices = @transform_10, window_bounds = array<i64: 1, 32>}, {transform_indices = @transform_11, window_bounds = array<i64: 2, 8, 32>}]} {
    %cst = arith.constant 0.000000e+00 : bf16
    %0 = vector.broadcast %cst : bf16 to vector<2x3x32xbf16>
    %c0 = arith.constant 0 : index
    %c0_0 = arith.constant 0 : index
    %c0_1 = arith.constant 0 : index
    %1 = vector.load %arg13[%c0, %c0_0, %c0_1] : memref<2x14x32xbf16, #tpu.memory_space<vmem>>, vector<2x3x32xbf16>
    tpu.vector_store %arg13[%c0, %c0_0, %c0_1], %0 {strides = array<i32>} : memref<2x14x32xbf16, #tpu.memory_space<vmem>>, vector<2x3x32xbf16>,
    %cst_2 = arith.constant 0.000000e+00 : bf16
    %2 = vector.broadcast %cst_2 : bf16 to vector<2x3x32xbf16>
    %c0_3 = arith.constant 0 : index
    %c11 = arith.constant 11 : index
    %c0_4 = arith.constant 0 : index
    %3 = vector.load %arg13[%c0_3, %c11, %c0_4] : memref<2x14x32xbf16, #tpu.memory_space<vmem>>, vector<2x3x32xbf16>
    tpu.vector_store %arg13[%c0_3, %c11, %c0_4], %2 {strides = array<i32>} : memref<2x14x32xbf16, #tpu.memory_space<vmem>>, vector<2x3x32xbf16>,
    %c0_5 = arith.constant 0 : index
    %c0_6 = arith.constant 0 : index
    %c0_7 = arith.constant 0 : index
    %4 = vector.load %arg1[%c0_5, %c0_6, %c0_7] : memref<2x8x32xbf16, #tpu.memory_space<vmem>>, vector<2x8x32xbf16>
    %c0_8 = arith.constant 0 : index
    %c3 = arith.constant 3 : index
    %c0_9 = arith.constant 0 : index
    %5 = vector.load %arg13[%c0_8, %c3, %c0_9] : memref<2x14x32xbf16, #tpu.memory_space<vmem>>, vector<2x8x32xbf16>
    tpu.vector_store %arg13[%c0_8, %c3, %c0_9], %4 {strides = array<i32>} : memref<2x14x32xbf16, #tpu.memory_space<vmem>>, vector<2x8x32xbf16>,
    %c0_10 = arith.constant 0 : index
    %c0_11 = arith.constant 0 : index
    %c0_12 = arith.constant 0 : index
    %6 = vector.load %arg13[%c0_10, %c0_11, %c0_12] : memref<2x14x32xbf16, #tpu.memory_space<vmem>>, vector<2x8x32xbf16>
    %7 = vector.shape_cast %6 : vector<2x8x32xbf16> to vector<16x32xbf16>
    %c0_13 = arith.constant 0 : index
    %c0_14 = arith.constant 0 : index
    %c0_15 = arith.constant 0 : index
    %8 = vector.load %arg4[%c0_13, %c0_14, %c0_15] : memref<7x32x32xbf16, #tpu.memory_space<vmem>>, vector<1x32x32xbf16>
    %9 = vector.shape_cast %8 : vector<1x32x32xbf16> to vector<32x32xbf16>
    %cst_16 = arith.constant dense<0.000000e+00> : vector<16x32xf32>
    %10 = tpu.matmul %7, %9, %cst_16 {dimension_numbers = #tpu.dot_dimension_numbers<[1], [0], [0], [1], [0, 0, 1, 1], [], []>} : vector<16x32xbf16>, vector<32x32xbf16>, vector<16x32xf32> -> vector<16x32xf32>
    %c0_17 = arith.constant 0 : index
    %c1 = arith.constant 1 : index
    %c0_18 = arith.constant 0 : index
    %11 = vector.load %arg13[%c0_17, %c1, %c0_18] : memref<2x14x32xbf16, #tpu.memory_space<vmem>>, vector<2x8x32xbf16>
    %12 = vector.shape_cast %11 : vector<2x8x32xbf16> to vector<16x32xbf16>
    %c0_19 = arith.constant 0 : index
    %c0_20 = arith.constant 0 : index
    %c0_21 = arith.constant 0 : index
    %13 = vector.load %arg3[%c0_19, %c0_20, %c0_21] : memref<5x32x32xbf16, #tpu.memory_space<vmem>>, vector<1x32x32xbf16>
    %14 = vector.shape_cast %13 : vector<1x32x32xbf16> to vector<32x32xbf16>
    %cst_22 = arith.constant dense<0.000000e+00> : vector<16x32xf32>
    %15 = tpu.matmul %12, %14, %cst_22 {dimension_numbers = #tpu.dot_dimension_numbers<[1], [0], [0], [1], [0, 0, 1, 1], [], []>} : vector<16x32xbf16>, vector<32x32xbf16>, vector<16x32xf32> -> vector<16x32xf32>
    %c1_23 = arith.constant 1 : index
    %c0_24 = arith.constant 0 : index
    %c0_25 = arith.constant 0 : index
    %16 = vector.load %arg4[%c1_23, %c0_24, %c0_25] : memref<7x32x32xbf16, #tpu.memory_space<vmem>>, vector<1x32x32xbf16>
    %17 = vector.shape_cast %16 : vector<1x32x32xbf16> to vector<32x32xbf16>
    %cst_26 = arith.constant dense<0.000000e+00> : vector<16x32xf32>
    %18 = tpu.matmul %12, %17, %cst_26 {dimension_numbers = #tpu.dot_dimension_numbers<[1], [0], [0], [1], [0, 0, 1, 1], [], []>} : vector<16x32xbf16>, vector<32x32xbf16>, vector<16x32xf32> -> vector<16x32xf32>
    %19 = arith.addf %10, %18 : vector<16x32xf32>
    %c0_27 = arith.constant 0 : index
    %c2 = arith.constant 2 : index
    %c0_28 = arith.constant 0 : index
    %20 = vector.load %arg13[%c0_27, %c2, %c0_28] : memref<2x14x32xbf16, #tpu.memory_space<vmem>>, vector<2x8x32xbf16>
    %21 = vector.shape_cast %20 : vector<2x8x32xbf16> to vector<16x32xbf16>
    %c0_29 = arith.constant 0 : index
    %c0_30 = arith.constant 0 : index
    %c0_31 = arith.constant 0 : index
    %22 = vector.load %arg2[%c0_29, %c0_30, %c0_31] : memref<3x32x32xbf16, #tpu.memory_space<vmem>>, vector<1x32x32xbf16>
    %23 = vector.shape_cast %22 : vector<1x32x32xbf16> to vector<32x32xbf16>
    %cst_32 = arith.constant dense<0.000000e+00> : vector<16x32xf32>
    %24 = tpu.matmul %21, %23, %cst_32 {dimension_numbers = #tpu.dot_dimension_numbers<[1], [0], [0], [1], [0, 0, 1, 1], [], []>} : vector<16x32xbf16>, vector<32x32xbf16>, vector<16x32xf32> -> vector<16x32xf32>
    %c1_33 = arith.constant 1 : index
    %c0_34 = arith.constant 0 : index
    %c0_35 = arith.constant 0 : index
    %25 = vector.load %arg3[%c1_33, %c0_34, %c0_35] : memref<5x32x32xbf16, #tpu.memory_space<vmem>>, vector<1x32x32xbf16>
    %26 = vector.shape_cast %25 : vector<1x32x32xbf16> to vector<32x32xbf16>
    %cst_36 = arith.constant dense<0.000000e+00> : vector<16x32xf32>
    %27 = tpu.matmul %21, %26, %cst_36 {dimension_numbers = #tpu.dot_dimension_numbers<[1], [0], [0], [1], [0, 0, 1, 1], [], []>} : vector<16x32xbf16>, vector<32x32xbf16>, vector<16x32xf32> -> vector<16x32xf32>
    %28 = arith.addf %15, %27 : vector<16x32xf32>
    %c2_37 = arith.constant 2 : index
    %c0_38 = arith.constant 0 : index
    %c0_39 = arith.constant 0 : index
    %29 = vector.load %arg4[%c2_37, %c0_38, %c0_39] : memref<7x32x32xbf16, #tpu.memory_space<vmem>>, vector<1x32x32xbf16>
    %30 = vector.shape_cast %29 : vector<1x32x32xbf16> to vector<32x32xbf16>
    %cst_40 = arith.constant dense<0.000000e+00> : vector<16x32xf32>
    %31 = tpu.matmul %21, %30, %cst_40 {dimension_numbers = #tpu.dot_dimension_numbers<[1], [0], [0], [1], [0, 0, 1, 1], [], []>} : vector<16x32xbf16>, vector<32x32xbf16>, vector<16x32xf32> -> vector<16x32xf32>
    %32 = arith.addf %19, %31 : vector<16x32xf32>
    %c0_41 = arith.constant 0 : index
    %c3_42 = arith.constant 3 : index
    %c0_43 = arith.constant 0 : index
    %33 = vector.load %arg13[%c0_41, %c3_42, %c0_43] : memref<2x14x32xbf16, #tpu.memory_space<vmem>>, vector<2x8x32xbf16>
    %34 = vector.shape_cast %33 : vector<2x8x32xbf16> to vector<16x32xbf16>
    %c1_44 = arith.constant 1 : index
    %c0_45 = arith.constant 0 : index
    %c0_46 = arith.constant 0 : index
    %35 = vector.load %arg2[%c1_44, %c0_45, %c0_46] : memref<3x32x32xbf16, #tpu.memory_space<vmem>>, vector<1x32x32xbf16>
    %36 = vector.shape_cast %35 : vector<1x32x32xbf16> to vector<32x32xbf16>
    %cst_47 = arith.constant dense<0.000000e+00> : vector<16x32xf32>
    %37 = tpu.matmul %34, %36, %cst_47 {dimension_numbers = #tpu.dot_dimension_numbers<[1], [0], [0], [1], [0, 0, 1, 1], [], []>} : vector<16x32xbf16>, vector<32x32xbf16>, vector<16x32xf32> -> vector<16x32xf32>
    %38 = arith.addf %24, %37 : vector<16x32xf32>
    %c2_48 = arith.constant 2 : index
    %c0_49 = arith.constant 0 : index
    %c0_50 = arith.constant 0 : index
    %39 = vector.load %arg3[%c2_48, %c0_49, %c0_50] : memref<5x32x32xbf16, #tpu.memory_space<vmem>>, vector<1x32x32xbf16>
    %40 = vector.shape_cast %39 : vector<1x32x32xbf16> to vector<32x32xbf16>
    %cst_51 = arith.constant dense<0.000000e+00> : vector<16x32xf32>
    %41 = tpu.matmul %34, %40, %cst_51 {dimension_numbers = #tpu.dot_dimension_numbers<[1], [0], [0], [1], [0, 0, 1, 1], [], []>} : vector<16x32xbf16>, vector<32x32xbf16>, vector<16x32xf32> -> vector<16x32xf32>
    %42 = arith.addf %28, %41 : vector<16x32xf32>
    %c3_52 = arith.constant 3 : index
    %c0_53 = arith.constant 0 : index
    %c0_54 = arith.constant 0 : index
    %43 = vector.load %arg4[%c3_52, %c0_53, %c0_54] : memref<7x32x32xbf16, #tpu.memory_space<vmem>>, vector<1x32x32xbf16>
    %44 = vector.shape_cast %43 : vector<1x32x32xbf16> to vector<32x32xbf16>
    %cst_55 = arith.constant dense<0.000000e+00> : vector<16x32xf32>
    %45 = tpu.matmul %34, %44, %cst_55 {dimension_numbers = #tpu.dot_dimension_numbers<[1], [0], [0], [1], [0, 0, 1, 1], [], []>} : vector<16x32xbf16>, vector<32x32xbf16>, vector<16x32xf32> -> vector<16x32xf32>
    %46 = arith.addf %32, %45 : vector<16x32xf32>
    %c0_56 = arith.constant 0 : index
    %c4 = arith.constant 4 : index
    %c0_57 = arith.constant 0 : index
    %47 = vector.load %arg13[%c0_56, %c4, %c0_57] : memref<2x14x32xbf16, #tpu.memory_space<vmem>>, vector<2x8x32xbf16>
    %48 = vector.shape_cast %47 : vector<2x8x32xbf16> to vector<16x32xbf16>
    %c2_58 = arith.constant 2 : index
    %c0_59 = arith.constant 0 : index
    %c0_60 = arith.constant 0 : index
    %49 = vector.load %arg2[%c2_58, %c0_59, %c0_60] : memref<3x32x32xbf16, #tpu.memory_space<vmem>>, vector<1x32x32xbf16>
    %50 = vector.shape_cast %49 : vector<1x32x32xbf16> to vector<32x32xbf16>
    %cst_61 = arith.constant dense<0.000000e+00> : vector<16x32xf32>
    %51 = tpu.matmul %48, %50, %cst_61 {dimension_numbers = #tpu.dot_dimension_numbers<[1], [0], [0], [1], [0, 0, 1, 1], [], []>} : vector<16x32xbf16>, vector<32x32xbf16>, vector<16x32xf32> -> vector<16x32xf32>
    %52 = arith.addf %38, %51 : vector<16x32xf32>
    %c3_62 = arith.constant 3 : index
    %c0_63 = arith.constant 0 : index
    %c0_64 = arith.constant 0 : index
    %53 = vector.load %arg3[%c3_62, %c0_63, %c0_64] : memref<5x32x32xbf16, #tpu.memory_space<vmem>>, vector<1x32x32xbf16>
    %54 = vector.shape_cast %53 : vector<1x32x32xbf16> to vector<32x32xbf16>
    %cst_65 = arith.constant dense<0.000000e+00> : vector<16x32xf32>
    %55 = tpu.matmul %48, %54, %cst_65 {dimension_numbers = #tpu.dot_dimension_numbers<[1], [0], [0], [1], [0, 0, 1, 1], [], []>} : vector<16x32xbf16>, vector<32x32xbf16>, vector<16x32xf32> -> vector<16x32xf32>
    %56 = arith.addf %42, %55 : vector<16x32xf32>
    %c4_66 = arith.constant 4 : index
    %c0_67 = arith.constant 0 : index
    %c0_68 = arith.constant 0 : index
    %57 = vector.load %arg4[%c4_66, %c0_67, %c0_68] : memref<7x32x32xbf16, #tpu.memory_space<vmem>>, vector<1x32x32xbf16>
    %58 = vector.shape_cast %57 : vector<1x32x32xbf16> to vector<32x32xbf16>
    %cst_69 = arith.constant dense<0.000000e+00> : vector<16x32xf32>
    %59 = tpu.matmul %48, %58, %cst_69 {dimension_numbers = #tpu.dot_dimension_numbers<[1], [0], [0], [1], [0, 0, 1, 1], [], []>} : vector<16x32xbf16>, vector<32x32xbf16>, vector<16x32xf32> -> vector<16x32xf32>
    %60 = arith.addf %46, %59 : vector<16x32xf32>
    %c0_70 = arith.constant 0 : index
    %c5 = arith.constant 5 : index
    %c0_71 = arith.constant 0 : index
    %61 = vector.load %arg13[%c0_70, %c5, %c0_71] : memref<2x14x32xbf16, #tpu.memory_space<vmem>>, vector<2x8x32xbf16>
    %62 = vector.shape_cast %61 : vector<2x8x32xbf16> to vector<16x32xbf16>
    %c4_72 = arith.constant 4 : index
    %c0_73 = arith.constant 0 : index
    %c0_74 = arith.constant 0 : index
    %63 = vector.load %arg3[%c4_72, %c0_73, %c0_74] : memref<5x32x32xbf16, #tpu.memory_space<vmem>>, vector<1x32x32xbf16>
    %64 = vector.shape_cast %63 : vector<1x32x32xbf16> to vector<32x32xbf16>
    %cst_75 = arith.constant dense<0.000000e+00> : vector<16x32xf32>
    %65 = tpu.matmul %62, %64, %cst_75 {dimension_numbers = #tpu.dot_dimension_numbers<[1], [0], [0], [1], [0, 0, 1, 1], [], []>} : vector<16x32xbf16>, vector<32x32xbf16>, vector<16x32xf32> -> vector<16x32xf32>
    %66 = arith.addf %56, %65 : vector<16x32xf32>
    %c5_76 = arith.constant 5 : index
    %c0_77 = arith.constant 0 : index
    %c0_78 = arith.constant 0 : index
    %67 = vector.load %arg4[%c5_76, %c0_77, %c0_78] : memref<7x32x32xbf16, #tpu.memory_space<vmem>>, vector<1x32x32xbf16>
    %68 = vector.shape_cast %67 : vector<1x32x32xbf16> to vector<32x32xbf16>
    %cst_79 = arith.constant dense<0.000000e+00> : vector<16x32xf32>
    %69 = tpu.matmul %62, %68, %cst_79 {dimension_numbers = #tpu.dot_dimension_numbers<[1], [0], [0], [1], [0, 0, 1, 1], [], []>} : vector<16x32xbf16>, vector<32x32xbf16>, vector<16x32xf32> -> vector<16x32xf32>
    %70 = arith.addf %60, %69 : vector<16x32xf32>
    %c0_80 = arith.constant 0 : index
    %c6 = arith.constant 6 : index
    %c0_81 = arith.constant 0 : index
    %71 = vector.load %arg13[%c0_80, %c6, %c0_81] : memref<2x14x32xbf16, #tpu.memory_space<vmem>>, vector<2x8x32xbf16>
    %72 = vector.shape_cast %71 : vector<2x8x32xbf16> to vector<16x32xbf16>
    %c6_82 = arith.constant 6 : index
    %c0_83 = arith.constant 0 : index
    %c0_84 = arith.constant 0 : index
    %73 = vector.load %arg4[%c6_82, %c0_83, %c0_84] : memref<7x32x32xbf16, #tpu.memory_space<vmem>>, vector<1x32x32xbf16>
    %74 = vector.shape_cast %73 : vector<1x32x32xbf16> to vector<32x32xbf16>
    %cst_85 = arith.constant dense<0.000000e+00> : vector<16x32xf32>
    %75 = tpu.matmul %72, %74, %cst_85 {dimension_numbers = #tpu.dot_dimension_numbers<[1], [0], [0], [1], [0, 0, 1, 1], [], []>} : vector<16x32xbf16>, vector<32x32xbf16>, vector<16x32xf32> -> vector<16x32xf32>
    %76 = arith.addf %70, %75 : vector<16x32xf32>
    %cst_86 = arith.constant 0.000000e+00 : f32
    %77 = vector.broadcast %cst_86 : f32 to vector<16x32xf32>
    %c0_87 = arith.constant 0 : index
    %c0_88 = arith.constant 0 : index
    %c0_89 = arith.constant 0 : index
    %78 = vector.load %arg5[%c0_87, %c0_88, %c0_89] : memref<3x1x32xf32, #tpu.memory_space<vmem>>, vector<1x1x32xf32>
    %79 = vector.shape_cast %78 : vector<1x1x32xf32> to vector<1x32xf32>
    %80 = vector.broadcast %79 : vector<1x32xf32> to vector<16x32xf32>
    %81 = arith.addf %52, %80 : vector<16x32xf32>
    %cst_90 = arith.constant 0.00999999977 : f32
    %82 = vector.broadcast %cst_90 : f32 to vector<16x32xf32>
    %83 = arith.mulf %82, %81 : vector<16x32xf32>
    %84 = arith.maximumf %81, %83 : vector<16x32xf32>
    %85 = arith.addf %77, %84 : vector<16x32xf32>
    %c1_91 = arith.constant 1 : index
    %c0_92 = arith.constant 0 : index
    %c0_93 = arith.constant 0 : index
    %86 = vector.load %arg5[%c1_91, %c0_92, %c0_93] : memref<3x1x32xf32, #tpu.memory_space<vmem>>, vector<1x1x32xf32>
    %87 = vector.shape_cast %86 : vector<1x1x32xf32> to vector<1x32xf32>
    %88 = vector.broadcast %87 : vector<1x32xf32> to vector<16x32xf32>
    %89 = arith.addf %66, %88 : vector<16x32xf32>
    %cst_94 = arith.constant 0.00999999977 : f32
    %90 = vector.broadcast %cst_94 : f32 to vector<16x32xf32>
    %91 = arith.mulf %90, %89 : vector<16x32xf32>
    %92 = arith.maximumf %89, %91 : vector<16x32xf32>
    %93 = arith.addf %85, %92 : vector<16x32xf32>
    %c2_95 = arith.constant 2 : index
    %c0_96 = arith.constant 0 : index
    %c0_97 = arith.constant 0 : index
    %94 = vector.load %arg5[%c2_95, %c0_96, %c0_97] : memref<3x1x32xf32, #tpu.memory_space<vmem>>, vector<1x1x32xf32>
    %95 = vector.shape_cast %94 : vector<1x1x32xf32> to vector<1x32xf32>
    %96 = vector.broadcast %95 : vector<1x32xf32> to vector<16x32xf32>
    %97 = arith.addf %76, %96 : vector<16x32xf32>
    %cst_98 = arith.constant 0.00999999977 : f32
    %98 = vector.broadcast %cst_98 : f32 to vector<16x32xf32>
    %99 = arith.mulf %98, %97 : vector<16x32xf32>
    %100 = arith.maximumf %97, %99 : vector<16x32xf32>
    %101 = arith.addf %93, %100 : vector<16x32xf32>
    %102 = arith.truncf %101 : vector<16x32xf32> to vector<16x32xbf16>
    %c0_99 = arith.constant 0 : index
    %c0_100 = arith.constant 0 : index
    %103 = vector.load %arg6[%c0_99, %c0_100] : memref<32x32xbf16, #tpu.memory_space<vmem>>, vector<32x32xbf16>
    %cst_101 = arith.constant dense<0.000000e+00> : vector<16x32xf32>
    %104 = tpu.matmul %102, %103, %cst_101 {dimension_numbers = #tpu.dot_dimension_numbers<[1], [0], [0], [1], [0, 0, 1, 1], [], []>} : vector<16x32xbf16>, vector<32x32xbf16>, vector<16x32xf32> -> vector<16x32xf32>
    %c0_102 = arith.constant 0 : index
    %c0_103 = arith.constant 0 : index
    %c0_104 = arith.constant 0 : index
    %105 = vector.load %arg9[%c0_102, %c0_103, %c0_104] : memref<3x1x32xf32, #tpu.memory_space<vmem>>, vector<1x1x32xf32>
    %106 = vector.shape_cast %105 : vector<1x1x32xf32> to vector<1x32xf32>
    %107 = vector.broadcast %106 : vector<1x32xf32> to vector<16x32xf32>
    %108 = arith.addf %104, %107 : vector<16x32xf32>
    %c0_105 = arith.constant 0 : index
    %c0_106 = arith.constant 0 : index
    %109 = vector.load %arg7[%c0_105, %c0_106] : memref<32x32xbf16, #tpu.memory_space<vmem>>, vector<32x32xbf16>
    %cst_107 = arith.constant dense<0.000000e+00> : vector<16x32xf32>
    %110 = tpu.matmul %102, %109, %cst_107 {dimension_numbers = #tpu.dot_dimension_numbers<[1], [0], [0], [1], [0, 0, 1, 1], [], []>} : vector<16x32xbf16>, vector<32x32xbf16>, vector<16x32xf32> -> vector<16x32xf32>
    %c1_108 = arith.constant 1 : index
    %c0_109 = arith.constant 0 : index
    %c0_110 = arith.constant 0 : index
    %111 = vector.load %arg9[%c1_108, %c0_109, %c0_110] : memref<3x1x32xf32, #tpu.memory_space<vmem>>, vector<1x1x32xf32>
    %112 = vector.shape_cast %111 : vector<1x1x32xf32> to vector<1x32xf32>
    %113 = vector.broadcast %112 : vector<1x32xf32> to vector<16x32xf32>
    %114 = arith.addf %110, %113 : vector<16x32xf32>
    %c0_111 = arith.constant 0 : index
    %c0_112 = arith.constant 0 : index
    %115 = vector.load %arg8[%c0_111, %c0_112] : memref<32x32xbf16, #tpu.memory_space<vmem>>, vector<32x32xbf16>
    %cst_113 = arith.constant dense<0.000000e+00> : vector<16x32xf32>
    %116 = tpu.matmul %102, %115, %cst_113 {dimension_numbers = #tpu.dot_dimension_numbers<[1], [0], [0], [1], [0, 0, 1, 1], [], []>} : vector<16x32xbf16>, vector<32x32xbf16>, vector<16x32xf32> -> vector<16x32xf32>
    %c2_114 = arith.constant 2 : index
    %c0_115 = arith.constant 0 : index
    %c0_116 = arith.constant 0 : index
    %117 = vector.load %arg9[%c2_114, %c0_115, %c0_116] : memref<3x1x32xf32, #tpu.memory_space<vmem>>, vector<1x1x32xf32>
    %118 = vector.shape_cast %117 : vector<1x1x32xf32> to vector<1x32xf32>
    %119 = vector.broadcast %118 : vector<1x32xf32> to vector<16x32xf32>
    %120 = arith.addf %116, %119 : vector<16x32xf32>
    %121 = vector.extract_strided_slice %108 {offsets = [0, 0], sizes = [16, 8], strides = [1, 1]} : vector<16x32xf32> to vector<16x8xf32>
    %122 = vector.shape_cast %121 : vector<16x8xf32> to vector<2x8x8xf32>
    %123 = arith.truncf %122 : vector<2x8x8xf32> to vector<2x8x8xbf16>
    %c0_117 = arith.constant 0 : index
    %c0_118 = arith.constant 0 : index
    %c0_119 = arith.constant 0 : index
    %c0_120 = arith.constant 0 : index
    %124 = vector.load %arg14[%c0_117, %c0_118, %c0_119, %c0_120] : memref<4x2x8x8xbf16, #tpu.memory_space<vmem>>, vector<1x2x8x8xbf16>
    %125 = vector.shape_cast %124 : vector<1x2x8x8xbf16> to vector<2x8x8xbf16>
    %126 = vector.shape_cast %123 : vector<2x8x8xbf16> to vector<1x2x8x8xbf16>
    tpu.vector_store %arg14[%c0_117, %c0_118, %c0_119, %c0_120], %126 {strides = array<i32>} : memref<4x2x8x8xbf16, #tpu.memory_space<vmem>>, vector<1x2x8x8xbf16>,
    %127 = vector.extract_strided_slice %114 {offsets = [0, 0], sizes = [16, 8], strides = [1, 1]} : vector<16x32xf32> to vector<16x8xf32>
    %128 = vector.shape_cast %127 : vector<16x8xf32> to vector<2x8x8xf32>
    %129 = arith.truncf %128 : vector<2x8x8xf32> to vector<2x8x8xbf16>
    %c0_121 = arith.constant 0 : index
    %c0_122 = arith.constant 0 : index
    %c0_123 = arith.constant 0 : index
    %c0_124 = arith.constant 0 : index
    %130 = vector.load %arg15[%c0_121, %c0_122, %c0_123, %c0_124] : memref<4x2x8x8xbf16, #tpu.memory_space<vmem>>, vector<1x2x8x8xbf16>
    %131 = vector.shape_cast %130 : vector<1x2x8x8xbf16> to vector<2x8x8xbf16>
    %132 = vector.shape_cast %129 : vector<2x8x8xbf16> to vector<1x2x8x8xbf16>
    tpu.vector_store %arg15[%c0_121, %c0_122, %c0_123, %c0_124], %132 {strides = array<i32>} : memref<4x2x8x8xbf16, #tpu.memory_space<vmem>>, vector<1x2x8x8xbf16>,
    %133 = vector.extract_strided_slice %120 {offsets = [0, 0], sizes = [16, 8], strides = [1, 1]} : vector<16x32xf32> to vector<16x8xf32>
    %134 = vector.shape_cast %133 : vector<16x8xf32> to vector<2x8x8xf32>
    %135 = arith.truncf %134 : vector<2x8x8xf32> to vector<2x8x8xbf16>
    %c0_125 = arith.constant 0 : index
    %c0_126 = arith.constant 0 : index
    %c0_127 = arith.constant 0 : index
    %c0_128 = arith.constant 0 : index
    %136 = vector.load %arg16[%c0_125, %c0_126, %c0_127, %c0_128] : memref<4x2x8x8xbf16, #tpu.memory_space<vmem>>, vector<1x2x8x8xbf16>
    %137 = vector.shape_cast %136 : vector<1x2x8x8xbf16> to vector<2x8x8xbf16>
    %138 = vector.shape_cast %135 : vector<2x8x8xbf16> to vector<1x2x8x8xbf16>
    tpu.vector_store %arg16[%c0_125, %c0_126, %c0_127, %c0_128], %138 {strides = array<i32>} : memref<4x2x8x8xbf16, #tpu.memory_space<vmem>>, vector<1x2x8x8xbf16>,
    %139 = vector.extract_strided_slice %108 {offsets = [0, 8], sizes = [16, 8], strides = [1, 1]} : vector<16x32xf32> to vector<16x8xf32>
    %140 = vector.shape_cast %139 : vector<16x8xf32> to vector<2x8x8xf32>
    %141 = arith.truncf %140 : vector<2x8x8xf32> to vector<2x8x8xbf16>
    %c1_129 = arith.constant 1 : index
    %c0_130 = arith.constant 0 : index
    %c0_131 = arith.constant 0 : index
    %c0_132 = arith.constant 0 : index
    %142 = vector.load %arg14[%c1_129, %c0_130, %c0_131, %c0_132] : memref<4x2x8x8xbf16, #tpu.memory_space<vmem>>, vector<1x2x8x8xbf16>
    %143 = vector.shape_cast %142 : vector<1x2x8x8xbf16> to vector<2x8x8xbf16>
    %144 = vector.shape_cast %141 : vector<2x8x8xbf16> to vector<1x2x8x8xbf16>
    tpu.vector_store %arg14[%c1_129, %c0_130, %c0_131, %c0_132], %144 {strides = array<i32>} : memref<4x2x8x8xbf16, #tpu.memory_space<vmem>>, vector<1x2x8x8xbf16>,
    %145 = vector.extract_strided_slice %114 {offsets = [0, 8], sizes = [16, 8], strides = [1, 1]} : vector<16x32xf32> to vector<16x8xf32>
    %146 = vector.shape_cast %145 : vector<16x8xf32> to vector<2x8x8xf32>
    %147 = arith.truncf %146 : vector<2x8x8xf32> to vector<2x8x8xbf16>
    %c1_133 = arith.constant 1 : index
    %c0_134 = arith.constant 0 : index
    %c0_135 = arith.constant 0 : index
    %c0_136 = arith.constant 0 : index
    %148 = vector.load %arg15[%c1_133, %c0_134, %c0_135, %c0_136] : memref<4x2x8x8xbf16, #tpu.memory_space<vmem>>, vector<1x2x8x8xbf16>
    %149 = vector.shape_cast %148 : vector<1x2x8x8xbf16> to vector<2x8x8xbf16>
    %150 = vector.shape_cast %147 : vector<2x8x8xbf16> to vector<1x2x8x8xbf16>
    tpu.vector_store %arg15[%c1_133, %c0_134, %c0_135, %c0_136], %150 {strides = array<i32>} : memref<4x2x8x8xbf16, #tpu.memory_space<vmem>>, vector<1x2x8x8xbf16>,
    %151 = vector.extract_strided_slice %120 {offsets = [0, 8], sizes = [16, 8], strides = [1, 1]} : vector<16x32xf32> to vector<16x8xf32>
    %152 = vector.shape_cast %151 : vector<16x8xf32> to vector<2x8x8xf32>
    %153 = arith.truncf %152 : vector<2x8x8xf32> to vector<2x8x8xbf16>
    %c1_137 = arith.constant 1 : index
    %c0_138 = arith.constant 0 : index
    %c0_139 = arith.constant 0 : index
    %c0_140 = arith.constant 0 : index
    %154 = vector.load %arg16[%c1_137, %c0_138, %c0_139, %c0_140] : memref<4x2x8x8xbf16, #tpu.memory_space<vmem>>, vector<1x2x8x8xbf16>
    %155 = vector.shape_cast %154 : vector<1x2x8x8xbf16> to vector<2x8x8xbf16>
    %156 = vector.shape_cast %153 : vector<2x8x8xbf16> to vector<1x2x8x8xbf16>
    tpu.vector_store %arg16[%c1_137, %c0_138, %c0_139, %c0_140], %156 {strides = array<i32>} : memref<4x2x8x8xbf16, #tpu.memory_space<vmem>>, vector<1x2x8x8xbf16>,
    %157 = vector.extract_strided_slice %108 {offsets = [0, 16], sizes = [16, 8], strides = [1, 1]} : vector<16x32xf32> to vector<16x8xf32>
    %158 = vector.shape_cast %157 : vector<16x8xf32> to vector<2x8x8xf32>
    %159 = arith.truncf %158 : vector<2x8x8xf32> to vector<2x8x8xbf16>
    %c2_141 = arith.constant 2 : index
    %c0_142 = arith.constant 0 : index
    %c0_143 = arith.constant 0 : index
    %c0_144 = arith.constant 0 : index
    %160 = vector.load %arg14[%c2_141, %c0_142, %c0_143, %c0_144] : memref<4x2x8x8xbf16, #tpu.memory_space<vmem>>, vector<1x2x8x8xbf16>
    %161 = vector.shape_cast %160 : vector<1x2x8x8xbf16> to vector<2x8x8xbf16>
    %162 = vector.shape_cast %159 : vector<2x8x8xbf16> to vector<1x2x8x8xbf16>
    tpu.vector_store %arg14[%c2_141, %c0_142, %c0_143, %c0_144], %162 {strides = array<i32>} : memref<4x2x8x8xbf16, #tpu.memory_space<vmem>>, vector<1x2x8x8xbf16>,
    %163 = vector.extract_strided_slice %114 {offsets = [0, 16], sizes = [16, 8], strides = [1, 1]} : vector<16x32xf32> to vector<16x8xf32>
    %164 = vector.shape_cast %163 : vector<16x8xf32> to vector<2x8x8xf32>
    %165 = arith.truncf %164 : vector<2x8x8xf32> to vector<2x8x8xbf16>
    %c2_145 = arith.constant 2 : index
    %c0_146 = arith.constant 0 : index
    %c0_147 = arith.constant 0 : index
    %c0_148 = arith.constant 0 : index
    %166 = vector.load %arg15[%c2_145, %c0_146, %c0_147, %c0_148] : memref<4x2x8x8xbf16, #tpu.memory_space<vmem>>, vector<1x2x8x8xbf16>
    %167 = vector.shape_cast %166 : vector<1x2x8x8xbf16> to vector<2x8x8xbf16>
    %168 = vector.shape_cast %165 : vector<2x8x8xbf16> to vector<1x2x8x8xbf16>
    tpu.vector_store %arg15[%c2_145, %c0_146, %c0_147, %c0_148], %168 {strides = array<i32>} : memref<4x2x8x8xbf16, #tpu.memory_space<vmem>>, vector<1x2x8x8xbf16>,
    %169 = vector.extract_strided_slice %120 {offsets = [0, 16], sizes = [16, 8], strides = [1, 1]} : vector<16x32xf32> to vector<16x8xf32>
    %170 = vector.shape_cast %169 : vector<16x8xf32> to vector<2x8x8xf32>
    %171 = arith.truncf %170 : vector<2x8x8xf32> to vector<2x8x8xbf16>
    %c2_149 = arith.constant 2 : index
    %c0_150 = arith.constant 0 : index
    %c0_151 = arith.constant 0 : index
    %c0_152 = arith.constant 0 : index
    %172 = vector.load %arg16[%c2_149, %c0_150, %c0_151, %c0_152] : memref<4x2x8x8xbf16, #tpu.memory_space<vmem>>, vector<1x2x8x8xbf16>
    %173 = vector.shape_cast %172 : vector<1x2x8x8xbf16> to vector<2x8x8xbf16>
    %174 = vector.shape_cast %171 : vector<2x8x8xbf16> to vector<1x2x8x8xbf16>
    tpu.vector_store %arg16[%c2_149, %c0_150, %c0_151, %c0_152], %174 {strides = array<i32>} : memref<4x2x8x8xbf16, #tpu.memory_space<vmem>>, vector<1x2x8x8xbf16>,
    %175 = vector.extract_strided_slice %108 {offsets = [0, 24], sizes = [16, 8], strides = [1, 1]} : vector<16x32xf32> to vector<16x8xf32>
    %176 = vector.shape_cast %175 : vector<16x8xf32> to vector<2x8x8xf32>
    %177 = arith.truncf %176 : vector<2x8x8xf32> to vector<2x8x8xbf16>
    %c3_153 = arith.constant 3 : index
    %c0_154 = arith.constant 0 : index
    %c0_155 = arith.constant 0 : index
    %c0_156 = arith.constant 0 : index
    %178 = vector.load %arg14[%c3_153, %c0_154, %c0_155, %c0_156] : memref<4x2x8x8xbf16, #tpu.memory_space<vmem>>, vector<1x2x8x8xbf16>
    %179 = vector.shape_cast %178 : vector<1x2x8x8xbf16> to vector<2x8x8xbf16>
    %180 = vector.shape_cast %177 : vector<2x8x8xbf16> to vector<1x2x8x8xbf16>
    tpu.vector_store %arg14[%c3_153, %c0_154, %c0_155, %c0_156], %180 {strides = array<i32>} : memref<4x2x8x8xbf16, #tpu.memory_space<vmem>>, vector<1x2x8x8xbf16>,
    %181 = vector.extract_strided_slice %114 {offsets = [0, 24], sizes = [16, 8], strides = [1, 1]} : vector<16x32xf32> to vector<16x8xf32>
    %182 = vector.shape_cast %181 : vector<16x8xf32> to vector<2x8x8xf32>
    %183 = arith.truncf %182 : vector<2x8x8xf32> to vector<2x8x8xbf16>
    %c3_157 = arith.constant 3 : index
    %c0_158 = arith.constant 0 : index
    %c0_159 = arith.constant 0 : index
    %c0_160 = arith.constant 0 : index
    %184 = vector.load %arg15[%c3_157, %c0_158, %c0_159, %c0_160] : memref<4x2x8x8xbf16, #tpu.memory_space<vmem>>, vector<1x2x8x8xbf16>
    %185 = vector.shape_cast %184 : vector<1x2x8x8xbf16> to vector<2x8x8xbf16>
    %186 = vector.shape_cast %183 : vector<2x8x8xbf16> to vector<1x2x8x8xbf16>
    tpu.vector_store %arg15[%c3_157, %c0_158, %c0_159, %c0_160], %186 {strides = array<i32>} : memref<4x2x8x8xbf16, #tpu.memory_space<vmem>>, vector<1x2x8x8xbf16>,
    %187 = vector.extract_strided_slice %120 {offsets = [0, 24], sizes = [16, 8], strides = [1, 1]} : vector<16x32xf32> to vector<16x8xf32>
    %188 = vector.shape_cast %187 : vector<16x8xf32> to vector<2x8x8xf32>
    %189 = arith.truncf %188 : vector<2x8x8xf32> to vector<2x8x8xbf16>
    %c3_161 = arith.constant 3 : index
    %c0_162 = arith.constant 0 : index
    %c0_163 = arith.constant 0 : index
    %c0_164 = arith.constant 0 : index
    %190 = vector.load %arg16[%c3_161, %c0_162, %c0_163, %c0_164] : memref<4x2x8x8xbf16, #tpu.memory_space<vmem>>, vector<1x2x8x8xbf16>
    %191 = vector.shape_cast %190 : vector<1x2x8x8xbf16> to vector<2x8x8xbf16>
    %192 = vector.shape_cast %189 : vector<2x8x8xbf16> to vector<1x2x8x8xbf16>
    tpu.vector_store %arg16[%c3_161, %c0_162, %c0_163, %c0_164], %192 {strides = array<i32>} : memref<4x2x8x8xbf16, #tpu.memory_space<vmem>>, vector<1x2x8x8xbf16>,
    %c0_165 = arith.constant 0 : index
    %c0_166 = arith.constant 0 : index
    %c0_167 = arith.constant 0 : index
    %c0_168 = arith.constant 0 : index
    %193 = vector.load %arg14[%c0_165, %c0_166, %c0_167, %c0_168] : memref<4x2x8x8xbf16, #tpu.memory_space<vmem>>, vector<4x2x8x8xbf16>
    %194 = vector.shape_cast %193 : vector<4x2x8x8xbf16> to vector<8x8x8xbf16>
    %c0_169 = arith.constant 0 : index
    %c0_170 = arith.constant 0 : index
    %c0_171 = arith.constant 0 : index
    %c0_172 = arith.constant 0 : index
    %195 = vector.load %arg15[%c0_169, %c0_170, %c0_171, %c0_172] : memref<4x2x8x8xbf16, #tpu.memory_space<vmem>>, vector<4x2x8x8xbf16>
    %196 = vector.shape_cast %195 : vector<4x2x8x8xbf16> to vector<8x8x8xbf16>
    %c0_173 = arith.constant 0 : index
    %c0_174 = arith.constant 0 : index
    %c0_175 = arith.constant 0 : index
    %c0_176 = arith.constant 0 : index
    %197 = vector.load %arg16[%c0_173, %c0_174, %c0_175, %c0_176] : memref<4x2x8x8xbf16, #tpu.memory_space<vmem>>, vector<4x2x8x8xbf16>
    %198 = vector.shape_cast %197 : vector<4x2x8x8xbf16> to vector<8x8x8xbf16>
    "tpu.trace_start"() <{level = 10 : i32, message = "bqd,bkd->bqk"}> : () -> ()
    %cst_177 = arith.constant dense<0.000000e+00> : vector<8x8x8xf32>
    %199 = tpu.matmul %194, %196, %cst_177 {dimension_numbers = #tpu.dot_dimension_numbers<[2], [2], [1], [1], [0, 0, 0, 1, 1, 1], [0], [0]>} : vector<8x8x8xbf16>, vector<8x8x8xbf16>, vector<8x8x8xf32> -> vector<8x8x8xf32>
    "tpu.trace_stop"() : () -> ()
    %cst_178 = arith.constant 0.353553385 : f32
    %200 = vector.broadcast %cst_178 : f32 to vector<8x8x8xf32>
    %201 = arith.mulf %199, %200 : vector<8x8x8xf32>
    %cst_179 = arith.constant dense<0xFF800000> : vector<8x8xf32>
    %202 = vector.multi_reduction <maximumf>, %201, %cst_179 [2] : vector<8x8x8xf32> to vector<8x8xf32>
    %203 = vector.shape_cast %202 : vector<8x8xf32> to vector<8x8x1xf32>
    %204 = vector.broadcast %203 : vector<8x8x1xf32> to vector<8x8x8xf32>
    %205 = arith.subf %201, %204 : vector<8x8x8xf32>
    %206 = math.exp %205 : vector<8x8x8xf32>
    %cst_180 = arith.constant dense<0.000000e+00> : vector<8x8xf32>
    %207 = vector.multi_reduction <add>, %206, %cst_180 [2] : vector<8x8x8xf32> to vector<8x8xf32>
    %208 = vector.shape_cast %207 : vector<8x8xf32> to vector<8x8x1xf32>
    %209 = tpu.reciprocal %208 : vector<8x8x1xf32> -> vector<8x8x1xf32>
    %210 = vector.broadcast %209 : vector<8x8x1xf32> to vector<8x8x8xf32>
    %211 = arith.mulf %206, %210 : vector<8x8x8xf32>
    %212 = arith.truncf %211 : vector<8x8x8xf32> to vector<8x8x8xbf16>
    "tpu.trace_start"() <{level = 10 : i32, message = "bqk,bkd->bqd"}> : () -> ()
    %cst_181 = arith.constant dense<0.000000e+00> : vector<8x8x8xf32>
    %213 = tpu.matmul %212, %198, %cst_181 {dimension_numbers = #tpu.dot_dimension_numbers<[2], [1], [1], [2], [0, 0, 0, 1, 1, 2], [0], [0]>} : vector<8x8x8xbf16>, vector<8x8x8xbf16>, vector<8x8x8xf32> -> vector<8x8x8xf32>
    "tpu.trace_stop"() : () -> ()
    %214 = vector.shape_cast %213 : vector<8x8x8xf32> to vector<4x16x8xf32>
    %215 = vector.extract_strided_slice %214 {offsets = [0, 0, 0], sizes = [1, 16, 8], strides = [1, 1, 1]} : vector<4x16x8xf32> to vector<1x16x8xf32>
    %216 = vector.shape_cast %215 : vector<1x16x8xf32> to vector<16x8xf32>
    %217 = arith.truncf %216 : vector<16x8xf32> to vector<16x8xbf16>
    %c0_182 = arith.constant 0 : index
    %c0_183 = arith.constant 0 : index
    %c0_184 = arith.constant 0 : index
    %218 = vector.load %arg10[%c0_182, %c0_183, %c0_184] : memref<4x8x32xbf16, #tpu.memory_space<vmem>>, vector<1x8x32xbf16>
    %219 = vector.shape_cast %218 : vector<1x8x32xbf16> to vector<8x32xbf16>
    %cst_185 = arith.constant dense<0.000000e+00> : vector<16x32xf32>
    %220 = tpu.matmul %217, %219, %cst_185 {dimension_numbers = #tpu.dot_dimension_numbers<[1], [0], [0], [1], [0, 0, 1, 1], [], []>} : vector<16x8xbf16>, vector<8x32xbf16>, vector<16x32xf32> -> vector<16x32xf32>
    %221 = vector.extract_strided_slice %214 {offsets = [1, 0, 0], sizes = [1, 16, 8], strides = [1, 1, 1]} : vector<4x16x8xf32> to vector<1x16x8xf32>
    %222 = vector.shape_cast %221 : vector<1x16x8xf32> to vector<16x8xf32>
    %223 = arith.truncf %222 : vector<16x8xf32> to vector<16x8xbf16>
    %c1_186 = arith.constant 1 : index
    %c0_187 = arith.constant 0 : index
    %c0_188 = arith.constant 0 : index
    %224 = vector.load %arg10[%c1_186, %c0_187, %c0_188] : memref<4x8x32xbf16, #tpu.memory_space<vmem>>, vector<1x8x32xbf16>
    %225 = vector.shape_cast %224 : vector<1x8x32xbf16> to vector<8x32xbf16>
    %cst_189 = arith.constant dense<0.000000e+00> : vector<16x32xf32>
    %226 = tpu.matmul %223, %225, %cst_189 {dimension_numbers = #tpu.dot_dimension_numbers<[1], [0], [0], [1], [0, 0, 1, 1], [], []>} : vector<16x8xbf16>, vector<8x32xbf16>, vector<16x32xf32> -> vector<16x32xf32>
    %227 = arith.addf %220, %226 : vector<16x32xf32>
    %228 = vector.extract_strided_slice %214 {offsets = [2, 0, 0], sizes = [1, 16, 8], strides = [1, 1, 1]} : vector<4x16x8xf32> to vector<1x16x8xf32>
    %229 = vector.shape_cast %228 : vector<1x16x8xf32> to vector<16x8xf32>
    %230 = arith.truncf %229 : vector<16x8xf32> to vector<16x8xbf16>
    %c2_190 = arith.constant 2 : index
    %c0_191 = arith.constant 0 : index
    %c0_192 = arith.constant 0 : index
    %231 = vector.load %arg10[%c2_190, %c0_191, %c0_192] : memref<4x8x32xbf16, #tpu.memory_space<vmem>>, vector<1x8x32xbf16>
    %232 = vector.shape_cast %231 : vector<1x8x32xbf16> to vector<8x32xbf16>
    %cst_193 = arith.constant dense<0.000000e+00> : vector<16x32xf32>
    %233 = tpu.matmul %230, %232, %cst_193 {dimension_numbers = #tpu.dot_dimension_numbers<[1], [0], [0], [1], [0, 0, 1, 1], [], []>} : vector<16x8xbf16>, vector<8x32xbf16>, vector<16x32xf32> -> vector<16x32xf32>
    %234 = arith.addf %227, %233 : vector<16x32xf32>
    %235 = vector.extract_strided_slice %214 {offsets = [3, 0, 0], sizes = [1, 16, 8], strides = [1, 1, 1]} : vector<4x16x8xf32> to vector<1x16x8xf32>
    %236 = vector.shape_cast %235 : vector<1x16x8xf32> to vector<16x8xf32>
    %237 = arith.truncf %236 : vector<16x8xf32> to vector<16x8xbf16>
    %c3_194 = arith.constant 3 : index
    %c0_195 = arith.constant 0 : index
    %c0_196 = arith.constant 0 : index
    %238 = vector.load %arg10[%c3_194, %c0_195, %c0_196] : memref<4x8x32xbf16, #tpu.memory_space<vmem>>, vector<1x8x32xbf16>
    %239 = vector.shape_cast %238 : vector<1x8x32xbf16> to vector<8x32xbf16>
    %cst_197 = arith.constant dense<0.000000e+00> : vector<16x32xf32>
    %240 = tpu.matmul %237, %239, %cst_197 {dimension_numbers = #tpu.dot_dimension_numbers<[1], [0], [0], [1], [0, 0, 1, 1], [], []>} : vector<16x8xbf16>, vector<8x32xbf16>, vector<16x32xf32> -> vector<16x32xf32>
    %241 = arith.addf %234, %240 : vector<16x32xf32>
    %c0_198 = arith.constant 0 : index
    %c0_199 = arith.constant 0 : index
    %242 = vector.load %arg11[%c0_198, %c0_199] : memref<1x32xf32, #tpu.memory_space<vmem>>, vector<1x32xf32>
    %243 = vector.broadcast %242 : vector<1x32xf32> to vector<16x32xf32>
    %244 = arith.addf %241, %243 : vector<16x32xf32>
    %245 = vector.shape_cast %244 : vector<16x32xf32> to vector<2x8x32xf32>
    %c0_200 = arith.constant 0 : index
    %c0_201 = arith.constant 0 : index
    %c0_202 = arith.constant 0 : index
    %246 = vector.load %arg12[%c0_200, %c0_201, %c0_202] : memref<2x8x32xf32, #tpu.memory_space<vmem>>, vector<2x8x32xf32>
    tpu.vector_store %arg12[%c0_200, %c0_201, %c0_202], %245 {strides = array<i32>} : memref<2x8x32xf32, #tpu.memory_space<vmem>>, vector<2x8x32xf32>,
    return
  }
  func.func @transform_0(%arg0: i32) -> (i32, i32, i32) {
    %c0_i32 = arith.constant 0 : i32
    %c0_i32_0 = arith.constant 0 : i32
    %c0_i32_1 = arith.constant 0 : i32
    return %arg0, %c0_i32, %c0_i32_0 : i32, i32, i32
  }
  func.func @transform_1(%arg0: i32) -> (i32, i32, i32) {
    %c0_i32 = arith.constant 0 : i32
    %c0_i32_0 = arith.constant 0 : i32
    %c0_i32_1 = arith.constant 0 : i32
    %c0_i32_2 = arith.constant 0 : i32
    return %c0_i32, %c0_i32_0, %c0_i32_1 : i32, i32, i32
  }
  func.func @transform_2(%arg0: i32) -> (i32, i32, i32) {
    %c0_i32 = arith.constant 0 : i32
    %c0_i32_0 = arith.constant 0 : i32
    %c0_i32_1 = arith.constant 0 : i32
    %c0_i32_2 = arith.constant 0 : i32
    return %c0_i32, %c0_i32_0, %c0_i32_1 : i32, i32, i32
  }
  func.func @transform_3(%arg0: i32) -> (i32, i32, i32) {
    %c0_i32 = arith.constant 0 : i32
    %c0_i32_0 = arith.constant 0 : i32
    %c0_i32_1 = arith.constant 0 : i32
    %c0_i32_2 = arith.constant 0 : i32
    return %c0_i32, %c0_i32_0, %c0_i32_1 : i32, i32, i32
  }
  func.func @transform_4(%arg0: i32) -> (i32, i32, i32) {
    %c0_i32 = arith.constant 0 : i32
    %c0_i32_0 = arith.constant 0 : i32
    %c0_i32_1 = arith.constant 0 : i32
    %c0_i32_2 = arith.constant 0 : i32
    return %c0_i32, %c0_i32_0, %c0_i32_1 : i32, i32, i32
  }
  func.func @transform_5(%arg0: i32) -> (i32, i32) {
    %c0_i32 = arith.constant 0 : i32
    %c0_i32_0 = arith.constant 0 : i32
    %c0_i32_1 = arith.constant 0 : i32
    return %c0_i32, %c0_i32_0 : i32, i32
  }
  func.func @transform_6(%arg0: i32) -> (i32, i32) {
    %c0_i32 = arith.constant 0 : i32
    %c0_i32_0 = arith.constant 0 : i32
    %c0_i32_1 = arith.constant 0 : i32
    return %c0_i32, %c0_i32_0 : i32, i32
  }
  func.func @transform_7(%arg0: i32) -> (i32, i32) {
    %c0_i32 = arith.constant 0 : i32
    %c0_i32_0 = arith.constant 0 : i32
    %c0_i32_1 = arith.constant 0 : i32
    return %c0_i32, %c0_i32_0 : i32, i32
  }
  func.func @transform_8(%arg0: i32) -> (i32, i32, i32) {
    %c0_i32 = arith.constant 0 : i32
    %c0_i32_0 = arith.constant 0 : i32
    %c0_i32_1 = arith.constant 0 : i32
    %c0_i32_2 = arith.constant 0 : i32
    return %c0_i32, %c0_i32_0, %c0_i32_1 : i32, i32, i32
  }
  func.func @transform_9(%arg0: i32) -> (i32, i32, i32) {
    %c0_i32 = arith.constant 0 : i32
    %c0_i32_0 = arith.constant 0 : i32
    %c0_i32_1 = arith.constant 0 : i32
    %c0_i32_2 = arith.constant 0 : i32
    return %c0_i32, %c0_i32_0, %c0_i32_1 : i32, i32, i32
  }
  func.func @transform_10(%arg0: i32) -> (i32, i32) {
    %c0_i32 = arith.constant 0 : i32
    %c0_i32_0 = arith.constant 0 : i32
    %c0_i32_1 = arith.constant 0 : i32
    return %c0_i32, %c0_i32_0 : i32, i32
  }
  func.func @transform_11(%arg0: i32) -> (i32, i32, i32) {
    %c0_i32 = arith.constant 0 : i32
    %c0_i32_0 = arith.constant 0 : i32
    %c0_i32_1 = arith.constant 0 : i32
    return %arg0, %c0_i32, %c0_i32_0 : i32, i32, i32
  }
}

</mosaic_0001>

<bundles_post_ra>
// kernel: tpu_custom_call.1
= control target key start
LH: loop header
LB: loop body
LE: loop exit
PB: predicated region body
PF: predicated region fallthrough
CT: control target
= control target key end

     0   :  { %16 = vsyncpa [#allocation7], 0  ;;  %s4188_s0 = inlined_call_operand.hbm [shape: bf16[2,8,32], index: 0, kind: input, shape index: {}]   ;;  %s4189_s1 = inlined_call_operand.hbm [shape: bf16[3,32,32], index: 1, kind: input, shape index: {}]   ;;  %s4190_s2 = inlined_call_operand.hbm [shape: bf16[5,32,32], index: 2, kind: input, shape index: {}]   ;;  %s4191_s3 = inlined_call_operand.hbm [shape: bf16[7,32,32], index: 3, kind: input, shape index: {}]   ;;  %s4192_s4 = inlined_call_operand.hbm [shape: f32[3,1,32], index: 4, kind: input, shape index: {}]   ;;  %s4193_s5 = inlined_call_operand.vmem [shape: bf16[32,32], index: 5, kind: input, shape index: {}]   ;;  %s4194_s6 = inlined_call_operand.hbm [shape: bf16[32,32], index: 6, kind: input, shape index: {}]   ;;  %s4195_s7 = inlined_call_operand.hbm [shape: bf16[32,32], index: 7, kind: input, shape index: {}]   ;;  %s4196_s8 = inlined_call_operand.hbm [shape: f32[3,1,32], index: 8, kind: input, shape index: {}]   ;;  %s4197_s9 = inlined_call_operand.vmem [shape: bf16[4,8,32], index: 9, kind: input, shape index: {}]   ;;  %s4198_s10 = inlined_call_operand.vmem [shape: f32[1,32], index: 10, kind: input, shape index: {}]   ;;  %s4199_s11 = inlined_call_operand.hbm [shape: f32[2,8,32], index: 11, kind: output, shape index: {}]  }
   0x1   :  { %17 = vsyncpa [#allocation10], 0 }
   0x2   :  { %18 = vsyncpa [#allocation13], 0 }
   0x3   :  { %19 = vsyncpa [#allocation16], 0 }
   0x4   :  { %20 = vsyncpa [#allocation19], 0 }
   0x5   :  { %21 = vsyncpa [#allocation8], 0  ;;  %s3526_s17 = smov [#allocation9]   ;;  %s3527_s19 = smov [#allocation12]  }
   0x6   :  { %s39_s18 = sshll.u32 %s3526_s17, 4  ;;  %s63_s20 = sshll.u32 %s3527_s19, 4  ;;  %s40_s18 = int_to_ptr.vmem [resolvable:$true] %s39_s18  ;;  %s3606_s20 = int_to_ptr.vmem [resolvable:$true] %s63_s20 }
   0x7   :  { %s3316_s23 = scalar_lea.hbm %s4189_s1, 768 }
   0x8   :  { %p3317_p0 = scmp.ne.s32.totalorder %s4189_s1, %s3316_s23  ;;  %p3320_p1 = scmp.lt.u32.totalorder %s3316_s23, %s4189_s1 }
   0xa   :  { %p3322_p2 = pnand %p3320_p1, %p3317_p0 }
   0xc   :  { %3325 = shalt.err (!%p3322_p2)
}
   0xd   :  { %s3326_s28 = scalar_lea.vmem %s40_s18, 768  ;;  %p3331_p4 = scmp.lt.s32.totalorder %s40_s18, %s40_s18 }
   0xe   :  { %p3327_p3 = scmp.ne.s32.totalorder %s40_s18, %s3326_s28  ;;  %p3332_p5 = scmp.lt.s32.totalorder %s3326_s28, %s3326_s28 }
  0x10   :  { %p3333_p6 = por %p3332_p5, %p3331_p4 }
  0x12   :  { %p3334_p7 = pnand %p3333_p6, %p3327_p3 }
  0x14   :  { %3337 = shalt.err (!%p3334_p7)
}
  0x15   :  { %s3528_s29 = smov 64   ;;  %s3529_s30 = smov 4  }
  0x16   :  { %45 = dma.hbm_to_vmem [thread:$0]  %s4189_s1, 768, %s40_s18, [#allocation10], %s3528_s29, %s3528_s29, %s3529_s30  }
  0x17   :  { %s3338_s16 = scalar_lea.hbm %s4191_s3, 1792 }
  0x18   :  { %p3339_p8 = scmp.ne.s32.totalorder %s4191_s3, %s3338_s16  ;;  %p3342_p9 = scmp.lt.u32.totalorder %s3338_s16, %s4191_s3 }
  0x1a   :  { %p3344_p10 = pnand %p3342_p9, %p3339_p8 }
  0x1c   :  { %3347 = shalt.err (!%p3344_p10)
}
  0x1d   :  { %s3348_s23 = scalar_lea.vmem %s3606_s20, 1792  ;;  %p3353_p12 = scmp.lt.s32.totalorder %s3606_s20, %s3606_s20 }
  0x1e   :  { %p3349_p11 = scmp.ne.s32.totalorder %s3606_s20, %s3348_s23  ;;  %p3354_p13 = scmp.lt.s32.totalorder %s3348_s23, %s3348_s23 }
  0x20   :  { %p3355_p0 = por %p3354_p13, %p3353_p12 }
  0x22   :  { %p3356_p1 = pnand %p3355_p0, %p3349_p11 }
  0x24   :  { %3359 = shalt.err (!%p3356_p1)
}
  0x25   :  { %69 = dma.hbm_to_vmem [thread:$0]  %s4191_s3, 1792, %s3606_s20, [#allocation13], %s3528_s29, %s3528_s29, %s3529_s30  }
  0x26   :  { %s3530_s24 = smov [#allocation15]   ;;  %s3531_s26 = smov [#allocation6]  }
  0x27   :  { %s89_s25 = sshll.u32 %s3530_s24, 4  ;;  %s27_s27 = sshll.u32 %s3531_s26, 4  ;;  %s90_s25 = int_to_ptr.vmem [resolvable:$true] %s89_s25  ;;  %s3643_s27 = int_to_ptr.vmem [resolvable:$true] %s27_s27 }
  0x28   :  { %s3360_s13 = scalar_lea.hbm %s4194_s6, 256 }
  0x29   :  { %p3361_p2 = scmp.ne.s32.totalorder %s4194_s6, %s3360_s13  ;;  %p3364_p3 = scmp.lt.u32.totalorder %s3360_s13, %s4194_s6 }
  0x2b   :  { %p3366_p4 = pnand %p3364_p3, %p3361_p2 }
  0x2d   :  { %3369 = shalt.err (!%p3366_p4)
}
  0x2e   :  { %s3370_s3 = scalar_lea.vmem %s90_s25, 256  ;;  %p3375_p6 = scmp.lt.s32.totalorder %s90_s25, %s90_s25 }
  0x2f   :  { %p3371_p5 = scmp.ne.s32.totalorder %s90_s25, %s3370_s3  ;;  %p3376_p7 = scmp.lt.s32.totalorder %s3370_s3, %s3370_s3 }
  0x31   :  { %p3377_p8 = por %p3376_p7, %p3375_p6 }
  0x33   :  { %p3378_p9 = pnand %p3377_p8, %p3371_p5 }
  0x35   :  { %3381 = shalt.err (!%p3378_p9)
}
  0x36   :  { %95 = dma.hbm_to_vmem [thread:$0]  %s4194_s6, 256, %s90_s25, [#allocation16], %s3528_s29, %s3528_s29, %s3529_s30  }
  0x37   :  { %s3382_s23 = scalar_lea.hbm %s4188_s0, 128 }
  0x38   :  { %p3383_p10 = scmp.ne.s32.totalorder %s4188_s0, %s3382_s23  ;;  %p3386_p11 = scmp.lt.u32.totalorder %s3382_s23, %s4188_s0 }
  0x3a   :  { %p3388_p12 = pnand %p3386_p11, %p3383_p10 }
  0x3c   :  { %3391 = shalt.err (!%p3388_p12)
}
  0x3d   :  { %s3392_s28 = scalar_lea.vmem %s3643_s27, 128  ;;  %p3397_p0 = scmp.lt.s32.totalorder %s3643_s27, %s3643_s27 }
  0x3e   :  { %p3393_p13 = scmp.ne.s32.totalorder %s3643_s27, %s3392_s28  ;;  %p3398_p1 = scmp.lt.s32.totalorder %s3392_s28, %s3392_s28 }
  0x40   :  { %p3399_p2 = por %p3398_p1, %p3397_p0 }
  0x42   :  { %p3400_p3 = pnand %p3399_p2, %p3393_p13 }
  0x44   :  { %3403 = shalt.err (!%p3400_p3)
}
  0x45   :  { %33 = dma.hbm_to_vmem [thread:$0]  %s4188_s0, 128, %s3643_s27, [#allocation7], %s3528_s29, %s3528_s29, %s3529_s30  }
  0x46   :  { %s3532_s12 = smov [#allocation11]   ;;  %s3533_s14 = smov [#allocation14]  }
  0x47   :  { %s51_s13 = sshll.u32 %s3532_s12, 4  ;;  %s75_s15 = sshll.u32 %s3533_s14, 4  ;;  %s52_s13 = int_to_ptr.vmem [resolvable:$true] %s51_s13  ;;  %s3680_s15 = int_to_ptr.vmem [resolvable:$true] %s75_s15 }
  0x48   :  { %s3404_s3 = scalar_lea.hbm %s4190_s2, 1280 }
  0x49   :  { %p3405_p4 = scmp.ne.s32.totalorder %s4190_s2, %s3404_s3  ;;  %p3408_p5 = scmp.lt.u32.totalorder %s3404_s3, %s4190_s2 }
  0x4b   :  { %p3410_p6 = pnand %p3408_p5, %p3405_p4 }
  0x4d   :  { %3413 = shalt.err (!%p3410_p6)
}
  0x4e   :  { %s3414_s0 = scalar_lea.vmem %s52_s13, 1280  ;;  %p3419_p8 = scmp.lt.s32.totalorder %s52_s13, %s52_s13 }
  0x4f   :  { %p3415_p7 = scmp.ne.s32.totalorder %s52_s13, %s3414_s0  ;;  %p3420_p9 = scmp.lt.s32.totalorder %s3414_s0, %s3414_s0 }
  0x51   :  { %p3421_p10 = por %p3420_p9, %p3419_p8 }
  0x53   :  { %p3422_p11 = pnand %p3421_p10, %p3415_p7 }
  0x55   :  { %3425 = shalt.err (!%p3422_p11)
}
  0x56   :  { %57 = dma.hbm_to_vmem [thread:$0]  %s4190_s2, 1280, %s52_s13, [#allocation10], %s3528_s29, %s3528_s29, %s3529_s30  }
  0x57   :  { %s3426_s24 = scalar_lea.hbm %s4192_s4, 48 }
  0x58   :  { %p3427_p12 = scmp.ne.s32.totalorder %s4192_s4, %s3426_s24  ;;  %p3430_p13 = scmp.lt.u32.totalorder %s3426_s24, %s4192_s4 }
  0x5a   :  { %p3432_p0 = pnand %p3430_p13, %p3427_p12 }
  0x5c   :  { %3435 = shalt.err (!%p3432_p0)
}
  0x5d   :  { %s3436_s12 = scalar_lea.vmem %s3680_s15, 48  ;;  %s3440_s2 = scalar_lea.vmem %s3680_s15, 64 }
  0x5e   :  { %p3437_p1 = scmp.ne.s32.totalorder %s3680_s15, %s3436_s12  ;;  %p3441_p2 = scmp.lt.s32.totalorder %s3680_s15, %s3680_s15 }
  0x5f   :  { %p3442_p3 = scmp.lt.s32.totalorder %s3440_s2, %s3436_s12 }
  0x61   :  { %p3443_p4 = por %p3442_p3, %p3441_p2 }
  0x63   :  { %p3444_p5 = pnand %p3443_p4, %p3437_p1 }
  0x65   :  { %3447 = shalt.err (!%p3444_p5)
}
  0x66   :  { %s3534_s13 = smov 16   ;;  %s3535_s14 = smov 1  }
  0x67   :  { %81 = dma.hbm_to_vmem [thread:$0]  %s4192_s4, 48, %s3680_s15, [#allocation13], %s3534_s13, %s3534_s13, %s3535_s14  }
  0x68   :  { %s3536_s3 = smov [#allocation17]   ;;  %s3537_s19 = smov [#allocation18]  }
  0x69   :  { %s101_s20 = sshll.u32 %s3536_s3, 4  ;;  %s113_s21 = sshll.u32 %s3537_s19, 4  ;;  %s102_s20 = int_to_ptr.vmem [resolvable:$true] %s101_s20  ;;  %s3718_s21 = int_to_ptr.vmem [resolvable:$true] %s113_s21 }
  0x6a   :  { %s3448_s27 = scalar_lea.hbm %s4195_s7, 256 }
  0x6b   :  { %p3449_p6 = scmp.ne.s32.totalorder %s4195_s7, %s3448_s27  ;;  %p3452_p7 = scmp.lt.u32.totalorder %s3448_s27, %s4195_s7 }
  0x6d   :  { %p3454_p8 = pnand %p3452_p7, %p3449_p6 }
  0x6f   :  { %3457 = shalt.err (!%p3454_p8)
}
  0x70   :  { %s3458_s4 = scalar_lea.vmem %s102_s20, 256  ;;  %p3463_p10 = scmp.lt.s32.totalorder %s102_s20, %s102_s20 }
  0x71   :  { %p3459_p9 = scmp.ne.s32.totalorder %s102_s20, %s3458_s4  ;;  %p3464_p11 = scmp.lt.s32.totalorder %s3458_s4, %s3458_s4 }
  0x73   :  { %p3465_p12 = por %p3464_p11, %p3463_p10 }
  0x75   :  { %p3466_p13 = pnand %p3465_p12, %p3459_p9 }
  0x77   :  { %3469 = shalt.err (!%p3466_p13)
}
  0x78   :  { %107 = dma.hbm_to_vmem [thread:$0]  %s4195_s7, 256, %s102_s20, [#allocation16], %s3528_s29, %s3528_s29, %s3529_s30  }
  0x79   :  { %s3470_s25 = scalar_lea.hbm %s4196_s8, 48 }
  0x7a   :  { %p3471_p0 = scmp.ne.s32.totalorder %s4196_s8, %s3470_s25  ;;  %p3474_p1 = scmp.lt.u32.totalorder %s3470_s25, %s4196_s8 }
  0x7c   :  { %p3476_p2 = pnand %p3474_p1, %p3471_p0 }
  0x7e   :  { %3479 = shalt.err (!%p3476_p2)
}
  0x7f   :  { %s3480_s3 = scalar_lea.vmem %s3718_s21, 48  ;;  %s3484_s7 = scalar_lea.vmem %s3718_s21, 64 }
  0x80   :  { %p3481_p3 = scmp.ne.s32.totalorder %s3718_s21, %s3480_s3  ;;  %p3485_p4 = scmp.lt.s32.totalorder %s3718_s21, %s3718_s21 }
  0x81   :  { %p3486_p5 = scmp.lt.s32.totalorder %s3484_s7, %s3480_s3 }
  0x83   :  { %p3487_p6 = por %p3486_p5, %p3485_p4 }
  0x85   :  { %p3488_p7 = pnand %p3487_p6, %p3481_p3 }
  0x87   :  { %3491 = shalt.err (!%p3488_p7)
}
  0x88   :  { %119 = dma.hbm_to_vmem [thread:$0]  %s4196_s8, 48, %s3718_s21, [#allocation19], %s3534_s13, %s3534_s13, %s3535_s14  }
  0x89   :  { %3514 = dma.done.wait [#allocation7], 128  }
  0x8a   :  { %3515 = vsyncadd [#allocation7], 4294967168 }
  0x8b   :  { %3516 = dma.done.wait [#allocation10], 2048  }
  0x8c   :  { %3517 = vsyncadd [#allocation10], 4294965248 }
  0x8d   :  { %3518 = dma.done.wait [#allocation13], 1840  }
  0x8e   :  { %3519 = vsyncadd [#allocation13], 4294965456 }
  0x8f   :  { %3520 = dma.done.wait [#allocation16], 512  }
  0x90   :  { %3521 = vsyncadd [#allocation16], 4294966784 }
  0x91   :  { %3522 = dma.done.wait [#allocation19], 48  }
  0x92   :  { %3523 = vsyncadd [#allocation19], 4294967248  ;;  %v3538_v0 = vmov 0.0   ;;  %vm3539_vm0 = vmmov 0   ;;  %vm149_vm1 = vcmask 254976   ;;  %vm158_vm3 = vcmask 256001  }
  0x93   :  { %2971 = vmatprep.subr.bf16.mxu1 %v3538_v0  ;;  %2975 = vmatprep.mubr.msk.bf16.mxu1 %vm3539_vm0, %v3538_v0  ;;  %vm150_vm2 = vsmask.f32 1280  ;;  %vm159_vm4 = vsmask.f32 7942  ;;  %v3247_v3 = vld [vmem:[#allocation12] sm:$0xff]   ;;  %v3248_v4 = vld [vmem:[#allocation12 + $0x8] sm:$0xff]  }
  0x94   :  { %2963 = vmatprep.subr.bf16.mxu0 %v3538_v0  ;;  %2967 = vmatprep.mubr.msk.bf16.mxu0 %vm3539_vm0, %v3538_v0  ;;  %vm3763_vm5 = vmand %vm149_vm1, %vm150_vm2  ;;  %v152_v5 = vld [vmem:[#allocation2] sm:$0x3]  ;;  %v155_v6 = vld [vmem:[#allocation2 + $0x8] sm:$0x3]  ;;  %vm191_vm7 = vcmask 257025   ;;  %vm268_vm9 = vcmask 261120  }
  0x95   :  { %vm3768_vm6 = vmand %vm158_vm3, %vm159_vm4  ;;  %2972 = vmatpush3.bf16.msra.mxu1 %v3247_v3  ;;  %v161_v7 = vld [vmem:[#allocation2 + $0x4] sm:$0x6]  ;;  %v153_v8 = vsel %vm3763_vm5, 0, %v152_v5  ;;  %v156_v9 = vsel %vm3763_vm5, 0, %v155_v6  ;;  %v164_v11 = vld [vmem:[#allocation2 + $0xc] sm:$0x6] }
  0x96   :  { %2973 = vmatprep.subr.bf16.mxu1 %v3538_v0  ;;  %v162_v10 = vsel %vm3768_vm6, 0, %v161_v7  ;;  %v3250_v12 = vld [vmem:[#allocation12 + $0x10] sm:$0xff]   ;;  %154 = vst [vmem:[#allocation2] sm:$0x3] %v153_v8  ;;  %157 = vst [vmem:[#allocation2 + $0x8] sm:$0x3] %v156_v9 }
  0x97   :  { %163 = vst [vmem:[#allocation2 + $0x4] sm:$0x6] %v162_v10  ;;  %v165_v13 = vsel %vm3768_vm6, 0, %v164_v11  ;;  %v167_v14 = vld [vmem:[#allocation6] sm:$0xf]  ;;  %2964 = vmatpush3.bf16.msra.mxu0 %v3250_v12  ;;  %vm192_vm8 = vmand %vm191_vm7, %vm159_vm4  ;;  %v3251_v38 = vld [vmem:[#allocation11] sm:$0xff]  }
  0x98   :  { %v168_v15 = vld [vmem:[#allocation6 + $0x4] sm:$0xf]  ;;  %166 = vst [vmem:[#allocation2 + $0xc] sm:$0x6] %v165_v13  ;;  %v170_v16 = vshrl.u32 %v167_v14, 16  ;;  %v173_v17 = vshll.u32 %v167_v14, 16  ;;  %2965 = vmatprep.subr.bf16.mxu0 %v3538_v0 }
  0x99   :  { %v179_v18 = vshrl.u32 %v168_v15, 16  ;;  %v182_v19 = vshll.u32 %v168_v15, 16  ;;  %2974 = vmatpush3.bf16.msra.mxu1 %v3248_v4  ;;  %v3252_v24 = vld [vmem:[#allocation12 + $0x18] sm:$0xff]   ;;  %vm213_vm10 = vsmask.f32 3328  ;;  %vm380_vm12 = vcmask 1042432  }
  0x9a   :  { %v172_v20 = vrot.slane %v170_v16, 6  ;;  %v175_v21 = vrot.slane %v173_v17, 7  ;;  %2987 = vmatprep.subr.bf16.mxu1 %v3538_v0  ;;  %vm214_vm11 = vsmask.f32 7440  ;;  %vm574_vm13 = vsmask.f32 2304 }
  0x9b   :  { %v181_v22 = vrot.slane %v179_v18, 6  ;;  %v184_v23 = vrot.slane %v182_v19, 7  ;;  %2966 = vmatpush3.bf16.msra.mxu0 %v3252_v24  ;;  %vm575_vm14 = vsmask.f32 6416  ;;  %vm381_vm15 = vcmask 1046532   ;;  %v3253_v58 = vld [vmem:[#allocation11 + $0x8] sm:$0xff]   ;;  %vm3808_vm1 = vmor %vm213_vm10, %vm214_vm11 }
  0x9c   :  { %v176_v25 = vor.u32 %v175_v21, %v172_v20  ;;  %2979 = vmatprep.subr.bf16.mxu0 %v3538_v0  ;;  %v3254_v17 = vld [vmem:[#allocation11 + $0x10] sm:$0xff]   ;;  %v3255_v18 = vld [vmem:[#allocation9 + $0x10] sm:$0xff]   ;;  %vm3822_vm3 = vmor %vm380_vm12, %vm381_vm15  ;;  %vm857_vm6 = vcmask 1045508   ;;  %vm1226_vm11 = vcmask 1044484   ;;  %s3541_s19 = smov 112   ;;  %s3542_s21 = smov 104  }
  0x9d   :  { %v185_v26 = vor.u32 %v184_v23, %v181_v22  ;;  %v193_v29 = vld [vmem:[#allocation2] sm:$0xe]  ;;  %v199_v32 = vld [vmem:[#allocation2 + $0x8] sm:$0xe]  ;;  %vm3829_vm4 = vmor %vm574_vm13, %vm575_vm14  ;;  %vm1549_vm13 = vcmask 60416   ;;  %vm1683_vm14 = vcmask 64512  }
  0x9e   :  { %v177_v27 = vrot.slane %v176_v25, 4  ;;  %v196_v30 = vld [vmem:[#allocation2 + $0x4] sm:$0x3]  ;;  %v194_v31 = vsel %vm192_vm8, %v176_v25, %v193_v29  ;;  %v3271_v23 = vld [vmem:[#allocation12 + $0x50] sm:$0xff]   ;;  %vm2159_vm15 = vcmask 1043456   ;;  %s3543_s26 = smov [#allocation20]  }
  0x9f   :  { %v186_v28 = vrot.slane %v185_v26, 4  ;;  %v202_v33 = vld [vmem:[#allocation2 + $0xc] sm:$0x3]  ;;  %195 = vst [vmem:[#allocation2] sm:$0xe] %v194_v31  ;;  %v200_v35 = vsel %vm192_vm8, %v185_v26, %v199_v32  ;;  %v3256_v31 = vld [vmem:[#allocation11 + $0x18] sm:$0xff]  }
  0xa0   :  { %v197_v34 = vsel %vm3763_vm5, %v177_v27, %v196_v30  ;;  %201 = vst [vmem:[#allocation2 + $0x8] sm:$0xe] %v200_v35  ;;  %v3257_v32 = vld [vmem:[#allocation9 + $0x18] sm:$0xff]   ;;  %vm1055_vm8 = vsmask.f32 5392  ;;  %s2744_s28 = sshll.u32 %s3543_s26, 4  ;;  %s2745_s28 = int_to_ptr.vmem [resolvable:$true] %s2744_s28 }
  0xa1   :  { %v203_v36 = vsel %vm3763_vm5, %v186_v28, %v202_v33  ;;  %198 = vst [vmem:[#allocation2 + $0x4] sm:$0x3] %v197_v34  ;;  %vm856_vm5 = vcmask 1041408   ;;  %vm1056_vm10 = vmor %vm150_vm2, %vm1055_vm8  ;;  %vm1225_vm2 = vcmask 1040384   ;;  %s3492_s6 = scalar_lea.vmem %s2745_s28, 256  ;;  %p3497_p9 = scmp.lt.s32.totalorder %s2745_s28, %s2745_s28 }
  0xa2   :  { %204 = vst [vmem:[#allocation2 + $0xc] sm:$0x3] %v203_v36  ;;  %vm3865_vm7 = vmor %vm856_vm5, %vm857_vm6  ;;  %p3493_p8 = scmp.ne.s32.totalorder %s2745_s28, %s3492_s6  ;;  %p3498_p10 = scmp.lt.s32.totalorder %s3492_s6, %s3492_s6 }
  0xa3   :  { %vm1227_vm12 = vmor %vm1225_vm2, %vm1226_vm11 }
  0xa4   :  { %p3499_p11 = por %p3498_p10, %p3497_p9 }
  0xa6   :  { %v205_v37 = vld [vmem:[#allocation2] sm:$0xf]  ;;  %p3500_p12 = pnand %p3499_p11, %p3493_p8 }
  0xa7   :  { %v206_v39 = vld [vmem:[#allocation2 + $0x8] sm:$0xf]  ;;  %v217_v40 = vshrl.u32 %v205_v37, 16  ;;  %v220_v41 = vshll.u32 %v205_v37, 16  ;;  %v374_v51 = vld [vmem:[#allocation2] sm:$0xe] }
  0xa8   :  { %v3790_v42 = vld [vmem:[#allocation2 + $0x4] sm:$0x1]  ;;  %v231_v43 = vshrl.u32 %v206_v39, 16  ;;  %v234_v44 = vshll.u32 %v206_v39, 16  ;;  %v2764_v45 = vcombine.low %v205_v37, %v206_v39  ;;  %v375_v56 = vld [vmem:[#allocation2 + $0x8] sm:$0xe] }
  0xa9   :  { %v3792_v46 = vld [vmem:[#allocation2 + $0xc] sm:$0x1]  ;;  %v226_v47 = vshll.u32 %v3790_v42, 16  ;;  %v219_v48 = vrot.slane %v217_v40, 4  ;;  %v222_v49 = vrot.slane %v220_v41, 5  ;;  %v385_v55 = vrot.slane %v3790_v42, 5 }
  0xaa   :  { %v240_v50 = vshll.u32 %v3792_v46, 16  ;;  %v233_v52 = vrot.slane %v231_v43, 4  ;;  %v236_v53 = vrot.slane %v234_v44, 5  ;;  %2976 = vmatmul.mubr.msk.bf16.vlgmr.msra.gmra.mrb[0].mxu1 %vm268_vm9, %v2764_v45  ;;  %v3798_v57 = vld [vmem:[#allocation2 + $0x4] sm:$0x3]  ;;  %v389_v61 = vrot.slane %v3792_v46, 5 }
  0xab   :  { %v228_v54 = vrot.slane %v226_v47, 5  ;;  %2988 = vmatpush3.bf16.msra.mxu1 %v3251_v38  ;;  %2991 = vmatprep.mubr.msk.bf16.mxu1 %vm3539_vm0, %v3538_v0  ;;  %v223_v59 = vor.u32 %v222_v49, %v219_v48  ;;  %v2768_v62 = vrot.slane %v374_v51, 9  ;;  %v3803_v63 = vld [vmem:[#allocation2 + $0xc] sm:$0x3]  ;;  %v578_v3 = vshrl.u32 %v374_v51, 16  ;;  %v3258_v41 = vld [vmem:[#allocation12 + $0x20] sm:$0xff]  }
  0xac   :  { %v242_v60 = vrot.slane %v240_v50, 5  ;;  %2989 = vmatprep.subr.bf16.mxu1 %v3538_v0  ;;  %v237_v2 = vor.u32 %v236_v53, %v233_v52  ;;  %v581_v4 = vshll.u32 %v374_v51, 16  ;;  %v587_v5 = vshrl.u32 %v3798_v57, 16  ;;  %v3259_v43 = vld [vmem:[#allocation11 + $0x20] sm:$0xff]   ;;  %v850_v45 = vld [vmem:[#allocation2] sm:$0xc] }
  0xad   :  { %v224_v6 = vrot.slane %v223_v59, 4  ;;  %v590_v7 = vshll.u32 %v3798_v57, 16  ;;  %v2769_v9 = vrot.slane %v375_v56, 9  ;;  %v580_v10 = vrot.slane %v578_v3, 5  ;;  %v851_v46 = vld [vmem:[#allocation2 + $0x8] sm:$0xc] }
  0xae   :  { %v238_v8 = vrot.slane %v237_v2, 4  ;;  %v583_v11 = vrot.slane %v581_v4, 6  ;;  %v589_v13 = vrot.slane %v587_v5, 5  ;;  %v596_v15 = vshrl.u32 %v375_v56, 16  ;;  %v3260_v47 = vld [vmem:[#allocation12 + $0x28] sm:$0xff]   ;;  %v3261_v48 = vld [vmem:[#allocation11 + $0x28] sm:$0xff]  }
  0xaf   :  { %2990 = vmatpush3.bf16.msra.mxu1 %v3253_v58  ;;  %v229_v12 = vsel %vm3808_vm1, %v224_v6, %v228_v54  ;;  %v592_v14 = vrot.slane %v590_v7, 6  ;;  %v599_v20 = vshll.u32 %v375_v56, 16  ;;  %v605_v21 = vshrl.u32 %v3803_v63, 16  ;;  %v3262_v54 = vld [vmem:[#allocation9] sm:$0xff]   ;;  %v3264_v59 = vld [vmem:[#allocation9 + $0x8] sm:$0xff]  }
  0xb0   :  { %v243_v16 = vsel %vm3808_vm1, %v238_v8, %v242_v60  ;;  %3003 = vmatprep.subr.bf16.mxu1 %v3538_v0  ;;  %v584_v19 = vor.u32 %v583_v11, %v580_v10  ;;  %v598_v24 = vrot.slane %v596_v15, 5  ;;  %v608_v25 = vshll.u32 %v3803_v63, 16  ;;  %v3265_v60 = vld [vmem:[#allocation9 + $0x28] sm:$0xff]   ;;  %v3883_v2 = vld [vmem:[#allocation2 + $0xc] sm:$0x7]  ;;  %v3281_v49 = vld [vmem:[#allocation15 + $0x8] sm:$0xff]  }
  0xb1   :  { %v2760_v22 = vcombine.low %v229_v12, %v243_v16  ;;  %v593_v28 = vor.u32 %v592_v14, %v589_v13  ;;  %v601_v29 = vrot.slane %v599_v20, 6  ;;  %v607_v30 = vrot.slane %v605_v21, 5  ;;  %v3266_v8 = vld [vmem:[#allocation12 + $0x30] sm:$0xff]   ;;  %v3268_v16 = vld [vmem:[#allocation12 + $0x38] sm:$0xff]  }
  0xb2   :  { %v585_v27 = vrot.slane %v584_v19, 4  ;;  %v610_v33 = vrot.slane %v608_v25, 6  ;;  %v386_v34 = vsel %vm3822_vm3, %v2768_v62, %v385_v55  ;;  %v390_v35 = vsel %vm3822_vm3, %v2769_v9, %v389_v61  ;;  %v3263_v55 = vld [vmem:[#allocation9 + $0x20] sm:$0xff]   ;;  %v3873_v61 = vld [vmem:[#allocation2 + $0x4] sm:$0x7] }
  0xb3   :  { %2968 = vmatmul.mubr.msk.bf16.vlgmr.msra.gmra.mrb[0].mxu0 %vm268_vm9, %v2760_v22  ;;  %2992 = vmatmul.mubr.msk.bf16.vlgmr.msra.gmra.mrb[4].mxu1 %vm268_vm9, %v2760_v22  ;;  %v602_v36 = vor.u32 %v601_v29, %v598_v24  ;;  %v3847_v40 = vcombine.low %v386_v34, %v390_v35  ;;  %v2793_v50 = vrot.slane %v850_v45, 10  ;;  %v861_v51 = vrot.slane %v3798_v57, 6  ;;  %v3267_v9 = vld [vmem:[#allocation12 + $0x40] sm:$0xff]   ;;  %v3273_v29 = vld [vmem:[#allocation12 + $0x58] sm:$0xff]   ;;  %v1219_v35 = vld [vmem:[#allocation2] sm:$0x8] }
  0xb4   :  { %2980 = vmatpush3.bf16.msra.mxu0 %v3254_v17  ;;  %3004 = vmatpush3.bf16.msra.mxu1 %v3255_v18  ;;  %v611_v37 = vor.u32 %v610_v33, %v607_v30  ;;  %v594_v38 = vsel %vm3829_vm4, %v585_v27, %v593_v28  ;;  %v2794_v52 = vrot.slane %v851_v46, 10  ;;  %v865_v53 = vrot.slane %v3803_v63, 6  ;;  %v3269_v17 = vld [vmem:[#allocation12 + $0x48] sm:$0xff]   ;;  %v3270_v22 = vld [vmem:[#allocation11 + $0x30] sm:$0xff]   ;;  %v3274_v33 = vld [vmem:[#allocation11 + $0x40] sm:$0xff]  }
  0xb5   :  { %2981 = vmatprep.subr.bf16.mxu0 %v3538_v0  ;;  %3005 = vmatprep.subr.bf16.mxu1 %v3538_v0  ;;  %v603_v39 = vrot.slane %v602_v36, 4  ;;  %v1058_v56 = vshrl.u32 %v850_v45, 16  ;;  %v1061_v58 = vshll.u32 %v850_v45, 16  ;;  %v1076_v62 = vshrl.u32 %v851_v46, 16  ;;  %v3272_v28 = vld [vmem:[#allocation11 + $0x38] sm:$0xff]   ;;  %v3275_v34 = vld [vmem:[#allocation11 + $0x48] sm:$0xff]  }
  0xb6   :  { %2983 = vmatprep.mubr.msk.bf16.mxu0 %vm3539_vm0, %v3538_v0  ;;  %3007 = vmatprep.mubr.msk.bf16.mxu1 %vm3539_vm0, %v3538_v0  ;;  %v1079_v1 = vshll.u32 %v851_v46, 16  ;;  %v862_v57 = vsel %vm3865_vm7, %v2793_v50, %v861_v51  ;;  %v866_v63 = vsel %vm3865_vm7, %v2794_v52, %v865_v53  ;;  %v1067_v6 = vshrl.u32 %v3873_v61, 16  ;;  %v1220_v36 = vld [vmem:[#allocation2 + $0x8] sm:$0x8]  ;;  %v3278_v46 = vld [vmem:[%s4193_s5] sm:$0xff]  }
  0xb7   :  { %v612_v42 = vsel %vm3829_vm4, %v603_v39, %v611_v37  ;;  %v2795_v3 = vcombine.low %v862_v57, %v866_v63  ;;  %v1060_v4 = vrot.slane %v1058_v56, 6  ;;  %v1063_v5 = vrot.slane %v1061_v58, 7  ;;  %v3276_v37 = vld [vmem:[#allocation12 + $0x60] sm:$0xff]  }
  0xb8   :  { %2982 = vmatpush3.bf16.msra.mxu0 %v3256_v31  ;;  %3006 = vmatpush3.bf16.msra.mxu1 %v3257_v32  ;;  %v3852_v44 = vcombine.low %v594_v38, %v612_v42  ;;  %v1070_v7 = vshll.u32 %v3873_v61, 16  ;;  %v1078_v10 = vrot.slane %v1076_v62, 6  ;;  %v1081_v11 = vrot.slane %v1079_v1, 7  ;;  %v3277_v42 = vld [vmem:[#allocation12 + $0x68] sm:$0xff]  }
  0xb9   :  { %2995 = vmatprep.subr.bf16.mxu0 %v3538_v0  ;;  %3019 = vmatprep.subr.bf16.mxu1 %v3538_v0  ;;  %v1085_v12 = vshrl.u32 %v3883_v2, 16  ;;  %v1088_v13 = vshll.u32 %v3883_v2, 16  ;;  %v1064_v14 = vor.u32 %v1063_v5, %v1060_v4  ;;  %v1069_v15 = vrot.slane %v1067_v6, 6 }
  0xba   :  { %v1072_v18 = vrot.slane %v1070_v7, 7  ;;  %v1082_v19 = vor.u32 %v1081_v11, %v1078_v10  ;;  %v2812_v38 = vrot.slane %v1219_v35, 11  ;;  %v1230_v39 = vrot.slane %v3873_v61, 7 }
  0xbb   :  { %2984 = vmatmul.mubr.msk.bf16.vlgmr.msra.gmra.mrb[4].mxu0 %vm268_vm9, %v3847_v40  ;;  %3008 = vmatmul.mubr.msk.bf16.vlgmr.msra.gmra.mrb[8].mxu1 %vm268_vm9, %v3852_v44  ;;  %v1087_v20 = vrot.slane %v1085_v12, 6  ;;  %v1090_v21 = vrot.slane %v1088_v13, 7  ;;  %v1065_v24 = vrot.slane %v1064_v14, 4 }
  0xbc   :  { %2996 = vmatpush3.bf16.msra.mxu0 %v3258_v41  ;;  %3020 = vmatpush3.bf16.msra.mxu1 %v3259_v43  ;;  %v1073_v25 = vor.u32 %v1072_v18, %v1069_v15  ;;  %v1083_v26 = vrot.slane %v1082_v19, 4  ;;  %v1234_v41 = vrot.slane %v3883_v2, 7  ;;  %v1231_v43 = vsel %vm1227_vm12, %v2812_v38, %v1230_v39 }
  0xbd   :  { %2997 = vmatprep.subr.bf16.mxu0 %v3538_v0  ;;  %3021 = vmatprep.subr.bf16.mxu1 %v3538_v0  ;;  %v1091_v27 = vor.u32 %v1090_v21, %v1087_v20 }
  0xbe   :  { %2999 = vmatprep.mubr.msk.bf16.mxu0 %vm3539_vm0, %v3538_v0  ;;  %3023 = vmatprep.mubr.msk.bf16.mxu1 %vm3539_vm0, %v3538_v0  ;;  %v1074_v30 = vsel %vm1056_vm10, %v1065_v24, %v1073_v25 }
  0xbf   :  { %v1092_v31 = vsel %vm1056_vm10, %v1083_v26, %v1091_v27 }
  0xc0   :  { %2998 = vmatpush3.bf16.msra.mxu0 %v3260_v47  ;;  %3022 = vmatpush3.bf16.msra.mxu1 %v3261_v48  ;;  %v2805_v32 = vcombine.low %v1074_v30, %v1092_v31  ;;  %v3279_v47 = vld [vmem:[#allocation15] sm:$0xff]  }
  0xc1   :  { %3011 = vmatprep.subr.bf16.mxu0 %v3538_v0  ;;  %3035 = vmatprep.subr.bf16.mxu1 %v3538_v0  ;;  %v3280_v48 = vld [vmem:[%s4193_s5 + $0x8] sm:$0xff]   ;;  %s3540_s5 = smov 120  }
  0xc3   :  { %3000 = vmatmul.mubr.msk.bf16.vlgmr.msra.gmra.mrb[8].mxu0 %vm268_vm9, %v3847_v40  ;;  %3024 = vmatmul.mubr.msk.bf16.vlgmr.msra.gmra.mrb[12].mxu1 %vm268_vm9, %v3852_v44 }
  0xc4   :  { %3012 = vmatpush3.bf16.msra.mxu0 %v3262_v54  ;;  %3036 = vmatpush3.bf16.msra.mxu1 %v3263_v55 }
  0xc5   :  { %3013 = vmatprep.subr.bf16.mxu0 %v3538_v0  ;;  %3037 = vmatprep.subr.bf16.mxu1 %v3538_v0 }
  0xc6   :  { %3015 = vmatprep.mubr.msk.bf16.mxu0 %vm3539_vm0, %v3538_v0  ;;  %3039 = vmatprep.mubr.msk.bf16.mxu1 %vm3539_vm0, %v3538_v0 }
  0xc8   :  { %3014 = vmatpush3.bf16.msra.mxu0 %v3264_v59  ;;  %3038 = vmatpush3.bf16.msra.mxu1 %v3265_v60 }
  0xc9   :  { %3027 = vmatprep.subr.bf16.mxu0 %v3538_v0  ;;  %3051 = vmatprep.subr.bf16.mxu1 %v3538_v0 }
  0xcb   :  { %3016 = vmatmul.mubr.msk.bf16.vlgmr.msra.gmra.mrb[12].mxu0 %vm268_vm9, %v3847_v40  ;;  %3040 = vmatmul.mubr.msk.bf16.vlgmr.msra.gmra.mrb[16].mxu1 %vm268_vm9, %v2795_v3  ;;  %v2813_v40 = vrot.slane %v1220_v36, 11 }
  0xcc   :  { %3028 = vmatpush3.bf16.msra.mxu0 %v3266_v8  ;;  %3052 = vmatpush3.bf16.msra.mxu1 %v3267_v9 }
  0xcd   :  { %3029 = vmatprep.subr.bf16.mxu0 %v3538_v0  ;;  %3053 = vmatprep.subr.bf16.mxu1 %v3538_v0 }
  0xce   :  { %3031 = vmatprep.mubr.msk.bf16.mxu0 %vm3539_vm0, %v3538_v0  ;;  %3055 = vmatprep.mubr.msk.bf16.mxu1 %vm3539_vm0, %v3538_v0 }
  0xd0   :  { %3030 = vmatpush3.bf16.msra.mxu0 %v3268_v16  ;;  %3054 = vmatpush3.bf16.msra.mxu1 %v3269_v17 }
  0xd1   :  { %3043 = vmatprep.subr.bf16.mxu0 %v3538_v0  ;;  %3067 = vmatprep.subr.bf16.mxu1 %v3538_v0 }
  0xd3   :  { %3032 = vmatmul.mubr.msk.bf16.vlgmr.msra.gmra.mrb[16].mxu0 %vm268_vm9, %v3852_v44  ;;  %3056 = vmatmul.mubr.msk.bf16.vlgmr.msra.gmra.mrb[20].mxu1 %vm268_vm9, %v2795_v3  ;;  %v1235_v44 = vsel %vm1227_vm12, %v2813_v40, %v1234_v41 }
  0xd4   :  { %3044 = vmatpush3.bf16.msra.mxu0 %v3270_v22  ;;  %3068 = vmatpush3.bf16.msra.mxu1 %v3271_v23  ;;  %v2814_v45 = vcombine.low %v1231_v43, %v1235_v44 }
  0xd5   :  { %3045 = vmatprep.subr.bf16.mxu0 %v3538_v0  ;;  %3069 = vmatprep.subr.bf16.mxu1 %v3538_v0 }
  0xd6   :  { %3047 = vmatprep.mubr.msk.bf16.mxu0 %vm3539_vm0, %v3538_v0  ;;  %3071 = vmatprep.mubr.msk.bf16.mxu1 %vm3539_vm0, %v3538_v0 }
  0xd8   :  { %3046 = vmatpush3.bf16.msra.mxu0 %v3272_v28  ;;  %3070 = vmatpush3.bf16.msra.mxu1 %v3273_v29 }
  0xd9   :  { %3059 = vmatprep.subr.bf16.mxu0 %v3538_v0  ;;  %3083 = vmatprep.subr.bf16.mxu1 %v3538_v0 }
  0xdb   :  { %3048 = vmatmul.mubr.msk.bf16.vlgmr.msra.gmra.mrb[20].mxu0 %vm268_vm9, %v2795_v3  ;;  %3072 = vmatmul.mubr.msk.bf16.vlgmr.msra.gmra.mrb[24].mxu1 %vm268_vm9, %v2805_v32 }
  0xdc   :  { %3060 = vmatpush3.bf16.msra.mxu0 %v3274_v33  ;;  %3063 = vmatprep.mubr.msk.bf16.mxu0 %vm3539_vm0, %v3538_v0 }
  0xdd   :  { %3061 = vmatprep.subr.bf16.mxu0 %v3538_v0  ;;  %3087 = vmatprep.mubr.msk.bf16.mxu1 %vm3539_vm0, %v3538_v0 }
  0xde   :  { %3084 = vmatpush3.bf16.msra.mxu1 %v3278_v46 }
  0xdf   :  { %3085 = vmatprep.subr.bf16.mxu1 %v3538_v0 }
  0xe0   :  { %3062 = vmatpush3.bf16.msra.mxu0 %v3275_v34 }
  0xe1   :  { %3075 = vmatprep.subr.bf16.mxu0 %v3538_v0 }
  0xe2   :  { %3086 = vmatpush3.bf16.msra.mxu1 %v3280_v48 }
  0xe3   :  { %3064 = vmatmul.mubr.msk.bf16.vlgmr.msra.gmra.mrb[24].mxu0 %vm268_vm9, %v2805_v32  ;;  %3099 = vmatprep.subr.bf16.mxu1 %v3538_v0 }
  0xe4   :  { %3076 = vmatpush3.bf16.msra.mxu0 %v3276_v37  ;;  %3079 = vmatprep.mubr.msk.bf16.mxu0 %vm3539_vm0, %v3538_v0 }
  0xe5   :  { %3077 = vmatprep.subr.bf16.mxu0 %v3538_v0 }
  0xe8   :  { %3078 = vmatpush3.bf16.msra.mxu0 %v3277_v42 }
  0xe9   :  { %3091 = vmatprep.subr.bf16.mxu0 %v3538_v0 }
  0xeb   :  { %3080 = vmatmul.mubr.msk.bf16.vlgmr.msra.gmra.mrb[28].mxu0 %vm268_vm9, %v2814_v45 }
  0xec   :  { %3095 = vmatprep.mubr.msk.bf16.mxu0 %vm3539_vm0, %v3538_v0  ;;  %3092 = vmatpush3.bf16.msra.mxu0 %v3279_v47 }
  0xed   :  { %3093 = vmatprep.subr.bf16.mxu0 %v3538_v0 }
  0xf0   :  { %3094 = vmatpush3.bf16.msra.mxu0 %v3281_v49 }
  0xf1   :  { %3107 = vmatprep.subr.bf16.mxu0 %v3538_v0 }
 0x17d   :  { %v367_v50 = vpop.f32.mrb[0].mxu1 }
 0x17e   :  { %v2977_v51 = vpop.f32.mrb[1].mxu1 }
 0x17f   :  { %v370_v52 = vpop.f32.mrb[2].mxu1 }
 0x180   :  { %v2978_v53 = vpop.f32.mrb[3].mxu1 }
 0x186   :  { %v306_v54 = vpop.f32.mrb[0].mxu0  ;;  %v505_v55 = vpop.f32.mrb[4].mxu1 }
 0x187   :  { %v368_v56 = vadd.f32 %v367_v50, %v306_v54  ;;  %v2969_v58 = vpop.f32.mrb[1].mxu0  ;;  %v2993_v59 = vpop.f32.mrb[5].mxu1 }
 0x188   :  { %v309_v60 = vpop.f32.mrb[2].mxu0  ;;  %v508_v61 = vpop.f32.mrb[6].mxu1 }
 0x189   :  { %v371_v62 = vadd.f32 %v370_v52, %v309_v60  ;;  %v2970_v1 = vpop.f32.mrb[3].mxu0  ;;  %v2994_v57 = vpop.f32.mrb[7].mxu1  ;;  %v2818_v60 = vld [vmem:[#allocation14] ss:$0 sm:$0xff] }
 0x18a   :  { %v2819_v1 = vld [vmem:[#allocation14 + $0x1] ss:$0 sm:$0xff] }
 0x18e   :  { %v452_v63 = vpop.f32.mrb[4].mxu0  ;;  %v670_v2 = vpop.f32.mrb[8].mxu1 }
 0x18f   :  { %v506_v3 = vadd.f32 %v505_v55, %v452_v63  ;;  %v2985_v4 = vpop.f32.mrb[5].mxu0  ;;  %v3009_v5 = vpop.f32.mrb[9].mxu1 }
 0x190   :  { %v455_v6 = vpop.f32.mrb[6].mxu0  ;;  %v673_v7 = vpop.f32.mrb[10].mxu1 }
 0x191   :  { %v509_v8 = vadd.f32 %v508_v61, %v455_v6  ;;  %v2986_v9 = vpop.f32.mrb[7].mxu0  ;;  %v3010_v10 = vpop.f32.mrb[11].mxu1 }
 0x196   :  { %v563_v11 = vpop.f32.mrb[8].mxu0  ;;  %v781_v12 = vpop.f32.mrb[12].mxu1 }
 0x197   :  { %v570_v13 = vadd.f32 %v563_v11, %v368_v56  ;;  %v788_v14 = vadd.f32 %v781_v12, %v506_v3  ;;  %v3001_v15 = vpop.f32.mrb[9].mxu0  ;;  %v3025_v16 = vpop.f32.mrb[13].mxu1 }
 0x198   :  { %v566_v17 = vpop.f32.mrb[10].mxu0  ;;  %v784_v18 = vpop.f32.mrb[14].mxu1  ;;  %v2820_v15 = vld [vmem:[#allocation14 + $0x2] ss:$0 sm:$0xff] }
 0x199   :  { %v571_v19 = vadd.f32 %v566_v17, %v371_v62  ;;  %v789_v20 = vadd.f32 %v784_v18, %v509_v8  ;;  %v3002_v21 = vpop.f32.mrb[11].mxu0  ;;  %v3026_v22 = vpop.f32.mrb[15].mxu1 }
 0x19e   :  { %v723_v23 = vpop.f32.mrb[12].mxu0  ;;  %v924_v24 = vpop.f32.mrb[16].mxu1 }
 0x19f   :  { %v724_v25 = vadd.f32 %v723_v23, %v670_v2  ;;  %v3017_v26 = vpop.f32.mrb[13].mxu0  ;;  %v3041_v27 = vpop.f32.mrb[17].mxu1 }
 0x1a0   :  { %v726_v28 = vpop.f32.mrb[14].mxu0  ;;  %v927_v29 = vpop.f32.mrb[18].mxu1 }
 0x1a1   :  { %v727_v30 = vadd.f32 %v726_v28, %v673_v7  ;;  %v931_v31 = vadd.f32 %v924_v24, %v724_v25  ;;  %v3018_v32 = vpop.f32.mrb[15].mxu0  ;;  %v3042_v33 = vpop.f32.mrb[19].mxu1 }
 0x1a2   :  { %v3282_v33 = vld [vmem:[#allocation17] sm:$0xff]  }
 0x1a3   :  { %v932_v34 = vadd.f32 %v927_v29, %v727_v30  ;;  %v1309_v61 = vadd.f32 %v2818_v60, %v931_v31 }
 0x1a5   :  { %v1310_v57 = vadd.f32 %v2818_v60, %v932_v34  ;;  %v1311_v4 = vmul.f32 0.01, %v1309_v61 }
 0x1a6   :  { %v841_v35 = vpop.f32.mrb[16].mxu0  ;;  %v1044_v36 = vpop.f32.mrb[20].mxu1 }
 0x1a7   :  { %v848_v37 = vadd.f32 %v841_v35, %v570_v13  ;;  %v3033_v38 = vpop.f32.mrb[17].mxu0  ;;  %v3057_v39 = vpop.f32.mrb[21].mxu1  ;;  %v1312_v8 = vmul.f32 0.01, %v1310_v57  ;;  %v1313_v11 = vmax.f32 %v1309_v61, %v1311_v4  ;;  %v3283_v35 = vld [vmem:[#allocation17 + $0x8] sm:$0xff]  }
 0x1a8   :  { %v844_v40 = vpop.f32.mrb[18].mxu0  ;;  %v1047_v41 = vpop.f32.mrb[22].mxu1 }
 0x1a9   :  { %v849_v42 = vadd.f32 %v844_v40, %v571_v19  ;;  %v1051_v43 = vadd.f32 %v1044_v36, %v848_v37  ;;  %v3034_v44 = vpop.f32.mrb[19].mxu0  ;;  %v3058_v45 = vpop.f32.mrb[23].mxu1  ;;  %v1314_v16 = vmax.f32 %v1310_v57, %v1312_v8  ;;  %v2821_v36 = vld [vmem:[#allocation18] ss:$0 sm:$0xff]  ;;  %v2825_v37 = vld [vmem:[#allocation18 + $0x1] ss:$0 sm:$0xff] }
 0x1ab   :  { %v1052_v46 = vadd.f32 %v1047_v41, %v849_v42 }
 0x1ae   :  { %v984_v47 = vpop.f32.mrb[20].mxu0  ;;  %v1210_v48 = vpop.f32.mrb[24].mxu1 }
 0x1af   :  { %v991_v49 = vadd.f32 %v984_v47, %v788_v14  ;;  %v1217_v50 = vadd.f32 %v1210_v48, %v1051_v43  ;;  %v3049_v51 = vpop.f32.mrb[21].mxu0  ;;  %v3073_v52 = vpop.f32.mrb[25].mxu1 }
 0x1b0   :  { %v987_v53 = vpop.f32.mrb[22].mxu0  ;;  %v1213_v54 = vpop.f32.mrb[26].mxu1 }
 0x1b1   :  { %v992_v55 = vadd.f32 %v987_v53, %v789_v20  ;;  %v1218_v56 = vadd.f32 %v1213_v54, %v1052_v46  ;;  %v3050_v58 = vpop.f32.mrb[23].mxu0  ;;  %v3074_v59 = vpop.f32.mrb[27].mxu1  ;;  %v2829_v54 = vld [vmem:[#allocation18 + $0x2] ss:$0 sm:$0xff] }
 0x1b6   :  { %v1150_v62 = vpop.f32.mrb[24].mxu0 }
 0x1b7   :  { %v1157_v63 = vadd.f32 %v1150_v62, %v991_v49  ;;  %v3065_v2 = vpop.f32.mrb[25].mxu0 }
 0x1b8   :  { %v1153_v3 = vpop.f32.mrb[26].mxu0 }
 0x1b9   :  { %v1325_v5 = vadd.f32 %v2819_v1, %v1157_v63  ;;  %v1158_v6 = vadd.f32 %v1153_v3, %v992_v55  ;;  %v3066_v7 = vpop.f32.mrb[27].mxu0 }
 0x1bb   :  { %v1327_v9 = vmul.f32 0.01, %v1325_v5  ;;  %v1326_v10 = vadd.f32 %v2819_v1, %v1158_v6 }
 0x1bd   :  { %v1329_v12 = vmax.f32 %v1325_v5, %v1327_v9  ;;  %v1328_v13 = vmul.f32 0.01, %v1326_v10 }
 0x1be   :  { %v1293_v14 = vpop.f32.mrb[28].mxu0 }
 0x1bf   :  { %v1331_v17 = vadd.f32 %v1329_v12, %v1313_v11  ;;  %v1330_v18 = vmax.f32 %v1326_v10, %v1328_v13  ;;  %v1300_v19 = vadd.f32 %v1293_v14, %v1217_v50  ;;  %v3081_v20 = vpop.f32.mrb[29].mxu0 }
 0x1c0   :  { %v1296_v21 = vpop.f32.mrb[30].mxu0 }
 0x1c1   :  { %v1332_v22 = vadd.f32 %v1330_v18, %v1314_v16  ;;  %v1341_v23 = vadd.f32 %v2820_v15, %v1300_v19  ;;  %v1301_v24 = vadd.f32 %v1296_v21, %v1218_v56  ;;  %v3082_v25 = vpop.f32.mrb[31].mxu0 }
 0x1c3   :  { %v1343_v26 = vmul.f32 0.01, %v1341_v23  ;;  %v1342_v27 = vadd.f32 %v2820_v15, %v1301_v24 }
 0x1c5   :  { %v1345_v28 = vmax.f32 %v1341_v23, %v1343_v26  ;;  %v1344_v29 = vmul.f32 0.01, %v1342_v27 }
 0x1c7   :  { %v1347_v30 = vadd.f32 %v1345_v28, %v1331_v17  ;;  %v1346_v31 = vmax.f32 %v1342_v27, %v1344_v29 }
 0x1c9   :  { %v1348_v32 = vadd.f32 %v1346_v31, %v1332_v22 }
 0x1cb   :  { %v1349_v34 = vpack.c.bf16 %v1348_v32, %v1347_v30 }
 0x1cd   :  { %3088 = vmatmul.mubr.msk.bf16.vlgmr.msra.gmra.mrb[28].mxu1 %vm268_vm9, %v1349_v34  ;;  %3096 = vmatmul.mubr.msk.bf16.vlgmr.msra.gmra.mrb[32].mxu0 %vm268_vm9, %v1349_v34 }
 0x1ce   :  { %3100 = vmatpush3.bf16.msra.mxu1 %v3282_v33  ;;  %3103 = vmatprep.mubr.msk.bf16.mxu1 %vm3539_vm0, %v3538_v0 }
 0x1cf   :  { %3101 = vmatprep.subr.bf16.mxu1 %v3538_v0  ;;  %3109 = vmatprep.mubr.msk.bf16.mxu0 %vm3539_vm0, %v3538_v0 }
 0x1d2   :  { %3102 = vmatpush3.bf16.msra.mxu1 %v3283_v35 }
 0x1d3   :  { %3113 = vmatprep.subr.bf16.mxu1 %v3538_v0 }
 0x1d5   :  { %3104 = vmatmul.mubr.msk.bf16.vlgmr.msra.gmra.mrb[32].mxu1 %vm268_vm9, %v1349_v34 }
 0x1d6   :  { %3115 = vmatprep.mubr.msk.bf16.mxu1 %vm3539_vm0, %v3538_v0 }
 0x2a0   :  { %v1410_v38 = vpop.f32.mrb[28].mxu1  ;;  %v1475_v39 = vpop.f32.mrb[32].mxu0 }
 0x2a1   :  { %v1411_v40 = vadd.f32 %v2821_v36, %v1410_v38  ;;  %v1476_v41 = vadd.f32 %v2825_v37, %v1475_v39  ;;  %v3089_v42 = vpop.f32.mrb[29].mxu1  ;;  %v3097_v43 = vpop.f32.mrb[33].mxu0 }
 0x2a2   :  { %v1413_v44 = vpop.f32.mrb[30].mxu1  ;;  %v1478_v45 = vpop.f32.mrb[34].mxu0 }
 0x2a3   :  { %v1547_v46 = vpack.c.bf16 %v1411_v40, %v1411_v40  ;;  %v1552_v47 = vpack.c.bf16 %v1476_v41, %v1476_v41  ;;  %v1414_v48 = vadd.f32 %v2821_v36, %v1413_v44  ;;  %v1479_v49 = vadd.f32 %v2825_v37, %v1478_v45  ;;  %v3090_v50 = vpop.f32.mrb[31].mxu1  ;;  %v3098_v51 = vpop.f32.mrb[35].mxu0 }
 0x2a5   :  { %1550 = vst.msk [vmem:[#allocation3] sm:$0xf] %vm1549_vm13, %v1547_v46  ;;  %1554 = vst.msk [vmem:[#allocation4] sm:$0xf] %vm1549_vm13, %v1552_v47  ;;  %v1548_v52 = vpack.c.bf16 %v1414_v48, %v1414_v48  ;;  %v1553_v53 = vpack.c.bf16 %v1479_v49, %v1479_v49  ;;  %1566 = vrot.lane.b32.xlu1 %v1547_v46, %s3540_s5  ;;  %1581 = vrot.lane.b32.xlu0 %v1552_v47, %s3540_s5 }
 0x2a7   :  { %1551 = vst.msk [vmem:[#allocation3 + $0x4] sm:$0xf] %vm1549_vm13, %v1548_v52  ;;  %1555 = vst.msk [vmem:[#allocation4 + $0x4] sm:$0xf] %vm1549_vm13, %v1553_v53 }
 0x2a8   :  { %v1540_v55 = vpop.f32.mrb[32].mxu1 }
 0x2a9   :  { %v1541_v56 = vadd.f32 %v2829_v54, %v1540_v55  ;;  %1568 = vrot.lane.b32.xlu1 %v1548_v52, %s3540_s5  ;;  %v3105_v58 = vpop.f32.mrb[33].mxu1  ;;  %1583 = vrot.lane.b32.xlu0 %v1553_v53, %s3540_s5 }
 0x2aa   :  { %v1543_v59 = vpop.f32.mrb[34].mxu1 }
 0x2ab   :  { %v3967_v60 = vpack.c.bf16 %v1541_v56, %v1541_v56  ;;  %v1544_v61 = vadd.f32 %v2829_v54, %v1543_v59  ;;  %v3106_v62 = vpop.f32.mrb[35].mxu1 }
 0x2ac   :  { %v1667_v1 = vld [vmem:[#allocation4] sm:$0xf] }
 0x2ad   :  { %1558 = vst.msk [vmem:[#allocation5] sm:$0xf] %vm1549_vm13, %v3967_v60  ;;  %v3971_v57 = vpack.c.bf16 %v1544_v61, %v1544_v61  ;;  %1616 = vrot.lane.b32.xlu1 %v1553_v53, %s3541_s19  ;;  %1614 = vrot.lane.b32.xlu0 %v1552_v47, %s3541_s19  ;;  %v1688_v63 = vsel %vm1683_vm14, %v1667_v1, 0  ;;  %v1659_v4 = vld [vmem:[#allocation3] sm:$0xf] }
 0x2ae   :  { %3108 = vmatpush3.bf16.xpose.msra.mxu0 %v1688_v63  ;;  %v1668_v2 = vld [vmem:[#allocation4 + $0x4] sm:$0xf] }
 0x2af   :  { %1559 = vst.msk [vmem:[#allocation5 + $0x4] sm:$0xf] %vm1549_vm13, %v3971_v57  ;;  %v1734_v3 = vsel %vm1683_vm14, %v1668_v2, 0  ;;  %3119 = vmatprep.subr.bf16.mxu0 %v3538_v0  ;;  %v1660_v5 = vld [vmem:[#allocation3 + $0x4] sm:$0xf] }
 0x2b0   :  { %3114 = vmatpush3.bf16.xpose.msra.mxu1 %v1734_v3 }
 0x2b1   :  { %1607 = vrot.lane.b32.xlu1 %v1548_v52, %s3541_s19  ;;  %1605 = vrot.lane.b32.xlu0 %v1547_v46, %s3541_s19 }
 0x2b2   :  { %3125 = vmatprep.subr.bf16.mxu1 %v3538_v0 }
 0x2b4   :  { %v1675_v34 = vld [vmem:[#allocation5] sm:$0xf] }
 0x2b5   :  { %3110 = vmatmul.mubr.msk.bf16.vlgmr.msra.gmra.mrb[36].mxu0 %vm1683_vm14, %v1659_v4  ;;  %1643 = vrot.lane.b32.xlu1 %v1553_v53, %s3542_s21  ;;  %v2161_v36 = vsel %vm2159_vm15, %v1675_v34, 0 }
 0x2b6   :  { %1641 = vrot.lane.b32.xlu0 %v1552_v47, %s3542_s21  ;;  %3121 = vmatprep.mubr.msk.bf16.mxu0 %vm3539_vm0, %v3538_v0  ;;  %v1676_v37 = vld [vmem:[#allocation5 + $0x4] sm:$0xf] }
 0x2b7   :  { %3116 = vmatmul.mubr.msk.bf16.vlgmr.msra.gmra.mrb[36].mxu1 %vm1683_vm14, %v1660_v5  ;;  %v2207_v39 = vsel %vm2159_vm15, %v1676_v37, 0 }
 0x2b8   :  { %3127 = vmatprep.mubr.msk.bf16.mxu1 %vm3539_vm0, %v3538_v0 }
 0x2b9   :  { %1634 = vrot.lane.b32.xlu1 %v1548_v52, %s3542_s21 }
 0x2ba   :  { %1632 = vrot.lane.b32.xlu0 %v1547_v46, %s3542_s21 }
 0x317   :  { %v1567_v6 = vpop.permute.xlu1 %1566  ;;  %v1582_v7 = vpop.permute.xlu0 %1581 }
 0x318   :  { %1573 = vst.msk [vmem:[#allocation3 + $0x8] sm:$0xf] %vm1549_vm13, %v1567_v6  ;;  %1588 = vst.msk [vmem:[#allocation4 + $0x8] sm:$0xf] %vm1549_vm13, %v1582_v7 }
 0x31b   :  { %v1569_v8 = vpop.permute.xlu1 %1568  ;;  %v1584_v9 = vpop.permute.xlu0 %1583 }
 0x31c   :  { %1574 = vst.msk [vmem:[#allocation3 + $0xc] sm:$0xf] %vm1549_vm13, %v1569_v8  ;;  %1589 = vst.msk [vmem:[#allocation4 + $0xc] sm:$0xf] %vm1549_vm13, %v1584_v9 }
 0x31f   :  { %v1617_v10 = vpop.permute.xlu1 %1616  ;;  %v1615_v11 = vpop.permute.xlu0 %1614  ;;  %v1669_v12 = vld [vmem:[#allocation4 + $0x8] sm:$0xf] }
 0x320   :  { %1622 = vst.msk [vmem:[#allocation4 + $0x14] sm:$0xf] %vm1549_vm13, %v1617_v10  ;;  %1621 = vst.msk [vmem:[#allocation4 + $0x10] sm:$0xf] %vm1549_vm13, %v1615_v11  ;;  %v1780_v13 = vsel %vm1683_vm14, %v1669_v12, 0 }
 0x321   :  { %3120 = vmatpush3.bf16.xpose.msra.mxu0 %v1780_v13  ;;  %v1661_v19 = vld [vmem:[#allocation3 + $0x8] sm:$0xf] }
 0x322   :  { %3131 = vmatprep.subr.bf16.mxu0 %v3538_v0 }
 0x323   :  { %v1608_v14 = vpop.permute.xlu1 %1607  ;;  %v1606_v15 = vpop.permute.xlu0 %1605  ;;  %v1670_v16 = vld [vmem:[#allocation4 + $0xc] sm:$0xf] }
 0x324   :  { %1613 = vst.msk [vmem:[#allocation3 + $0x14] sm:$0xf] %vm1549_vm13, %v1608_v14  ;;  %1612 = vst.msk [vmem:[#allocation3 + $0x10] sm:$0xf] %vm1549_vm13, %v1606_v15  ;;  %v1826_v17 = vsel %vm1683_vm14, %v1670_v16, 0 }
 0x325   :  { %3126 = vmatpush3.bf16.xpose.msra.mxu1 %v1826_v17  ;;  %v1662_v25 = vld [vmem:[#allocation3 + $0xc] sm:$0xf] }
 0x326   :  { %3137 = vmatprep.subr.bf16.mxu1 %v3538_v0 }
 0x327   :  { %v1644_v18 = vpop.permute.xlu1 %1643  ;;  %v1671_v20 = vld [vmem:[#allocation4 + $0x10] sm:$0xf]  ;;  %v1672_v23 = vld [vmem:[#allocation4 + $0x14] sm:$0xf] }
 0x328   :  { %1649 = vst.msk [vmem:[#allocation4 + $0x1c] sm:$0xf] %vm1549_vm13, %v1644_v18  ;;  %v1642_v21 = vpop.permute.xlu0 %1641  ;;  %3122 = vmatmul.mubr.msk.bf16.vlgmr.msra.gmra.mrb[40].mxu0 %vm1683_vm14, %v1661_v19  ;;  %v1872_v22 = vsel %vm1683_vm14, %v1671_v20, 0  ;;  %v1918_v27 = vsel %vm1683_vm14, %v1672_v23, 0 }
 0x329   :  { %1648 = vst.msk [vmem:[#allocation4 + $0x18] sm:$0xf] %vm1549_vm13, %v1642_v21  ;;  %3132 = vmatpush3.bf16.xpose.msra.mxu0 %v1872_v22  ;;  %3133 = vmatprep.mubr.msk.bf16.mxu0 %vm3539_vm0, %v3538_v0 }
 0x32a   :  { %3143 = vmatprep.subr.bf16.mxu0 %v3538_v0 }
 0x32b   :  { %v1635_v24 = vpop.permute.xlu1 %1634  ;;  %v1663_v28 = vld [vmem:[#allocation3 + $0x10] sm:$0xf]  ;;  %v1664_v32 = vld [vmem:[#allocation3 + $0x14] sm:$0xf] }
 0x32c   :  { %1640 = vst.msk [vmem:[#allocation3 + $0x1c] sm:$0xf] %vm1549_vm13, %v1635_v24  ;;  %v1633_v26 = vpop.permute.xlu0 %1632  ;;  %3128 = vmatmul.mubr.msk.bf16.vlgmr.msra.gmra.mrb[40].mxu1 %vm1683_vm14, %v1662_v25 }
 0x32d   :  { %1639 = vst.msk [vmem:[#allocation3 + $0x18] sm:$0xf] %vm1549_vm13, %v1633_v26  ;;  %3138 = vmatpush3.bf16.xpose.msra.mxu1 %v1918_v27  ;;  %3139 = vmatprep.mubr.msk.bf16.mxu1 %vm3539_vm0, %v3538_v0 }
 0x32e   :  { %3149 = vmatprep.subr.bf16.mxu1 %v3538_v0 }
 0x32f   :  { %v1674_v31 = vld [vmem:[#allocation4 + $0x1c] sm:$0xf] }
 0x330   :  { %3134 = vmatmul.mubr.msk.bf16.vlgmr.msra.gmra.mrb[44].mxu0 %vm1683_vm14, %v1663_v28  ;;  %v1673_v29 = vld [vmem:[#allocation4 + $0x18] sm:$0xf]  ;;  %v2010_v33 = vsel %vm1683_vm14, %v1674_v31, 0 }
 0x331   :  { %v1964_v30 = vsel %vm1683_vm14, %v1673_v29, 0  ;;  %3145 = vmatprep.mubr.msk.bf16.mxu0 %vm3539_vm0, %v3538_v0 }
 0x332   :  { %3144 = vmatpush3.bf16.xpose.msra.mxu0 %v1964_v30 }
 0x333   :  { %3155 = vmatprep.subr.bf16.mxu0 %v3538_v0  ;;  %v1666_v38 = vld [vmem:[#allocation3 + $0x1c] sm:$0xf] }
 0x334   :  { %3140 = vmatmul.mubr.msk.bf16.vlgmr.msra.gmra.mrb[44].mxu1 %vm1683_vm14, %v1664_v32  ;;  %v1665_v35 = vld [vmem:[#allocation3 + $0x18] sm:$0xf] }
 0x335   :  { %3150 = vmatpush3.bf16.xpose.msra.mxu1 %v2010_v33  ;;  %3151 = vmatprep.mubr.msk.bf16.mxu1 %vm3539_vm0, %v3538_v0 }
 0x336   :  { %3161 = vmatprep.subr.bf16.mxu1 %v3538_v0 }
 0x339   :  { %3146 = vmatmul.mubr.msk.bf16.vlgmr.msra.gmra.mrb[48].mxu0 %vm1683_vm14, %v1665_v35 }
 0x33a   :  { %3156 = vmatpush3.bf16.msra.mxu0 %v2161_v36  ;;  %3157 = vmatprep.mubr.msk.bf16.mxu0 %vm3539_vm0, %v3538_v0 }
 0x33b   :  { %3167 = vmatprep.subr.bf16.mxu0 %v3538_v0 }
 0x33c   :  { %3152 = vmatmul.mubr.msk.bf16.vlgmr.msra.gmra.mrb[48].mxu1 %vm1683_vm14, %v1666_v38 }
 0x33d   :  { %3162 = vmatpush3.bf16.msra.mxu1 %v2207_v39  ;;  %3163 = vmatprep.mubr.msk.bf16.mxu1 %vm3539_vm0, %v3538_v0 }
 0x33e   :  { %3173 = vmatprep.subr.bf16.mxu1 %v3538_v0 }
 0x388   :  { %v1724_v40 = vpop.f32.mrb[36].mxu0 }
 0x389   :  { %v4039_v41 = vmul.f32 0.35355338, %v1724_v40  ;;  %v3111_v42 = vpop.f32.mrb[37].mxu0 }
 0x38a   :  { %v1727_v43 = vpop.f32.mrb[38].mxu0  ;;  %v1770_v44 = vpop.f32.mrb[36].mxu1 }
 0x38b   :  { %v2053_v45 = vmul.f32 0.35355338, %v1770_v44  ;;  %v3112_v46 = vpop.f32.mrb[39].mxu0  ;;  %v3117_v47 = vpop.f32.mrb[37].mxu1  ;;  %v2060_v48 = vsel %vm1683_vm14, %v4039_v41, -inf }
 0x38c   :  { %v1773_v49 = vpop.f32.mrb[38].mxu1  ;;  %2061 = vmax.xlane.f32.xlu0 %v2060_v48 }
 0x38d   :  { %v3118_v50 = vpop.f32.mrb[39].mxu1  ;;  %v2063_v51 = vsel %vm1683_vm14, %v2053_v45, -inf }
 0x38e   :  { %2064 = vmax.xlane.f32.xlu1 %v2063_v51 }
 0x3fb   :  { %v1816_v52 = vpop.f32.mrb[40].mxu0 }
 0x3fc   :  { %v2054_v53 = vmul.f32 0.35355338, %v1816_v52  ;;  %v3123_v54 = vpop.f32.mrb[41].mxu0 }
 0x3fd   :  { %v1819_v55 = vpop.f32.mrb[42].mxu0 }
 0x3fe   :  { %v3124_v56 = vpop.f32.mrb[43].mxu0  ;;  %v2066_v58 = vsel %vm1683_vm14, %v2054_v53, -inf }
 0x3ff   :  { %v1862_v59 = vpop.f32.mrb[40].mxu1  ;;  %2067 = vmax.xlane.f32.xlu0 %v2066_v58 }
 0x400   :  { %v2055_v61 = vmul.f32 0.35355338, %v1862_v59  ;;  %v3129_v62 = vpop.f32.mrb[41].mxu1 }
 0x401   :  { %v1865_v1 = vpop.f32.mrb[42].mxu1 }
 0x402   :  { %v3130_v63 = vpop.f32.mrb[43].mxu1  ;;  %v2069_v2 = vsel %vm1683_vm14, %v2055_v61, -inf }
 0x403   :  { %2070 = vmax.xlane.f32.xlu0 %v2069_v2  ;;  %v1908_v3 = vpop.f32.mrb[44].mxu0 }
 0x404   :  { %v2056_v4 = vmul.f32 0.35355338, %v1908_v3  ;;  %v3135_v5 = vpop.f32.mrb[45].mxu0 }
 0x405   :  { %v1911_v6 = vpop.f32.mrb[46].mxu0 }
 0x406   :  { %v3136_v7 = vpop.f32.mrb[47].mxu0  ;;  %v2072_v8 = vsel %vm1683_vm14, %v2056_v4, -inf }
 0x407   :  { %v1954_v9 = vpop.f32.mrb[44].mxu1  ;;  %2073 = vmax.xlane.f32.xlu1 %v2072_v8 }
 0x408   :  { %v2057_v10 = vmul.f32 0.35355338, %v1954_v9  ;;  %v3141_v11 = vpop.f32.mrb[45].mxu1 }
 0x409   :  { %v1957_v12 = vpop.f32.mrb[46].mxu1 }
 0x40a   :  { %v3142_v13 = vpop.f32.mrb[47].mxu1  ;;  %v2075_v14 = vsel %vm1683_vm14, %v2057_v10, -inf }
 0x40b   :  { %2076 = vmax.xlane.f32.xlu0 %v2075_v14 }
 0x40c   :  { %v2000_v15 = vpop.f32.mrb[48].mxu0 }
 0x40d   :  { %v2058_v16 = vmul.f32 0.35355338, %v2000_v15  ;;  %v3147_v17 = vpop.f32.mrb[49].mxu0 }
 0x40e   :  { %v2003_v18 = vpop.f32.mrb[50].mxu0 }
 0x40f   :  { %v3148_v19 = vpop.f32.mrb[51].mxu0  ;;  %v2046_v20 = vpop.f32.mrb[48].mxu1  ;;  %v2078_v21 = vsel %vm1683_vm14, %v2058_v16, -inf }
 0x410   :  { %v2059_v22 = vmul.f32 0.35355338, %v2046_v20  ;;  %2079 = vmax.xlane.f32.xlu1 %v2078_v21  ;;  %v3153_v23 = vpop.f32.mrb[49].mxu1 }
 0x411   :  { %v2049_v24 = vpop.f32.mrb[50].mxu1 }
 0x412   :  { %v3154_v25 = vpop.f32.mrb[51].mxu1  ;;  %v2081_v26 = vsel %vm1683_vm14, %v2059_v22, -inf }
 0x413   :  { %2082 = vmax.xlane.f32.xlu0 %v2081_v26 }
 0x419   :  { %v2062_v29 = vpop.xlane.xlu0 %2061 }
 0x41a   :  { %v2084_v31 = vsub.f32 %v4039_v41, %v2062_v29 }
 0x41b   :  { %v2065_v27 = vpop.xlane.xlu1 %2064 }
 0x41c   :  { %v2085_v28 = vsub.f32 %v2053_v45, %v2065_v27  ;;  %v2092_v32 = vmul.f32 1.442695, %v2084_v31 }
 0x41e   :  { %v2094_v30 = vmul.f32 1.442695, %v2085_v28 }
 0x420   :  { %3284 = vpow2.f32 %v2094_v30 }
 0x421   :  { %1596 = vrot.lane.b32.xlu1 %v3967_v60, %s3540_s5  ;;  %3286 = vpow2.f32 %v2092_v32 }
 0x425   :  { %1623 = vrot.lane.b32.xlu1 %v3967_v60, %s3541_s19 }
 0x429   :  { %1625 = vrot.lane.b32.xlu1 %v3971_v57, %s3541_s19  ;;  %1598 = vrot.lane.b32.xlu0 %v3971_v57, %s3540_s5 }
 0x42a   :  { %v4059_v33 = vpop.eup %3284 }
 0x42b   :  { %v2111_v34 = vsel %vm1683_vm14, %v4059_v33, 0.0  ;;  %v4063_v35 = vpop.eup %3286 }
 0x42c   :  { %v2108_v36 = vsel %vm1683_vm14, %v4063_v35, 0.0 }
 0x448   :  { %2112 = vadd.xlane.f32.xlu0 %v2111_v34 }
 0x44d   :  { %2109 = vadd.xlane.f32.xlu1 %v2108_v36 }
 0x48c   :  { %v2068_v37 = vpop.xlane.xlu0 %2067 }
 0x48d   :  { %v2086_v38 = vsub.f32 %v2054_v53, %v2068_v37 }
 0x48f   :  { %v2096_v39 = vmul.f32 1.442695, %v2086_v38 }
 0x490   :  { %v2071_v40 = vpop.xlane.xlu0 %2070 }
 0x491   :  { %3288 = vpow2.f32 %v2096_v39  ;;  %v2087_v41 = vsub.f32 %v2055_v61, %v2071_v40 }
 0x493   :  { %v2098_v42 = vmul.f32 1.442695, %v2087_v41 }
 0x494   :  { %v2074_v43 = vpop.xlane.xlu1 %2073 }
 0x495   :  { %3290 = vpow2.f32 %v2098_v42  ;;  %v2088_v44 = vsub.f32 %v2056_v4, %v2074_v43 }
 0x497   :  { %v2100_v45 = vmul.f32 1.442695, %v2088_v44 }
 0x498   :  { %v2077_v46 = vpop.xlane.xlu0 %2076 }
 0x499   :  { %3292 = vpow2.f32 %v2100_v45  ;;  %v2089_v47 = vsub.f32 %v2057_v10, %v2077_v46 }
 0x49b   :  { %v4067_v48 = vpop.eup %3288  ;;  %v2102_v49 = vmul.f32 1.442695, %v2089_v47 }
 0x49c   :  { %v2114_v50 = vsel %vm1683_vm14, %v4067_v48, 0.0 }
 0x49d   :  { %3294 = vpow2.f32 %v2102_v49  ;;  %v2080_v51 = vpop.xlane.xlu1 %2079  ;;  %2115 = vadd.xlane.f32.xlu1 %v2114_v50  ;;  %v2526_v49 = vld [vmem:[%s4197_s9] sm:$0xf] }
 0x49e   :  { %v2090_v52 = vsub.f32 %v2058_v16, %v2080_v51 }
 0x49f   :  { %v4071_v53 = vpop.eup %3290 }
 0x4a0   :  { %v2104_v54 = vmul.f32 1.442695, %v2090_v52  ;;  %v2083_v55 = vpop.xlane.xlu0 %2082  ;;  %v2117_v56 = vsel %vm1683_vm14, %v4071_v53, 0.0 }
 0x4a1   :  { %v2091_v58 = vsub.f32 %v2059_v22, %v2083_v55  ;;  %v1597_v59 = vpop.permute.xlu1 %1596  ;;  %2118 = vadd.xlane.f32.xlu0 %v2117_v56  ;;  %v2855_v56 = vld [vmem:[%s4197_s9 + $0x4] sm:$0xf] }
 0x4a2   :  { %3296 = vpow2.f32 %v2104_v54  ;;  %1603 = vst.msk [vmem:[#allocation5 + $0x8] sm:$0xf] %vm1549_vm13, %v1597_v59  ;;  %v2581_v54 = vsel %vm2159_vm15, %v2526_v49, 0 }
 0x4a3   :  { %v4076_v61 = vpop.eup %3292  ;;  %v2106_v62 = vmul.f32 1.442695, %v2091_v58  ;;  %v2534_v58 = vsel %vm2159_vm15, %v2855_v56, 0 }
 0x4a4   :  { %v1599_v1 = vpop.permute.xlu0 %1598  ;;  %v2120_v63 = vsel %vm1683_vm14, %v4076_v61, 0.0 }
 0x4a5   :  { %3298 = vpow2.f32 %v2106_v62  ;;  %1604 = vst.msk [vmem:[#allocation5 + $0xc] sm:$0xf] %vm1549_vm13, %v1599_v1  ;;  %v1624_v2 = vpop.permute.xlu1 %1623  ;;  %2121 = vadd.xlane.f32.xlu1 %v2120_v63  ;;  %v2860_v63 = vld [vmem:[%s4197_s9 + $0xc] sm:$0xf] }
 0x4a6   :  { %1630 = vst.msk [vmem:[#allocation5 + $0x10] sm:$0xf] %vm1549_vm13, %v1624_v2 }
 0x4a7   :  { %v4082_v3 = vpop.eup %3294 }
 0x4a8   :  { %v2123_v4 = vsel %vm1683_vm14, %v4082_v3, 0.0 }
 0x4a9   :  { %v1626_v5 = vpop.permute.xlu1 %1625  ;;  %2124 = vadd.xlane.f32.xlu0 %v2123_v4 }
 0x4aa   :  { %1631 = vst.msk [vmem:[#allocation5 + $0x14] sm:$0xf] %vm1549_vm13, %v1626_v5  ;;  %v2683_v5 = vsel %vm2159_vm15, %v2860_v63, 0 }
 0x4ac   :  { %v4087_v6 = vpop.eup %3296  ;;  %v1678_v14 = vld [vmem:[#allocation5 + $0xc] sm:$0xf] }
 0x4ad   :  { %v2126_v7 = vsel %vm1683_vm14, %v4087_v6, 0.0  ;;  %v2299_v17 = vsel %vm2159_vm15, %v1678_v14, 0  ;;  %v1679_v26 = vld [vmem:[#allocation5 + $0x10] sm:$0xf] }
 0x4ae   :  { %2127 = vadd.xlane.f32.xlu1 %v2126_v7  ;;  %v2345_v30 = vsel %vm2159_vm15, %v1679_v26, 0 }
 0x4af   :  { %v4091_v8 = vpop.eup %3298 }
 0x4b0   :  { %v2129_v9 = vsel %vm1683_vm14, %v4091_v8, 0.0 }
 0x4b1   :  { %2130 = vadd.xlane.f32.xlu0 %v2129_v9  ;;  %v1680_v32 = vld [vmem:[#allocation5 + $0x14] sm:$0xf] }
 0x4b2   :  { %v2391_v37 = vsel %vm2159_vm15, %v1680_v32, 0 }
 0x4bf   :  { %1652 = vrot.lane.b32.xlu1 %v3971_v57, %s3542_s21 }
 0x4c7   :  { %1650 = vrot.lane.b32.xlu0 %v3967_v60, %s3542_s21  ;;  %v1677_v60 = vld [vmem:[#allocation5 + $0x8] sm:$0xf] }
 0x4c8   :  { %v2253_v19 = vsel %vm2159_vm15, %v1677_v60, 0 }
 0x4d5   :  { %v2113_v10 = vpop.xlane.xlu0 %2112 }
 0x4d6   :  { %3300 = vrcp.f32 %v2113_v10 }
 0x4da   :  { %v2110_v11 = vpop.xlane.xlu1 %2109 }
 0x4db   :  { %3302 = vrcp.f32 %v2110_v11  ;;  %v2858_v11 = vld [vmem:[%s4197_s9 + $0x8] sm:$0xf] }
 0x4e0   :  { %v3301_v12 = vpop.eup %3300 }
 0x4e1   :  { %v2141_v13 = vmul.f32 %v3301_v12, %v4059_v33 }
 0x4e3   :  { %v2149_v15 = vpack.c.bf16 %v2141_v13, %v2141_v13 }
 0x4e5   :  { %v3303_v16 = vpop.eup %3302  ;;  %3164 = vmatmul.mubr.msk.bf16.vlgmr.msra.gmra.mrb[52].mxu1 %vm1683_vm14, %v2149_v15 }
 0x4e6   :  { %v2140_v18 = vmul.f32 %v3303_v16, %v4063_v35  ;;  %3174 = vmatpush3.bf16.msra.mxu1 %v2299_v17  ;;  %3175 = vmatprep.mubr.msk.bf16.mxu1 %vm3539_vm0, %v3538_v0  ;;  %v2631_v16 = vsel %vm2159_vm15, %v2858_v11, 0 }
 0x4e7   :  { %3185 = vmatprep.subr.bf16.mxu1 %v3538_v0 }
 0x4e8   :  { %v2148_v57 = vpack.c.bf16 %v2140_v18, %v2140_v18 }
 0x4ea   :  { %3158 = vmatmul.mubr.msk.bf16.vlgmr.msra.gmra.mrb[52].mxu0 %vm1683_vm14, %v2148_v57 }
 0x4eb   :  { %3168 = vmatpush3.bf16.msra.mxu0 %v2253_v19  ;;  %3169 = vmatprep.mubr.msk.bf16.mxu0 %vm3539_vm0, %v3538_v0 }
 0x4ec   :  { %3179 = vmatprep.subr.bf16.mxu0 %v3538_v0 }
 0x52a   :  { %v2116_v20 = vpop.xlane.xlu1 %2115 }
 0x52b   :  { %3304 = vrcp.f32 %v2116_v20 }
 0x52e   :  { %v2119_v21 = vpop.xlane.xlu0 %2118 }
 0x52f   :  { %3306 = vrcp.f32 %v2119_v21 }
 0x532   :  { %v2122_v22 = vpop.xlane.xlu1 %2121 }
 0x533   :  { %3308 = vrcp.f32 %v2122_v22 }
 0x535   :  { %v3305_v23 = vpop.eup %3304 }
 0x536   :  { %v2142_v24 = vmul.f32 %v3305_v23, %v4067_v48  ;;  %v2125_v25 = vpop.xlane.xlu0 %2124 }
 0x537   :  { %3310 = vrcp.f32 %v2125_v25 }
 0x538   :  { %v2150_v27 = vpack.c.bf16 %v2142_v24, %v2142_v24 }
 0x539   :  { %v3307_v28 = vpop.eup %3306 }
 0x53a   :  { %v2143_v29 = vmul.f32 %v3307_v28, %v4071_v53  ;;  %3170 = vmatmul.mubr.msk.bf16.vlgmr.msra.gmra.mrb[56].mxu0 %vm1683_vm14, %v2150_v27 }
 0x53b   :  { %3180 = vmatpush3.bf16.msra.mxu0 %v2345_v30  ;;  %v2128_v31 = vpop.xlane.xlu1 %2127  ;;  %3181 = vmatprep.mubr.msk.bf16.mxu0 %vm3539_vm0, %v3538_v0 }
 0x53c   :  { %3312 = vrcp.f32 %v2128_v31  ;;  %v2151_v33 = vpack.c.bf16 %v2143_v29, %v2143_v29  ;;  %3191 = vmatprep.subr.bf16.mxu0 %v3538_v0 }
 0x53d   :  { %v3309_v34 = vpop.eup %3308 }
 0x53e   :  { %v2144_v35 = vmul.f32 %v3309_v34, %v4076_v61  ;;  %3176 = vmatmul.mubr.msk.bf16.vlgmr.msra.gmra.mrb[56].mxu1 %vm1683_vm14, %v2151_v33  ;;  %v2131_v36 = vpop.xlane.xlu0 %2130 }
 0x53f   :  { %3314 = vrcp.f32 %v2131_v36  ;;  %3186 = vmatpush3.bf16.msra.mxu1 %v2391_v37  ;;  %v1653_v38 = vpop.permute.xlu1 %1652  ;;  %3187 = vmatprep.mubr.msk.bf16.mxu1 %vm3539_vm0, %v3538_v0 }
 0x540   :  { %1658 = vst.msk [vmem:[#allocation5 + $0x1c] sm:$0xf] %vm1549_vm13, %v1653_v38  ;;  %v2152_v39 = vpack.c.bf16 %v2144_v35, %v2144_v35  ;;  %3197 = vmatprep.subr.bf16.mxu1 %v3538_v0 }
 0x541   :  { %v3311_v40 = vpop.eup %3310 }
 0x542   :  { %v2145_v41 = vmul.f32 %v3311_v40, %v4082_v3  ;;  %v1651_v42 = vpop.permute.xlu0 %1650  ;;  %3182 = vmatmul.mubr.msk.bf16.vlgmr.msra.gmra.mrb[60].mxu0 %vm1683_vm14, %v2152_v39 }
 0x543   :  { %1657 = vst.msk [vmem:[#allocation5 + $0x18] sm:$0xf] %vm1549_vm13, %v1651_v42  ;;  %3193 = vmatprep.mubr.msk.bf16.mxu0 %vm3539_vm0, %v3538_v0 }
 0x544   :  { %v2153_v43 = vpack.c.bf16 %v2145_v41, %v2145_v41 }
 0x546   :  { %v3313_v44 = vpop.eup %3312  ;;  %3188 = vmatmul.mubr.msk.bf16.vlgmr.msra.gmra.mrb[60].mxu1 %vm1683_vm14, %v2153_v43 }
 0x547   :  { %v1682_v45 = vld [vmem:[#allocation5 + $0x1c] sm:$0xf]  ;;  %3199 = vmatprep.mubr.msk.bf16.mxu1 %vm3539_vm0, %v3538_v0  ;;  %v2146_v48 = vmul.f32 %v3313_v44, %v4087_v6 }
 0x548   :  { %v2483_v46 = vsel %vm2159_vm15, %v1682_v45, 0 }
 0x549   :  { %v3315_v47 = vpop.eup %3314  ;;  %3198 = vmatpush3.bf16.msra.mxu1 %v2483_v46  ;;  %v2154_v55 = vpack.c.bf16 %v2146_v48, %v2146_v48 }
 0x54a   :  { %v2147_v50 = vmul.f32 %v3315_v47, %v4091_v8  ;;  %v1681_v51 = vld [vmem:[#allocation5 + $0x18] sm:$0xf]  ;;  %3209 = vmatprep.subr.bf16.mxu1 %v3538_v0 }
 0x54b   :  { %v2437_v52 = vsel %vm2159_vm15, %v1681_v51, 0  ;;  %v2862_v51 = vld [vmem:[%s4198_s10] ss:$0 sm:$0xff] }
 0x54c   :  { %3192 = vmatpush3.bf16.msra.mxu0 %v2437_v52  ;;  %v2155_v53 = vpack.c.bf16 %v2147_v50, %v2147_v50 }
 0x54d   :  { %3203 = vmatprep.subr.bf16.mxu0 %v3538_v0 }
 0x54e   :  { %3200 = vmatmul.mubr.msk.bf16.vlgmr.msra.gmra.mrb[64].mxu1 %vm1683_vm14, %v2155_v53 }
 0x54f   :  { %3194 = vmatmul.mubr.msk.bf16.vlgmr.msra.gmra.mrb[64].mxu0 %vm1683_vm14, %v2154_v55  ;;  %3210 = vmatpush3.bf16.msra.mxu1 %v2581_v54 }
 0x550   :  { %3211 = vmatprep.mubr.msk.bf16.mxu1 %vm3539_vm0, %v3538_v0  ;;  %3205 = vmatprep.mubr.msk.bf16.mxu0 %vm3539_vm0, %v3538_v0 }
 0x551   :  { %3221 = vmatprep.subr.bf16.mxu1 %v3538_v0  ;;  %3204 = vmatpush3.bf16.msra.mxu0 %v2534_v58 }
 0x552   :  { %3215 = vmatprep.subr.bf16.mxu0 %v3538_v0 }
 0x5b8   :  { %v2243_v59 = vpop.f32.mrb[52].mxu1 }
 0x5b9   :  { %v3165_v61 = vpop.f32.mrb[53].mxu1 }
 0x5ba   :  { %v2246_v62 = vpop.f32.mrb[54].mxu1 }
 0x5bb   :  { %v3166_v1 = vpop.f32.mrb[55].mxu1 }
 0x5bd   :  { %v2197_v2 = vpop.f32.mrb[52].mxu0 }
 0x5be   :  { %v2525_v3 = vpack.c.bf16 %v2243_v59, %v2197_v2  ;;  %v3159_v4 = vpop.f32.mrb[53].mxu0 }
 0x5bf   :  { %v2200_v6 = vpop.f32.mrb[54].mxu0 }
 0x5c0   :  { %v3160_v7 = vpop.f32.mrb[55].mxu0  ;;  %3212 = vmatmul.mubr.msk.bf16.vlgmr.msra.gmra.mrb[68].mxu1 %vm1683_vm14, %v2525_v3 }
 0x5c1   :  { %3222 = vmatpush3.bf16.msra.mxu1 %v2683_v5  ;;  %3223 = vmatprep.mubr.msk.bf16.mxu1 %vm3539_vm0, %v3538_v0 }
 0x60d   :  { %v2289_v8 = vpop.f32.mrb[56].mxu0 }
 0x60e   :  { %v3171_v9 = vpop.f32.mrb[57].mxu0 }
 0x60f   :  { %v2292_v10 = vpop.f32.mrb[58].mxu0 }
 0x610   :  { %v3172_v12 = vpop.f32.mrb[59].mxu0 }
 0x611   :  { %v2335_v13 = vpop.f32.mrb[56].mxu1 }
 0x612   :  { %v2527_v14 = vpack.c.bf16 %v2335_v13, %v2289_v8  ;;  %v3177_v15 = vpop.f32.mrb[57].mxu1 }
 0x613   :  { %v2338_v17 = vpop.f32.mrb[58].mxu1 }
 0x614   :  { %v3178_v18 = vpop.f32.mrb[59].mxu1  ;;  %3206 = vmatmul.mubr.msk.bf16.vlgmr.msra.gmra.mrb[68].mxu0 %vm1683_vm14, %v2527_v14 }
 0x615   :  { %v2381_v60 = vpop.f32.mrb[60].mxu0  ;;  %3216 = vmatpush3.bf16.msra.mxu0 %v2631_v16  ;;  %3217 = vmatprep.mubr.msk.bf16.mxu0 %vm3539_vm0, %v3538_v0 }
 0x616   :  { %v3183_v57 = vpop.f32.mrb[61].mxu0 }
 0x617   :  { %v2384_v19 = vpop.f32.mrb[62].mxu0 }
 0x618   :  { %v3184_v20 = vpop.f32.mrb[63].mxu0 }
 0x619   :  { %v2427_v21 = vpop.f32.mrb[60].mxu1 }
 0x61a   :  { %v2624_v22 = vpack.c.bf16 %v2427_v21, %v2381_v60  ;;  %v3189_v23 = vpop.f32.mrb[61].mxu1 }
 0x61b   :  { %v2430_v24 = vpop.f32.mrb[62].mxu1 }
 0x61c   :  { %v3190_v25 = vpop.f32.mrb[63].mxu1  ;;  %3218 = vmatmul.mubr.msk.bf16.vlgmr.msra.gmra.mrb[72].mxu0 %vm1683_vm14, %v2624_v22 }
 0x621   :  { %v2519_v26 = vpop.f32.mrb[64].mxu1 }
 0x622   :  { %v2473_v27 = vpop.f32.mrb[64].mxu0  ;;  %v3201_v28 = vpop.f32.mrb[65].mxu1 }
 0x623   :  { %v2676_v29 = vpack.c.bf16 %v2519_v26, %v2473_v27  ;;  %v3195_v30 = vpop.f32.mrb[65].mxu0  ;;  %v2522_v31 = vpop.f32.mrb[66].mxu1 }
 0x624   :  { %v2476_v32 = vpop.f32.mrb[66].mxu0  ;;  %v3202_v33 = vpop.f32.mrb[67].mxu1 }
 0x625   :  { %v3196_v34 = vpop.f32.mrb[67].mxu0  ;;  %3224 = vmatmul.mubr.msk.bf16.vlgmr.msra.gmra.mrb[72].mxu1 %vm1683_vm14, %v2676_v29 }
 0x693   :  { %v2617_v0 = vpop.f32.mrb[68].mxu1 }
 0x694   :  { %v3213_v35 = vpop.f32.mrb[69].mxu1 }
 0x695   :  { %v2620_v36 = vpop.f32.mrb[70].mxu1 }
 0x696   :  { %v3214_v37 = vpop.f32.mrb[71].mxu1 }
 0x6e7   :  { %v2570_v38 = vpop.f32.mrb[68].mxu0 }
 0x6e8   :  { %v2618_v39 = vadd.f32 %v2617_v0, %v2570_v38  ;;  %v3207_v40 = vpop.f32.mrb[69].mxu0 }
 0x6e9   :  { %v2573_v41 = vpop.f32.mrb[70].mxu0 }
 0x6ea   :  { %v2621_v42 = vadd.f32 %v2620_v36, %v2573_v41  ;;  %v3208_v43 = vpop.f32.mrb[71].mxu0 }
 0x6ef   :  { %v2667_v44 = vpop.f32.mrb[72].mxu0 }
 0x6f0   :  { %v2674_v45 = vadd.f32 %v2667_v44, %v2618_v39  ;;  %v3219_v46 = vpop.f32.mrb[73].mxu0 }
 0x6f1   :  { %v2670_v47 = vpop.f32.mrb[74].mxu0 }
 0x6f2   :  { %v2675_v48 = vadd.f32 %v2670_v47, %v2621_v42  ;;  %v3220_v49 = vpop.f32.mrb[75].mxu0 }
 0x6f8   :  { %v2719_v50 = vpop.f32.mrb[72].mxu1 }
 0x6f9   :  { %v2726_v52 = vadd.f32 %v2719_v50, %v2674_v45  ;;  %v3225_v53 = vpop.f32.mrb[73].mxu1 }
 0x6fa   :  { %v2722_v54 = vpop.f32.mrb[74].mxu1 }
 0x6fb   :  { %v2735_v55 = vadd.f32 %v2862_v51, %v2726_v52  ;;  %v2727_v56 = vadd.f32 %v2722_v54, %v2675_v48  ;;  %v3226_v58 = vpop.f32.mrb[75].mxu1 }
 0x6fd   :  { %2737 = vst.msk [vmem:[#allocation20] sm:$0xff] %vm268_vm9, %v2735_v55  ;;  %v2736_v59 = vadd.f32 %v2862_v51, %v2727_v56 }
 0x6ff   :  { %2738 = vst.msk [vmem:[#allocation20 + $0x8] sm:$0xff] %vm268_vm9, %v2736_v59 }
 0x700   :  { %3503 = shalt.err (!%p3500_p12)
}
 0x701   :  { %s3504_s12 = scalar_lea.hbm %s4199_s11, 256 }
 0x702   :  { %p3505_p13 = scmp.ne.s32.totalorder %s4199_s11, %s3504_s12  ;;  %p3508_p0 = scmp.lt.u32.totalorder %s3504_s12, %s4199_s11 }
 0x704   :  { %p3510_p1 = pnand %p3508_p0, %p3505_p13 }
 0x706   :  { %3513 = shalt.err (!%p3510_p1)
}
 0x707   :  { %s3544_s7 = smov 128   ;;  %s3545_s29 = smov 8  }
 0x708   :  { %2750 = dma.vmem_to_hbm [thread:$0]  %s2745_s28, 256, %s4199_s11, [#allocation8], %s3544_s7, %s3544_s7, %s3545_s29  }
 0x709   :  { %3524 = dma.done.wait [#allocation8], 256  }
 0x70a   :  { %3525 = vsyncadd [#allocation8], 4294967040 }
 0x70b   :  { %2754 = vsyncpa [#allocation7], 1 }
 0x70c   :  { %2755 = vsyncpa [#allocation10], 1 }
 0x70d   :  { %2756 = vsyncpa [#allocation13], 1 }
 0x70e   :  { %2757 = vsyncpa [#allocation16], 1 }
 0x70f   :  { %2758 = vsyncpa [#allocation19], 1 }
 0x710   :  { %2759 = vsyncpa [#allocation8], 1 }

// kernel: tpu_custom_call.1
= control target key start
LH: loop header
LB: loop body
LE: loop exit
PB: predicated region body
PF: predicated region fallthrough
CT: control target
= control target key end

     0   :  { %16 = vsyncpa [#allocation7], 0  ;;  %s4188_s0 = inlined_call_operand.hbm [shape: bf16[2,8,32], index: 0, kind: input, shape index: {}]   ;;  %s4189_s1 = inlined_call_operand.hbm [shape: bf16[3,32,32], index: 1, kind: input, shape index: {}]   ;;  %s4190_s2 = inlined_call_operand.hbm [shape: bf16[5,32,32], index: 2, kind: input, shape index: {}]   ;;  %s4191_s3 = inlined_call_operand.hbm [shape: bf16[7,32,32], index: 3, kind: input, shape index: {}]   ;;  %s4192_s4 = inlined_call_operand.hbm [shape: f32[3,1,32], index: 4, kind: input, shape index: {}]   ;;  %s4193_s5 = inlined_call_operand.vmem [shape: bf16[32,32], index: 5, kind: input, shape index: {}]   ;;  %s4194_s6 = inlined_call_operand.hbm [shape: bf16[32,32], index: 6, kind: input, shape index: {}]   ;;  %s4195_s7 = inlined_call_operand.hbm [shape: bf16[32,32], index: 7, kind: input, shape index: {}]   ;;  %s4196_s8 = inlined_call_operand.hbm [shape: f32[3,1,32], index: 8, kind: input, shape index: {}]   ;;  %s4197_s9 = inlined_call_operand.vmem [shape: bf16[4,8,32], index: 9, kind: input, shape index: {}]   ;;  %s4198_s10 = inlined_call_operand.vmem [shape: f32[1,32], index: 10, kind: input, shape index: {}]   ;;  %s4199_s11 = inlined_call_operand.hbm [shape: f32[2,8,32], index: 11, kind: output, shape index: {}]  }
   0x1   :  { %17 = vsyncpa [#allocation10], 0 }
   0x2   :  { %18 = vsyncpa [#allocation13], 0 }
   0x3   :  { %19 = vsyncpa [#allocation16], 0 }
   0x4   :  { %20 = vsyncpa [#allocation19], 0 }
   0x5   :  { %21 = vsyncpa [#allocation8], 0  ;;  %s3526_s17 = smov [#allocation9]   ;;  %s3527_s19 = smov [#allocation12]  }
   0x6   :  { %s39_s18 = sshll.u32 %s3526_s17, 4  ;;  %s63_s20 = sshll.u32 %s3527_s19, 4  ;;  %s40_s18 = int_to_ptr.vmem [resolvable:$true] %s39_s18  ;;  %s3606_s20 = int_to_ptr.vmem [resolvable:$true] %s63_s20 }
   0x7   :  { %s3316_s23 = scalar_lea.hbm %s4189_s1, 768 }
   0x8   :  { %p3317_p0 = scmp.ne.s32.totalorder %s4189_s1, %s3316_s23  ;;  %p3320_p1 = scmp.lt.u32.totalorder %s3316_s23, %s4189_s1 }
   0xa   :  { %p3322_p2 = pnand %p3320_p1, %p3317_p0 }
   0xc   :  { %3325 = shalt.err (!%p3322_p2)
}
   0xd   :  { %s3326_s28 = scalar_lea.vmem %s40_s18, 768  ;;  %p3331_p4 = scmp.lt.s32.totalorder %s40_s18, %s40_s18 }
   0xe   :  { %p3327_p3 = scmp.ne.s32.totalorder %s40_s18, %s3326_s28  ;;  %p3332_p5 = scmp.lt.s32.totalorder %s3326_s28, %s3326_s28 }
  0x10   :  { %p3333_p6 = por %p3332_p5, %p3331_p4 }
  0x12   :  { %p3334_p7 = pnand %p3333_p6, %p3327_p3 }
  0x14   :  { %3337 = shalt.err (!%p3334_p7)
}
  0x15   :  { %s3528_s29 = smov 64   ;;  %s3529_s30 = smov 4  }
  0x16   :  { %45 = dma.hbm_to_vmem [thread:$0]  %s4189_s1, 768, %s40_s18, [#allocation10], %s3528_s29, %s3528_s29, %s3529_s30  }
  0x17   :  { %s3338_s16 = scalar_lea.hbm %s4191_s3, 1792 }
  0x18   :  { %p3339_p8 = scmp.ne.s32.totalorder %s4191_s3, %s3338_s16  ;;  %p3342_p9 = scmp.lt.u32.totalorder %s3338_s16, %s4191_s3 }
  0x1a   :  { %p3344_p10 = pnand %p3342_p9, %p3339_p8 }
  0x1c   :  { %3347 = shalt.err (!%p3344_p10)
}
  0x1d   :  { %s3348_s23 = scalar_lea.vmem %s3606_s20, 1792  ;;  %p3353_p12 = scmp.lt.s32.totalorder %s3606_s20, %s3606_s20 }
  0x1e   :  { %p3349_p11 = scmp.ne.s32.totalorder %s3606_s20, %s3348_s23  ;;  %p3354_p13 = scmp.lt.s32.totalorder %s3348_s23, %s3348_s23 }
  0x20   :  { %p3355_p0 = por %p3354_p13, %p3353_p12 }
  0x22   :  { %p3356_p1 = pnand %p3355_p0, %p3349_p11 }
  0x24   :  { %3359 = shalt.err (!%p3356_p1)
}
  0x25   :  { %69 = dma.hbm_to_vmem [thread:$0]  %s4191_s3, 1792, %s3606_s20, [#allocation13], %s3528_s29, %s3528_s29, %s3529_s30  }
  0x26   :  { %s3530_s24 = smov [#allocation15]   ;;  %s3531_s26 = smov [#allocation6]  }
  0x27   :  { %s89_s25 = sshll.u32 %s3530_s24, 4  ;;  %s27_s27 = sshll.u32 %s3531_s26, 4  ;;  %s90_s25 = int_to_ptr.vmem [resolvable:$true] %s89_s25  ;;  %s3643_s27 = int_to_ptr.vmem [resolvable:$true] %s27_s27 }
  0x28   :  { %s3360_s13 = scalar_lea.hbm %s4194_s6, 256 }
  0x29   :  { %p3361_p2 = scmp.ne.s32.totalorder %s4194_s6, %s3360_s13  ;;  %p3364_p3 = scmp.lt.u32.totalorder %s3360_s13, %s4194_s6 }
  0x2b   :  { %p3366_p4 = pnand %p3364_p3, %p3361_p2 }
  0x2d   :  { %3369 = shalt.err (!%p3366_p4)
}
  0x2e   :  { %s3370_s3 = scalar_lea.vmem %s90_s25, 256  ;;  %p3375_p6 = scmp.lt.s32.totalorder %s90_s25, %s90_s25 }
  0x2f   :  { %p3371_p5 = scmp.ne.s32.totalorder %s90_s25, %s3370_s3  ;;  %p3376_p7 = scmp.lt.s32.totalorder %s3370_s3, %s3370_s3 }
  0x31   :  { %p3377_p8 = por %p3376_p7, %p3375_p6 }
  0x33   :  { %p3378_p9 = pnand %p3377_p8, %p3371_p5 }
  0x35   :  { %3381 = shalt.err (!%p3378_p9)
}
  0x36   :  { %95 = dma.hbm_to_vmem [thread:$0]  %s4194_s6, 256, %s90_s25, [#allocation16], %s3528_s29, %s3528_s29, %s3529_s30  }
  0x37   :  { %s3382_s23 = scalar_lea.hbm %s4188_s0, 128 }
  0x38   :  { %p3383_p10 = scmp.ne.s32.totalorder %s4188_s0, %s3382_s23  ;;  %p3386_p11 = scmp.lt.u32.totalorder %s3382_s23, %s4188_s0 }
  0x3a   :  { %p3388_p12 = pnand %p3386_p11, %p3383_p10 }
  0x3c   :  { %3391 = shalt.err (!%p3388_p12)
}
  0x3d   :  { %s3392_s28 = scalar_lea.vmem %s3643_s27, 128  ;;  %p3397_p0 = scmp.lt.s32.totalorder %s3643_s27, %s3643_s27 }
  0x3e   :  { %p3393_p13 = scmp.ne.s32.totalorder %s3643_s27, %s3392_s28  ;;  %p3398_p1 = scmp.lt.s32.totalorder %s3392_s28, %s3392_s28 }
  0x40   :  { %p3399_p2 = por %p3398_p1, %p3397_p0 }
  0x42   :  { %p3400_p3 = pnand %p3399_p2, %p3393_p13 }
  0x44   :  { %3403 = shalt.err (!%p3400_p3)
}
  0x45   :  { %33 = dma.hbm_to_vmem [thread:$0]  %s4188_s0, 128, %s3643_s27, [#allocation7], %s3528_s29, %s3528_s29, %s3529_s30  }
  0x46   :  { %s3532_s12 = smov [#allocation11]   ;;  %s3533_s14 = smov [#allocation14]  }
  0x47   :  { %s51_s13 = sshll.u32 %s3532_s12, 4  ;;  %s75_s15 = sshll.u32 %s3533_s14, 4  ;;  %s52_s13 = int_to_ptr.vmem [resolvable:$true] %s51_s13  ;;  %s3680_s15 = int_to_ptr.vmem [resolvable:$true] %s75_s15 }
  0x48   :  { %s3404_s3 = scalar_lea.hbm %s4190_s2, 1280 }
  0x49   :  { %p3405_p4 = scmp.ne.s32.totalorder %s4190_s2, %s3404_s3  ;;  %p3408_p5 = scmp.lt.u32.totalorder %s3404_s3, %s4190_s2 }
  0x4b   :  { %p3410_p6 = pnand %p3408_p5, %p3405_p4 }
  0x4d   :  { %3413 = shalt.err (!%p3410_p6)
}
  0x4e   :  { %s3414_s0 = scalar_lea.vmem %s52_s13, 1280  ;;  %p3419_p8 = scmp.lt.s32.totalorder %s52_s13, %s52_s13 }
  0x4f   :  { %p3415_p7 = scmp.ne.s32.totalorder %s52_s13, %s3414_s0  ;;  %p3420_p9 = scmp.lt.s32.totalorder %s3414_s0, %s3414_s0 }
  0x51   :  { %p3421_p10 = por %p3420_p9, %p3419_p8 }
  0x53   :  { %p3422_p11 = pnand %p3421_p10, %p3415_p7 }
  0x55   :  { %3425 = shalt.err (!%p3422_p11)
}
  0x56   :  { %57 = dma.hbm_to_vmem [thread:$0]  %s4190_s2, 1280, %s52_s13, [#allocation10], %s3528_s29, %s3528_s29, %s3529_s30  }
  0x57   :  { %s3426_s24 = scalar_lea.hbm %s4192_s4, 48 }
  0x58   :  { %p3427_p12 = scmp.ne.s32.totalorder %s4192_s4, %s3426_s24  ;;  %p3430_p13 = scmp.lt.u32.totalorder %s3426_s24, %s4192_s4 }
  0x5a   :  { %p3432_p0 = pnand %p3430_p13, %p3427_p12 }
  0x5c   :  { %3435 = shalt.err (!%p3432_p0)
}
  0x5d   :  { %s3436_s12 = scalar_lea.vmem %s3680_s15, 48  ;;  %s3440_s2 = scalar_lea.vmem %s3680_s15, 64 }
  0x5e   :  { %p3437_p1 = scmp.ne.s32.totalorder %s3680_s15, %s3436_s12  ;;  %p3441_p2 = scmp.lt.s32.totalorder %s3680_s15, %s3680_s15 }
  0x5f   :  { %p3442_p3 = scmp.lt.s32.totalorder %s3440_s2, %s3436_s12 }
  0x61   :  { %p3443_p4 = por %p3442_p3, %p3441_p2 }
  0x63   :  { %p3444_p5 = pnand %p3443_p4, %p3437_p1 }
  0x65   :  { %3447 = shalt.err (!%p3444_p5)
}
  0x66   :  { %s3534_s13 = smov 16   ;;  %s3535_s14 = smov 1  }
  0x67   :  { %81 = dma.hbm_to_vmem [thread:$0]  %s4192_s4, 48, %s3680_s15, [#allocation13], %s3534_s13, %s3534_s13, %s3535_s14  }
  0x68   :  { %s3536_s3 = smov [#allocation17]   ;;  %s3537_s19 = smov [#allocation18]  }
  0x69   :  { %s101_s20 = sshll.u32 %s3536_s3, 4  ;;  %s113_s21 = sshll.u32 %s3537_s19, 4  ;;  %s102_s20 = int_to_ptr.vmem [resolvable:$true] %s101_s20  ;;  %s3718_s21 = int_to_ptr.vmem [resolvable:$true] %s113_s21 }
  0x6a   :  { %s3448_s27 = scalar_lea.hbm %s4195_s7, 256 }
  0x6b   :  { %p3449_p6 = scmp.ne.s32.totalorder %s4195_s7, %s3448_s27  ;;  %p3452_p7 = scmp.lt.u32.totalorder %s3448_s27, %s4195_s7 }
  0x6d   :  { %p3454_p8 = pnand %p3452_p7, %p3449_p6 }
  0x6f   :  { %3457 = shalt.err (!%p3454_p8)
}
  0x70   :  { %s3458_s4 = scalar_lea.vmem %s102_s20, 256  ;;  %p3463_p10 = scmp.lt.s32.totalorder %s102_s20, %s102_s20 }
  0x71   :  { %p3459_p9 = scmp.ne.s32.totalorder %s102_s20, %s3458_s4  ;;  %p3464_p11 = scmp.lt.s32.totalorder %s3458_s4, %s3458_s4 }
  0x73   :  { %p3465_p12 = por %p3464_p11, %p3463_p10 }
  0x75   :  { %p3466_p13 = pnand %p3465_p12, %p3459_p9 }
  0x77   :  { %3469 = shalt.err (!%p3466_p13)
}
  0x78   :  { %107 = dma.hbm_to_vmem [thread:$0]  %s4195_s7, 256, %s102_s20, [#allocation16], %s3528_s29, %s3528_s29, %s3529_s30  }
  0x79   :  { %s3470_s25 = scalar_lea.hbm %s4196_s8, 48 }
  0x7a   :  { %p3471_p0 = scmp.ne.s32.totalorder %s4196_s8, %s3470_s25  ;;  %p3474_p1 = scmp.lt.u32.totalorder %s3470_s25, %s4196_s8 }
  0x7c   :  { %p3476_p2 = pnand %p3474_p1, %p3471_p0 }
  0x7e   :  { %3479 = shalt.err (!%p3476_p2)
}
  0x7f   :  { %s3480_s3 = scalar_lea.vmem %s3718_s21, 48  ;;  %s3484_s7 = scalar_lea.vmem %s3718_s21, 64 }
  0x80   :  { %p3481_p3 = scmp.ne.s32.totalorder %s3718_s21, %s3480_s3  ;;  %p3485_p4 = scmp.lt.s32.totalorder %s3718_s21, %s3718_s21 }
  0x81   :  { %p3486_p5 = scmp.lt.s32.totalorder %s3484_s7, %s3480_s3 }
  0x83   :  { %p3487_p6 = por %p3486_p5, %p3485_p4 }
  0x85   :  { %p3488_p7 = pnand %p3487_p6, %p3481_p3 }
  0x87   :  { %3491 = shalt.err (!%p3488_p7)
}
  0x88   :  { %119 = dma.hbm_to_vmem [thread:$0]  %s4196_s8, 48, %s3718_s21, [#allocation19], %s3534_s13, %s3534_s13, %s3535_s14  }
  0x89   :  { %3514 = dma.done.wait [#allocation7], 128  }
  0x8a   :  { %3515 = vsyncadd [#allocation7], 4294967168 }
  0x8b   :  { %3516 = dma.done.wait [#allocation10], 2048  }
  0x8c   :  { %3517 = vsyncadd [#allocation10], 4294965248 }
  0x8d   :  { %3518 = dma.done.wait [#allocation13], 1840  }
  0x8e   :  { %3519 = vsyncadd [#allocation13], 4294965456 }
  0x8f   :  { %3520 = dma.done.wait [#allocation16], 512  }
  0x90   :  { %3521 = vsyncadd [#allocation16], 4294966784 }
  0x91   :  { %3522 = dma.done.wait [#allocation19], 48  }
  0x92   :  { %3523 = vsyncadd [#allocation19], 4294967248  ;;  %v3538_v0 = vmov 0.0   ;;  %vm3539_vm0 = vmmov 0   ;;  %vm149_vm1 = vcmask 254976   ;;  %vm158_vm3 = vcmask 256001  }
  0x93   :  { %2971 = vmatprep.subr.bf16.mxu1 %v3538_v0  ;;  %2975 = vmatprep.mubr.msk.bf16.mxu1 %vm3539_vm0, %v3538_v0  ;;  %vm150_vm2 = vsmask.f32 1280  ;;  %vm159_vm4 = vsmask.f32 7942  ;;  %v3247_v3 = vld [vmem:[#allocation12] sm:$0xff]   ;;  %v3248_v4 = vld [vmem:[#allocation12 + $0x8] sm:$0xff]  }
  0x94   :  { %2963 = vmatprep.subr.bf16.mxu0 %v3538_v0  ;;  %2967 = vmatprep.mubr.msk.bf16.mxu0 %vm3539_vm0, %v3538_v0  ;;  %vm3763_vm5 = vmand %vm149_vm1, %vm150_vm2  ;;  %v152_v5 = vld [vmem:[#allocation2] sm:$0x3]  ;;  %v155_v6 = vld [vmem:[#allocation2 + $0x8] sm:$0x3]  ;;  %vm191_vm7 = vcmask 257025   ;;  %vm268_vm9 = vcmask 261120  }
  0x95   :  { %vm3768_vm6 = vmand %vm158_vm3, %vm159_vm4  ;;  %2972 = vmatpush3.bf16.msra.mxu1 %v3247_v3  ;;  %v161_v7 = vld [vmem:[#allocation2 + $0x4] sm:$0x6]  ;;  %v153_v8 = vsel %vm3763_vm5, 0, %v152_v5  ;;  %v156_v9 = vsel %vm3763_vm5, 0, %v155_v6  ;;  %v164_v11 = vld [vmem:[#allocation2 + $0xc] sm:$0x6] }
  0x96   :  { %2973 = vmatprep.subr.bf16.mxu1 %v3538_v0  ;;  %v162_v10 = vsel %vm3768_vm6, 0, %v161_v7  ;;  %v3250_v12 = vld [vmem:[#allocation12 + $0x10] sm:$0xff]   ;;  %154 = vst [vmem:[#allocation2] sm:$0x3] %v153_v8  ;;  %157 = vst [vmem:[#allocation2 + $0x8] sm:$0x3] %v156_v9 }
  0x97   :  { %163 = vst [vmem:[#allocation2 + $0x4] sm:$0x6] %v162_v10  ;;  %v165_v13 = vsel %vm3768_vm6, 0, %v164_v11  ;;  %v167_v14 = vld [vmem:[#allocation6] sm:$0xf]  ;;  %2964 = vmatpush3.bf16.msra.mxu0 %v3250_v12  ;;  %vm192_vm8 = vmand %vm191_vm7, %vm159_vm4  ;;  %v3251_v38 = vld [vmem:[#allocation11] sm:$0xff]  }
  0x98   :  { %v168_v15 = vld [vmem:[#allocation6 + $0x4] sm:$0xf]  ;;  %166 = vst [vmem:[#allocation2 + $0xc] sm:$0x6] %v165_v13  ;;  %v170_v16 = vshrl.u32 %v167_v14, 16  ;;  %v173_v17 = vshll.u32 %v167_v14, 16  ;;  %2965 = vmatprep.subr.bf16.mxu0 %v3538_v0 }
  0x99   :  { %v179_v18 = vshrl.u32 %v168_v15, 16  ;;  %v182_v19 = vshll.u32 %v168_v15, 16  ;;  %2974 = vmatpush3.bf16.msra.mxu1 %v3248_v4  ;;  %v3252_v24 = vld [vmem:[#allocation12 + $0x18] sm:$0xff]   ;;  %vm213_vm10 = vsmask.f32 3328  ;;  %vm380_vm12 = vcmask 1042432  }
  0x9a   :  { %v172_v20 = vrot.slane %v170_v16, 6  ;;  %v175_v21 = vrot.slane %v173_v17, 7  ;;  %2987 = vmatprep.subr.bf16.mxu1 %v3538_v0  ;;  %vm214_vm11 = vsmask.f32 7440  ;;  %vm574_vm13 = vsmask.f32 2304 }
  0x9b   :  { %v181_v22 = vrot.slane %v179_v18, 6  ;;  %v184_v23 = vrot.slane %v182_v19, 7  ;;  %2966 = vmatpush3.bf16.msra.mxu0 %v3252_v24  ;;  %vm575_vm14 = vsmask.f32 6416  ;;  %vm381_vm15 = vcmask 1046532   ;;  %v3253_v58 = vld [vmem:[#allocation11 + $0x8] sm:$0xff]   ;;  %vm3808_vm1 = vmor %vm213_vm10, %vm214_vm11 }
  0x9c   :  { %v176_v25 = vor.u32 %v175_v21, %v172_v20  ;;  %2979 = vmatprep.subr.bf16.mxu0 %v3538_v0  ;;  %v3254_v17 = vld [vmem:[#allocation11 + $0x10] sm:$0xff]   ;;  %v3255_v18 = vld [vmem:[#allocation9 + $0x10] sm:$0xff]   ;;  %vm3822_vm3 = vmor %vm380_vm12, %vm381_vm15  ;;  %vm857_vm6 = vcmask 1045508   ;;  %vm1226_vm11 = vcmask 1044484   ;;  %s3541_s19 = smov 112   ;;  %s3542_s21 = smov 104  }
  0x9d   :  { %v185_v26 = vor.u32 %v184_v23, %v181_v22  ;;  %v193_v29 = vld [vmem:[#allocation2] sm:$0xe]  ;;  %v199_v32 = vld [vmem:[#allocation2 + $0x8] sm:$0xe]  ;;  %vm3829_vm4 = vmor %vm574_vm13, %vm575_vm14  ;;  %vm1549_vm13 = vcmask 60416   ;;  %vm1683_vm14 = vcmask 64512  }
  0x9e   :  { %v177_v27 = vrot.slane %v176_v25, 4  ;;  %v196_v30 = vld [vmem:[#allocation2 + $0x4] sm:$0x3]  ;;  %v194_v31 = vsel %vm192_vm8, %v176_v25, %v193_v29  ;;  %v3271_v23 = vld [vmem:[#allocation12 + $0x50] sm:$0xff]   ;;  %vm2159_vm15 = vcmask 1043456   ;;  %s3543_s26 = smov [#allocation20]  }
  0x9f   :  { %v186_v28 = vrot.slane %v185_v26, 4  ;;  %v202_v33 = vld [vmem:[#allocation2 + $0xc] sm:$0x3]  ;;  %195 = vst [vmem:[#allocation2] sm:$0xe] %v194_v31  ;;  %v200_v35 = vsel %vm192_vm8, %v185_v26, %v199_v32  ;;  %v3256_v31 = vld [vmem:[#allocation11 + $0x18] sm:$0xff]  }
  0xa0   :  { %v197_v34 = vsel %vm3763_vm5, %v177_v27, %v196_v30  ;;  %201 = vst [vmem:[#allocation2 + $0x8] sm:$0xe] %v200_v35  ;;  %v3257_v32 = vld [vmem:[#allocation9 + $0x18] sm:$0xff]   ;;  %vm1055_vm8 = vsmask.f32 5392  ;;  %s2744_s28 = sshll.u32 %s3543_s26, 4  ;;  %s2745_s28 = int_to_ptr.vmem [resolvable:$true] %s2744_s28 }
  0xa1   :  { %v203_v36 = vsel %vm3763_vm5, %v186_v28, %v202_v33  ;;  %198 = vst [vmem:[#allocation2 + $0x4] sm:$0x3] %v197_v34  ;;  %vm856_vm5 = vcmask 1041408   ;;  %vm1056_vm10 = vmor %vm150_vm2, %vm1055_vm8  ;;  %vm1225_vm2 = vcmask 1040384   ;;  %s3492_s6 = scalar_lea.vmem %s2745_s28, 256  ;;  %p3497_p9 = scmp.lt.s32.totalorder %s2745_s28, %s2745_s28 }
  0xa2   :  { %204 = vst [vmem:[#allocation2 + $0xc] sm:$0x3] %v203_v36  ;;  %vm3865_vm7 = vmor %vm856_vm5, %vm857_vm6  ;;  %p3493_p8 = scmp.ne.s32.totalorder %s2745_s28, %s3492_s6  ;;  %p3498_p10 = scmp.lt.s32.totalorder %s3492_s6, %s3492_s6 }
  0xa3   :  { %vm1227_vm12 = vmor %vm1225_vm2, %vm1226_vm11 }
  0xa4   :  { %p3499_p11 = por %p3498_p10, %p3497_p9 }
  0xa6   :  { %v205_v37 = vld [vmem:[#allocation2] sm:$0xf]  ;;  %p3500_p12 = pnand %p3499_p11, %p3493_p8 }
  0xa7   :  { %v206_v39 = vld [vmem:[#allocation2 + $0x8] sm:$0xf]  ;;  %v217_v40 = vshrl.u32 %v205_v37, 16  ;;  %v220_v41 = vshll.u32 %v205_v37, 16  ;;  %v374_v51 = vld [vmem:[#allocation2] sm:$0xe] }
  0xa8   :  { %v3790_v42 = vld [vmem:[#allocation2 + $0x4] sm:$0x1]  ;;  %v231_v43 = vshrl.u32 %v206_v39, 16  ;;  %v234_v44 = vshll.u32 %v206_v39, 16  ;;  %v2764_v45 = vcombine.low %v205_v37, %v206_v39  ;;  %v375_v56 = vld [vmem:[#allocation2 + $0x8] sm:$0xe] }
  0xa9   :  { %v3792_v46 = vld [vmem:[#allocation2 + $0xc] sm:$0x1]  ;;  %v226_v47 = vshll.u32 %v3790_v42, 16  ;;  %v219_v48 = vrot.slane %v217_v40, 4  ;;  %v222_v49 = vrot.slane %v220_v41, 5  ;;  %v385_v55 = vrot.slane %v3790_v42, 5 }
  0xaa   :  { %v240_v50 = vshll.u32 %v3792_v46, 16  ;;  %v233_v52 = vrot.slane %v231_v43, 4  ;;  %v236_v53 = vrot.slane %v234_v44, 5  ;;  %2976 = vmatmul.mubr.msk.bf16.vlgmr.msra.gmra.mrb[0].mxu1 %vm268_vm9, %v2764_v45  ;;  %v3798_v57 = vld [vmem:[#allocation2 + $0x4] sm:$0x3]  ;;  %v389_v61 = vrot.slane %v3792_v46, 5 }
  0xab   :  { %v228_v54 = vrot.slane %v226_v47, 5  ;;  %2988 = vmatpush3.bf16.msra.mxu1 %v3251_v38  ;;  %2991 = vmatprep.mubr.msk.bf16.mxu1 %vm3539_vm0, %v3538_v0  ;;  %v223_v59 = vor.u32 %v222_v49, %v219_v48  ;;  %v2768_v62 = vrot.slane %v374_v51, 9  ;;  %v3803_v63 = vld [vmem:[#allocation2 + $0xc] sm:$0x3]  ;;  %v578_v3 = vshrl.u32 %v374_v51, 16  ;;  %v3258_v41 = vld [vmem:[#allocation12 + $0x20] sm:$0xff]  }
  0xac   :  { %v242_v60 = vrot.slane %v240_v50, 5  ;;  %2989 = vmatprep.subr.bf16.mxu1 %v3538_v0  ;;  %v237_v2 = vor.u32 %v236_v53, %v233_v52  ;;  %v581_v4 = vshll.u32 %v374_v51, 16  ;;  %v587_v5 = vshrl.u32 %v3798_v57, 16  ;;  %v3259_v43 = vld [vmem:[#allocation11 + $0x20] sm:$0xff]   ;;  %v850_v45 = vld [vmem:[#allocation2] sm:$0xc] }
  0xad   :  { %v224_v6 = vrot.slane %v223_v59, 4  ;;  %v590_v7 = vshll.u32 %v3798_v57, 16  ;;  %v2769_v9 = vrot.slane %v375_v56, 9  ;;  %v580_v10 = vrot.slane %v578_v3, 5  ;;  %v851_v46 = vld [vmem:[#allocation2 + $0x8] sm:$0xc] }
  0xae   :  { %v238_v8 = vrot.slane %v237_v2, 4  ;;  %v583_v11 = vrot.slane %v581_v4, 6  ;;  %v589_v13 = vrot.slane %v587_v5, 5  ;;  %v596_v15 = vshrl.u32 %v375_v56, 16  ;;  %v3260_v47 = vld [vmem:[#allocation12 + $0x28] sm:$0xff]   ;;  %v3261_v48 = vld [vmem:[#allocation11 + $0x28] sm:$0xff]  }
  0xaf   :  { %2990 = vmatpush3.bf16.msra.mxu1 %v3253_v58  ;;  %v229_v12 = vsel %vm3808_vm1, %v224_v6, %v228_v54  ;;  %v592_v14 = vrot.slane %v590_v7, 6  ;;  %v599_v20 = vshll.u32 %v375_v56, 16  ;;  %v605_v21 = vshrl.u32 %v3803_v63, 16  ;;  %v3262_v54 = vld [vmem:[#allocation9] sm:$0xff]   ;;  %v3264_v59 = vld [vmem:[#allocation9 + $0x8] sm:$0xff]  }
  0xb0   :  { %v243_v16 = vsel %vm3808_vm1, %v238_v8, %v242_v60  ;;  %3003 = vmatprep.subr.bf16.mxu1 %v3538_v0  ;;  %v584_v19 = vor.u32 %v583_v11, %v580_v10  ;;  %v598_v24 = vrot.slane %v596_v15, 5  ;;  %v608_v25 = vshll.u32 %v3803_v63, 16  ;;  %v3265_v60 = vld [vmem:[#allocation9 + $0x28] sm:$0xff]   ;;  %v3883_v2 = vld [vmem:[#allocation2 + $0xc] sm:$0x7]  ;;  %v3281_v49 = vld [vmem:[#allocation15 + $0x8] sm:$0xff]  }
  0xb1   :  { %v2760_v22 = vcombine.low %v229_v12, %v243_v16  ;;  %v593_v28 = vor.u32 %v592_v14, %v589_v13  ;;  %v601_v29 = vrot.slane %v599_v20, 6  ;;  %v607_v30 = vrot.slane %v605_v21, 5  ;;  %v3266_v8 = vld [vmem:[#allocation12 + $0x30] sm:$0xff]   ;;  %v3268_v16 = vld [vmem:[#allocation12 + $0x38] sm:$0xff]  }
  0xb2   :  { %v585_v27 = vrot.slane %v584_v19, 4  ;;  %v610_v33 = vrot.slane %v608_v25, 6  ;;  %v386_v34 = vsel %vm3822_vm3, %v2768_v62, %v385_v55  ;;  %v390_v35 = vsel %vm3822_vm3, %v2769_v9, %v389_v61  ;;  %v3263_v55 = vld [vmem:[#allocation9 + $0x20] sm:$0xff]   ;;  %v3873_v61 = vld [vmem:[#allocation2 + $0x4] sm:$0x7] }
  0xb3   :  { %2968 = vmatmul.mubr.msk.bf16.vlgmr.msra.gmra.mrb[0].mxu0 %vm268_vm9, %v2760_v22  ;;  %2992 = vmatmul.mubr.msk.bf16.vlgmr.msra.gmra.mrb[4].mxu1 %vm268_vm9, %v2760_v22  ;;  %v602_v36 = vor.u32 %v601_v29, %v598_v24  ;;  %v3847_v40 = vcombine.low %v386_v34, %v390_v35  ;;  %v2793_v50 = vrot.slane %v850_v45, 10  ;;  %v861_v51 = vrot.slane %v3798_v57, 6  ;;  %v3267_v9 = vld [vmem:[#allocation12 + $0x40] sm:$0xff]   ;;  %v3273_v29 = vld [vmem:[#allocation12 + $0x58] sm:$0xff]   ;;  %v1219_v35 = vld [vmem:[#allocation2] sm:$0x8] }
  0xb4   :  { %2980 = vmatpush3.bf16.msra.mxu0 %v3254_v17  ;;  %3004 = vmatpush3.bf16.msra.mxu1 %v3255_v18  ;;  %v611_v37 = vor.u32 %v610_v33, %v607_v30  ;;  %v594_v38 = vsel %vm3829_vm4, %v585_v27, %v593_v28  ;;  %v2794_v52 = vrot.slane %v851_v46, 10  ;;  %v865_v53 = vrot.slane %v3803_v63, 6  ;;  %v3269_v17 = vld [vmem:[#allocation12 + $0x48] sm:$0xff]   ;;  %v3270_v22 = vld [vmem:[#allocation11 + $0x30] sm:$0xff]   ;;  %v3274_v33 = vld [vmem:[#allocation11 + $0x40] sm:$0xff]  }
  0xb5   :  { %2981 = vmatprep.subr.bf16.mxu0 %v3538_v0  ;;  %3005 = vmatprep.subr.bf16.mxu1 %v3538_v0  ;;  %v603_v39 = vrot.slane %v602_v36, 4  ;;  %v1058_v56 = vshrl.u32 %v850_v45, 16  ;;  %v1061_v58 = vshll.u32 %v850_v45, 16  ;;  %v1076_v62 = vshrl.u32 %v851_v46, 16  ;;  %v3272_v28 = vld [vmem:[#allocation11 + $0x38] sm:$0xff]   ;;  %v3275_v34 = vld [vmem:[#allocation11 + $0x48] sm:$0xff]  }
  0xb6   :  { %2983 = vmatprep.mubr.msk.bf16.mxu0 %vm3539_vm0, %v3538_v0  ;;  %3007 = vmatprep.mubr.msk.bf16.mxu1 %vm3539_vm0, %v3538_v0  ;;  %v1079_v1 = vshll.u32 %v851_v46, 16  ;;  %v862_v57 = vsel %vm3865_vm7, %v2793_v50, %v861_v51  ;;  %v866_v63 = vsel %vm3865_vm7, %v2794_v52, %v865_v53  ;;  %v1067_v6 = vshrl.u32 %v3873_v61, 16  ;;  %v1220_v36 = vld [vmem:[#allocation2 + $0x8] sm:$0x8]  ;;  %v3278_v46 = vld [vmem:[%s4193_s5] sm:$0xff]  }
  0xb7   :  { %v612_v42 = vsel %vm3829_vm4, %v603_v39, %v611_v37  ;;  %v2795_v3 = vcombine.low %v862_v57, %v866_v63  ;;  %v1060_v4 = vrot.slane %v1058_v56, 6  ;;  %v1063_v5 = vrot.slane %v1061_v58, 7  ;;  %v3276_v37 = vld [vmem:[#allocation12 + $0x60] sm:$0xff]  }
  0xb8   :  { %2982 = vmatpush3.bf16.msra.mxu0 %v3256_v31  ;;  %3006 = vmatpush3.bf16.msra.mxu1 %v3257_v32  ;;  %v3852_v44 = vcombine.low %v594_v38, %v612_v42  ;;  %v1070_v7 = vshll.u32 %v3873_v61, 16  ;;  %v1078_v10 = vrot.slane %v1076_v62, 6  ;;  %v1081_v11 = vrot.slane %v1079_v1, 7  ;;  %v3277_v42 = vld [vmem:[#allocation12 + $0x68] sm:$0xff]  }
  0xb9   :  { %2995 = vmatprep.subr.bf16.mxu0 %v3538_v0  ;;  %3019 = vmatprep.subr.bf16.mxu1 %v3538_v0  ;;  %v1085_v12 = vshrl.u32 %v3883_v2, 16  ;;  %v1088_v13 = vshll.u32 %v3883_v2, 16  ;;  %v1064_v14 = vor.u32 %v1063_v5, %v1060_v4  ;;  %v1069_v15 = vrot.slane %v1067_v6, 6 }
  0xba   :  { %v1072_v18 = vrot.slane %v1070_v7, 7  ;;  %v1082_v19 = vor.u32 %v1081_v11, %v1078_v10  ;;  %v2812_v38 = vrot.slane %v1219_v35, 11  ;;  %v1230_v39 = vrot.slane %v3873_v61, 7 }
  0xbb   :  { %2984 = vmatmul.mubr.msk.bf16.vlgmr.msra.gmra.mrb[4].mxu0 %vm268_vm9, %v3847_v40  ;;  %3008 = vmatmul.mubr.msk.bf16.vlgmr.msra.gmra.mrb[8].mxu1 %vm268_vm9, %v3852_v44  ;;  %v1087_v20 = vrot.slane %v1085_v12, 6  ;;  %v1090_v21 = vrot.slane %v1088_v13, 7  ;;  %v1065_v24 = vrot.slane %v1064_v14, 4 }
  0xbc   :  { %2996 = vmatpush3.bf16.msra.mxu0 %v3258_v41  ;;  %3020 = vmatpush3.bf16.msra.mxu1 %v3259_v43  ;;  %v1073_v25 = vor.u32 %v1072_v18, %v1069_v15  ;;  %v1083_v26 = vrot.slane %v1082_v19, 4  ;;  %v1234_v41 = vrot.slane %v3883_v2, 7  ;;  %v1231_v43 = vsel %vm1227_vm12, %v2812_v38, %v1230_v39 }
  0xbd   :  { %2997 = vmatprep.subr.bf16.mxu0 %v3538_v0  ;;  %3021 = vmatprep.subr.bf16.mxu1 %v3538_v0  ;;  %v1091_v27 = vor.u32 %v1090_v21, %v1087_v20 }
  0xbe   :  { %2999 = vmatprep.mubr.msk.bf16.mxu0 %vm3539_vm0, %v3538_v0  ;;  %3023 = vmatprep.mubr.msk.bf16.mxu1 %vm3539_vm0, %v3538_v0  ;;  %v1074_v30 = vsel %vm1056_vm10, %v1065_v24, %v1073_v25 }
  0xbf   :  { %v1092_v31 = vsel %vm1056_vm10, %v1083_v26, %v1091_v27 }
  0xc0   :  { %2998 = vmatpush3.bf16.msra.mxu0 %v3260_v47  ;;  %3022 = vmatpush3.bf16.msra.mxu1 %v3261_v48  ;;  %v2805_v32 = vcombine.low %v1074_v30, %v1092_v31  ;;  %v3279_v47 = vld [vmem:[#allocation15] sm:$0xff]  }
  0xc1   :  { %3011 = vmatprep.subr.bf16.mxu0 %v3538_v0  ;;  %3035 = vmatprep.subr.bf16.mxu1 %v3538_v0  ;;  %v3280_v48 = vld [vmem:[%s4193_s5 + $0x8] sm:$0xff]   ;;  %s3540_s5 = smov 120  }
  0xc3   :  { %3000 = vmatmul.mubr.msk.bf16.vlgmr.msra.gmra.mrb[8].mxu0 %vm268_vm9, %v3847_v40  ;;  %3024 = vmatmul.mubr.msk.bf16.vlgmr.msra.gmra.mrb[12].mxu1 %vm268_vm9, %v3852_v44 }
  0xc4   :  { %3012 = vmatpush3.bf16.msra.mxu0 %v3262_v54  ;;  %3036 = vmatpush3.bf16.msra.mxu1 %v3263_v55 }
  0xc5   :  { %3013 = vmatprep.subr.bf16.mxu0 %v3538_v0  ;;  %3037 = vmatprep.subr.bf16.mxu1 %v3538_v0 }
  0xc6   :  { %3015 = vmatprep.mubr.msk.bf16.mxu0 %vm3539_vm0, %v3538_v0  ;;  %3039 = vmatprep.mubr.msk.bf16.mxu1 %vm3539_vm0, %v3538_v0 }
  0xc8   :  { %3014 = vmatpush3.bf16.msra.mxu0 %v3264_v59  ;;  %3038 = vmatpush3.bf16.msra.mxu1 %v3265_v60 }
  0xc9   :  { %3027 = vmatprep.subr.bf16.mxu0 %v3538_v0  ;;  %3051 = vmatprep.subr.bf16.mxu1 %v3538_v0 }
  0xcb   :  { %3016 = vmatmul.mubr.msk.bf16.vlgmr.msra.gmra.mrb[12].mxu0 %vm268_vm9, %v3847_v40  ;;  %3040 = vmatmul.mubr.msk.bf16.vlgmr.msra.gmra.mrb[16].mxu1 %vm268_vm9, %v2795_v3  ;;  %v2813_v40 = vrot.slane %v1220_v36, 11 }
  0xcc   :  { %3028 = vmatpush3.bf16.msra.mxu0 %v3266_v8  ;;  %3052 = vmatpush3.bf16.msra.mxu1 %v3267_v9 }
  0xcd   :  { %3029 = vmatprep.subr.bf16.mxu0 %v3538_v0  ;;  %3053 = vmatprep.subr.bf16.mxu1 %v3538_v0 }
  0xce   :  { %3031 = vmatprep.mubr.msk.bf16.mxu0 %vm3539_vm0, %v3538_v0  ;;  %3055 = vmatprep.mubr.msk.bf16.mxu1 %vm3539_vm0, %v3538_v0 }
  0xd0   :  { %3030 = vmatpush3.bf16.msra.mxu0 %v3268_v16  ;;  %3054 = vmatpush3.bf16.msra.mxu1 %v3269_v17 }
  0xd1   :  { %3043 = vmatprep.subr.bf16.mxu0 %v3538_v0  ;;  %3067 = vmatprep.subr.bf16.mxu1 %v3538_v0 }
  0xd3   :  { %3032 = vmatmul.mubr.msk.bf16.vlgmr.msra.gmra.mrb[16].mxu0 %vm268_vm9, %v3852_v44  ;;  %3056 = vmatmul.mubr.msk.bf16.vlgmr.msra.gmra.mrb[20].mxu1 %vm268_vm9, %v2795_v3  ;;  %v1235_v44 = vsel %vm1227_vm12, %v2813_v40, %v1234_v41 }
  0xd4   :  { %3044 = vmatpush3.bf16.msra.mxu0 %v3270_v22  ;;  %3068 = vmatpush3.bf16.msra.mxu1 %v3271_v23  ;;  %v2814_v45 = vcombine.low %v1231_v43, %v1235_v44 }
  0xd5   :  { %3045 = vmatprep.subr.bf16.mxu0 %v3538_v0  ;;  %3069 = vmatprep.subr.bf16.mxu1 %v3538_v0 }
  0xd6   :  { %3047 = vmatprep.mubr.msk.bf16.mxu0 %vm3539_vm0, %v3538_v0  ;;  %3071 = vmatprep.mubr.msk.bf16.mxu1 %vm3539_vm0, %v3538_v0 }
  0xd8   :  { %3046 = vmatpush3.bf16.msra.mxu0 %v3272_v28  ;;  %3070 = vmatpush3.bf16.msra.mxu1 %v3273_v29 }
  0xd9   :  { %3059 = vmatprep.subr.bf16.mxu0 %v3538_v0  ;;  %3083 = vmatprep.subr.bf16.mxu1 %v3538_v0 }
  0xdb   :  { %3048 = vmatmul.mubr.msk.bf16.vlgmr.msra.gmra.mrb[20].mxu0 %vm268_vm9, %v2795_v3  ;;  %3072 = vmatmul.mubr.msk.bf16.vlgmr.msra.gmra.mrb[24].mxu1 %vm268_vm9, %v2805_v32 }
  0xdc   :  { %3060 = vmatpush3.bf16.msra.mxu0 %v3274_v33  ;;  %3063 = vmatprep.mubr.msk.bf16.mxu0 %vm3539_vm0, %v3538_v0 }
  0xdd   :  { %3061 = vmatprep.subr.bf16.mxu0 %v3538_v0  ;;  %3087 = vmatprep.mubr.msk.bf16.mxu1 %vm3539_vm0, %v3538_v0 }
  0xde   :  { %3084 = vmatpush3.bf16.msra.mxu1 %v3278_v46 }
  0xdf   :  { %3085 = vmatprep.subr.bf16.mxu1 %v3538_v0 }
  0xe0   :  { %3062 = vmatpush3.bf16.msra.mxu0 %v3275_v34 }
  0xe1   :  { %3075 = vmatprep.subr.bf16.mxu0 %v3538_v0 }
  0xe2   :  { %3086 = vmatpush3.bf16.msra.mxu1 %v3280_v48 }
  0xe3   :  { %3064 = vmatmul.mubr.msk.bf16.vlgmr.msra.gmra.mrb[24].mxu0 %vm268_vm9, %v2805_v32  ;;  %3099 = vmatprep.subr.bf16.mxu1 %v3538_v0 }
  0xe4   :  { %3076 = vmatpush3.bf16.msra.mxu0 %v3276_v37  ;;  %3079 = vmatprep.mubr.msk.bf16.mxu0 %vm3539_vm0, %v3538_v0 }
  0xe5   :  { %3077 = vmatprep.subr.bf16.mxu0 %v3538_v0 }
  0xe8   :  { %3078 = vmatpush3.bf16.msra.mxu0 %v3277_v42 }
  0xe9   :  { %3091 = vmatprep.subr.bf16.mxu0 %v3538_v0 }
  0xeb   :  { %3080 = vmatmul.mubr.msk.bf16.vlgmr.msra.gmra.mrb[28].mxu0 %vm268_vm9, %v2814_v45 }
  0xec   :  { %3095 = vmatprep.mubr.msk.bf16.mxu0 %vm3539_vm0, %v3538_v0  ;;  %3092 = vmatpush3.bf16.msra.mxu0 %v3279_v47 }
  0xed   :  { %3093 = vmatprep.subr.bf16.mxu0 %v3538_v0 }
  0xf0   :  { %3094 = vmatpush3.bf16.msra.mxu0 %v3281_v49 }
  0xf1   :  { %3107 = vmatprep.subr.bf16.mxu0 %v3538_v0 }
 0x17d   :  { %v367_v50 = vpop.f32.mrb[0].mxu1 }
 0x17e   :  { %v2977_v51 = vpop.f32.mrb[1].mxu1 }
 0x17f   :  { %v370_v52 = vpop.f32.mrb[2].mxu1 }
 0x180   :  { %v2978_v53 = vpop.f32.mrb[3].mxu1 }
 0x186   :  { %v306_v54 = vpop.f32.mrb[0].mxu0  ;;  %v505_v55 = vpop.f32.mrb[4].mxu1 }
 0x187   :  { %v368_v56 = vadd.f32 %v367_v50, %v306_v54  ;;  %v2969_v58 = vpop.f32.mrb[1].mxu0  ;;  %v2993_v59 = vpop.f32.mrb[5].mxu1 }
 0x188   :  { %v309_v60 = vpop.f32.mrb[2].mxu0  ;;  %v508_v61 = vpop.f32.mrb[6].mxu1 }
 0x189   :  { %v371_v62 = vadd.f32 %v370_v52, %v309_v60  ;;  %v2970_v1 = vpop.f32.mrb[3].mxu0  ;;  %v2994_v57 = vpop.f32.mrb[7].mxu1  ;;  %v2818_v60 = vld [vmem:[#allocation14] ss:$0 sm:$0xff] }
 0x18a   :  { %v2819_v1 = vld [vmem:[#allocation14 + $0x1] ss:$0 sm:$0xff] }
 0x18e   :  { %v452_v63 = vpop.f32.mrb[4].mxu0  ;;  %v670_v2 = vpop.f32.mrb[8].mxu1 }
 0x18f   :  { %v506_v3 = vadd.f32 %v505_v55, %v452_v63  ;;  %v2985_v4 = vpop.f32.mrb[5].mxu0  ;;  %v3009_v5 = vpop.f32.mrb[9].mxu1 }
 0x190   :  { %v455_v6 = vpop.f32.mrb[6].mxu0  ;;  %v673_v7 = vpop.f32.mrb[10].mxu1 }
 0x191   :  { %v509_v8 = vadd.f32 %v508_v61, %v455_v6  ;;  %v2986_v9 = vpop.f32.mrb[7].mxu0  ;;  %v3010_v10 = vpop.f32.mrb[11].mxu1 }
 0x196   :  { %v563_v11 = vpop.f32.mrb[8].mxu0  ;;  %v781_v12 = vpop.f32.mrb[12].mxu1 }
 0x197   :  { %v570_v13 = vadd.f32 %v563_v11, %v368_v56  ;;  %v788_v14 = vadd.f32 %v781_v12, %v506_v3  ;;  %v3001_v15 = vpop.f32.mrb[9].mxu0  ;;  %v3025_v16 = vpop.f32.mrb[13].mxu1 }
 0x198   :  { %v566_v17 = vpop.f32.mrb[10].mxu0  ;;  %v784_v18 = vpop.f32.mrb[14].mxu1  ;;  %v2820_v15 = vld [vmem:[#allocation14 + $0x2] ss:$0 sm:$0xff] }
 0x199   :  { %v571_v19 = vadd.f32 %v566_v17, %v371_v62  ;;  %v789_v20 = vadd.f32 %v784_v18, %v509_v8  ;;  %v3002_v21 = vpop.f32.mrb[11].mxu0  ;;  %v3026_v22 = vpop.f32.mrb[15].mxu1 }
 0x19e   :  { %v723_v23 = vpop.f32.mrb[12].mxu0  ;;  %v924_v24 = vpop.f32.mrb[16].mxu1 }
 0x19f   :  { %v724_v25 = vadd.f32 %v723_v23, %v670_v2  ;;  %v3017_v26 = vpop.f32.mrb[13].mxu0  ;;  %v3041_v27 = vpop.f32.mrb[17].mxu1 }
 0x1a0   :  { %v726_v28 = vpop.f32.mrb[14].mxu0  ;;  %v927_v29 = vpop.f32.mrb[18].mxu1 }
 0x1a1   :  { %v727_v30 = vadd.f32 %v726_v28, %v673_v7  ;;  %v931_v31 = vadd.f32 %v924_v24, %v724_v25  ;;  %v3018_v32 = vpop.f32.mrb[15].mxu0  ;;  %v3042_v33 = vpop.f32.mrb[19].mxu1 }
 0x1a2   :  { %v3282_v33 = vld [vmem:[#allocation17] sm:$0xff]  }
 0x1a3   :  { %v932_v34 = vadd.f32 %v927_v29, %v727_v30  ;;  %v1309_v61 = vadd.f32 %v2818_v60, %v931_v31 }
 0x1a5   :  { %v1310_v57 = vadd.f32 %v2818_v60, %v932_v34  ;;  %v1311_v4 = vmul.f32 0.01, %v1309_v61 }
 0x1a6   :  { %v841_v35 = vpop.f32.mrb[16].mxu0  ;;  %v1044_v36 = vpop.f32.mrb[20].mxu1 }
 0x1a7   :  { %v848_v37 = vadd.f32 %v841_v35, %v570_v13  ;;  %v3033_v38 = vpop.f32.mrb[17].mxu0  ;;  %v3057_v39 = vpop.f32.mrb[21].mxu1  ;;  %v1312_v8 = vmul.f32 0.01, %v1310_v57  ;;  %v1313_v11 = vmax.f32 %v1309_v61, %v1311_v4  ;;  %v3283_v35 = vld [vmem:[#allocation17 + $0x8] sm:$0xff]  }
 0x1a8   :  { %v844_v40 = vpop.f32.mrb[18].mxu0  ;;  %v1047_v41 = vpop.f32.mrb[22].mxu1 }
 0x1a9   :  { %v849_v42 = vadd.f32 %v844_v40, %v571_v19  ;;  %v1051_v43 = vadd.f32 %v1044_v36, %v848_v37  ;;  %v3034_v44 = vpop.f32.mrb[19].mxu0  ;;  %v3058_v45 = vpop.f32.mrb[23].mxu1  ;;  %v1314_v16 = vmax.f32 %v1310_v57, %v1312_v8  ;;  %v2821_v36 = vld [vmem:[#allocation18] ss:$0 sm:$0xff]  ;;  %v2825_v37 = vld [vmem:[#allocation18 + $0x1] ss:$0 sm:$0xff] }
 0x1ab   :  { %v1052_v46 = vadd.f32 %v1047_v41, %v849_v42 }
 0x1ae   :  { %v984_v47 = vpop.f32.mrb[20].mxu0  ;;  %v1210_v48 = vpop.f32.mrb[24].mxu1 }
 0x1af   :  { %v991_v49 = vadd.f32 %v984_v47, %v788_v14  ;;  %v1217_v50 = vadd.f32 %v1210_v48, %v1051_v43  ;;  %v3049_v51 = vpop.f32.mrb[21].mxu0  ;;  %v3073_v52 = vpop.f32.mrb[25].mxu1 }
 0x1b0   :  { %v987_v53 = vpop.f32.mrb[22].mxu0  ;;  %v1213_v54 = vpop.f32.mrb[26].mxu1 }
 0x1b1   :  { %v992_v55 = vadd.f32 %v987_v53, %v789_v20  ;;  %v1218_v56 = vadd.f32 %v1213_v54, %v1052_v46  ;;  %v3050_v58 = vpop.f32.mrb[23].mxu0  ;;  %v3074_v59 = vpop.f32.mrb[27].mxu1  ;;  %v2829_v54 = vld [vmem:[#allocation18 + $0x2] ss:$0 sm:$0xff] }
 0x1b6   :  { %v1150_v62 = vpop.f32.mrb[24].mxu0 }
 0x1b7   :  { %v1157_v63 = vadd.f32 %v1150_v62, %v991_v49  ;;  %v3065_v2 = vpop.f32.mrb[25].mxu0 }
 0x1b8   :  { %v1153_v3 = vpop.f32.mrb[26].mxu0 }
 0x1b9   :  { %v1325_v5 = vadd.f32 %v2819_v1, %v1157_v63  ;;  %v1158_v6 = vadd.f32 %v1153_v3, %v992_v55  ;;  %v3066_v7 = vpop.f32.mrb[27].mxu0 }
 0x1bb   :  { %v1327_v9 = vmul.f32 0.01, %v1325_v5  ;;  %v1326_v10 = vadd.f32 %v2819_v1, %v1158_v6 }
 0x1bd   :  { %v1329_v12 = vmax.f32 %v1325_v5, %v1327_v9  ;;  %v1328_v13 = vmul.f32 0.01, %v1326_v10 }
 0x1be   :  { %v1293_v14 = vpop.f32.mrb[28].mxu0 }
 0x1bf   :  { %v1331_v17 = vadd.f32 %v1329_v12, %v1313_v11  ;;  %v1330_v18 = vmax.f32 %v1326_v10, %v1328_v13  ;;  %v1300_v19 = vadd.f32 %v1293_v14, %v1217_v50  ;;  %v3081_v20 = vpop.f32.mrb[29].mxu0 }
 0x1c0   :  { %v1296_v21 = vpop.f32.mrb[30].mxu0 }
 0x1c1   :  { %v1332_v22 = vadd.f32 %v1330_v18, %v1314_v16  ;;  %v1341_v23 = vadd.f32 %v2820_v15, %v1300_v19  ;;  %v1301_v24 = vadd.f32 %v1296_v21, %v1218_v56  ;;  %v3082_v25 = vpop.f32.mrb[31].mxu0 }
 0x1c3   :  { %v1343_v26 = vmul.f32 0.01, %v1341_v23  ;;  %v1342_v27 = vadd.f32 %v2820_v15, %v1301_v24 }
 0x1c5   :  { %v1345_v28 = vmax.f32 %v1341_v23, %v1343_v26  ;;  %v1344_v29 = vmul.f32 0.01, %v1342_v27 }
 0x1c7   :  { %v1347_v30 = vadd.f32 %v1345_v28, %v1331_v17  ;;  %v1346_v31 = vmax.f32 %v1342_v27, %v1344_v29 }
 0x1c9   :  { %v1348_v32 = vadd.f32 %v1346_v31, %v1332_v22 }
 0x1cb   :  { %v1349_v34 = vpack.c.bf16 %v1348_v32, %v1347_v30 }
 0x1cd   :  { %3088 = vmatmul.mubr.msk.bf16.vlgmr.msra.gmra.mrb[28].mxu1 %vm268_vm9, %v1349_v34  ;;  %3096 = vmatmul.mubr.msk.bf16.vlgmr.msra.gmra.mrb[32].mxu0 %vm268_vm9, %v1349_v34 }
 0x1ce   :  { %3100 = vmatpush3.bf16.msra.mxu1 %v3282_v33  ;;  %3103 = vmatprep.mubr.msk.bf16.mxu1 %vm3539_vm0, %v3538_v0 }
 0x1cf   :  { %3101 = vmatprep.subr.bf16.mxu1 %v3538_v0  ;;  %3109 = vmatprep.mubr.msk.bf16.mxu0 %vm3539_vm0, %v3538_v0 }
 0x1d2   :  { %3102 = vmatpush3.bf16.msra.mxu1 %v3283_v35 }
 0x1d3   :  { %3113 = vmatprep.subr.bf16.mxu1 %v3538_v0 }
 0x1d5   :  { %3104 = vmatmul.mubr.msk.bf16.vlgmr.msra.gmra.mrb[32].mxu1 %vm268_vm9, %v1349_v34 }
 0x1d6   :  { %3115 = vmatprep.mubr.msk.bf16.mxu1 %vm3539_vm0, %v3538_v0 }
 0x2a0   :  { %v1410_v38 = vpop.f32.mrb[28].mxu1  ;;  %v1475_v39 = vpop.f32.mrb[32].mxu0 }
 0x2a1   :  { %v1411_v40 = vadd.f32 %v2821_v36, %v1410_v38  ;;  %v1476_v41 = vadd.f32 %v2825_v37, %v1475_v39  ;;  %v3089_v42 = vpop.f32.mrb[29].mxu1  ;;  %v3097_v43 = vpop.f32.mrb[33].mxu0 }
 0x2a2   :  { %v1413_v44 = vpop.f32.mrb[30].mxu1  ;;  %v1478_v45 = vpop.f32.mrb[34].mxu0 }
 0x2a3   :  { %v1547_v46 = vpack.c.bf16 %v1411_v40, %v1411_v40  ;;  %v1552_v47 = vpack.c.bf16 %v1476_v41, %v1476_v41  ;;  %v1414_v48 = vadd.f32 %v2821_v36, %v1413_v44  ;;  %v1479_v49 = vadd.f32 %v2825_v37, %v1478_v45  ;;  %v3090_v50 = vpop.f32.mrb[31].mxu1  ;;  %v3098_v51 = vpop.f32.mrb[35].mxu0 }
 0x2a5   :  { %1550 = vst.msk [vmem:[#allocation3] sm:$0xf] %vm1549_vm13, %v1547_v46  ;;  %1554 = vst.msk [vmem:[#allocation4] sm:$0xf] %vm1549_vm13, %v1552_v47  ;;  %v1548_v52 = vpack.c.bf16 %v1414_v48, %v1414_v48  ;;  %v1553_v53 = vpack.c.bf16 %v1479_v49, %v1479_v49  ;;  %1566 = vrot.lane.b32.xlu1 %v1547_v46, %s3540_s5  ;;  %1581 = vrot.lane.b32.xlu0 %v1552_v47, %s3540_s5 }
 0x2a7   :  { %1551 = vst.msk [vmem:[#allocation3 + $0x4] sm:$0xf] %vm1549_vm13, %v1548_v52  ;;  %1555 = vst.msk [vmem:[#allocation4 + $0x4] sm:$0xf] %vm1549_vm13, %v1553_v53 }
 0x2a8   :  { %v1540_v55 = vpop.f32.mrb[32].mxu1 }
 0x2a9   :  { %v1541_v56 = vadd.f32 %v2829_v54, %v1540_v55  ;;  %1568 = vrot.lane.b32.xlu1 %v1548_v52, %s3540_s5  ;;  %v3105_v58 = vpop.f32.mrb[33].mxu1  ;;  %1583 = vrot.lane.b32.xlu0 %v1553_v53, %s3540_s5 }
 0x2aa   :  { %v1543_v59 = vpop.f32.mrb[34].mxu1 }
 0x2ab   :  { %v3967_v60 = vpack.c.bf16 %v1541_v56, %v1541_v56  ;;  %v1544_v61 = vadd.f32 %v2829_v54, %v1543_v59  ;;  %v3106_v62 = vpop.f32.mrb[35].mxu1 }
 0x2ac   :  { %v1667_v1 = vld [vmem:[#allocation4] sm:$0xf] }
 0x2ad   :  { %1558 = vst.msk [vmem:[#allocation5] sm:$0xf] %vm1549_vm13, %v3967_v60  ;;  %v3971_v57 = vpack.c.bf16 %v1544_v61, %v1544_v61  ;;  %1616 = vrot.lane.b32.xlu1 %v1553_v53, %s3541_s19  ;;  %1614 = vrot.lane.b32.xlu0 %v1552_v47, %s3541_s19  ;;  %v1688_v63 = vsel %vm1683_vm14, %v1667_v1, 0  ;;  %v1659_v4 = vld [vmem:[#allocation3] sm:$0xf] }
 0x2ae   :  { %3108 = vmatpush3.bf16.xpose.msra.mxu0 %v1688_v63  ;;  %v1668_v2 = vld [vmem:[#allocation4 + $0x4] sm:$0xf] }
 0x2af   :  { %1559 = vst.msk [vmem:[#allocation5 + $0x4] sm:$0xf] %vm1549_vm13, %v3971_v57  ;;  %v1734_v3 = vsel %vm1683_vm14, %v1668_v2, 0  ;;  %3119 = vmatprep.subr.bf16.mxu0 %v3538_v0  ;;  %v1660_v5 = vld [vmem:[#allocation3 + $0x4] sm:$0xf] }
 0x2b0   :  { %3114 = vmatpush3.bf16.xpose.msra.mxu1 %v1734_v3 }
 0x2b1   :  { %1607 = vrot.lane.b32.xlu1 %v1548_v52, %s3541_s19  ;;  %1605 = vrot.lane.b32.xlu0 %v1547_v46, %s3541_s19 }
 0x2b2   :  { %3125 = vmatprep.subr.bf16.mxu1 %v3538_v0 }
 0x2b4   :  { %v1675_v34 = vld [vmem:[#allocation5] sm:$0xf] }
 0x2b5   :  { %3110 = vmatmul.mubr.msk.bf16.vlgmr.msra.gmra.mrb[36].mxu0 %vm1683_vm14, %v1659_v4  ;;  %1643 = vrot.lane.b32.xlu1 %v1553_v53, %s3542_s21  ;;  %v2161_v36 = vsel %vm2159_vm15, %v1675_v34, 0 }
 0x2b6   :  { %1641 = vrot.lane.b32.xlu0 %v1552_v47, %s3542_s21  ;;  %3121 = vmatprep.mubr.msk.bf16.mxu0 %vm3539_vm0, %v3538_v0  ;;  %v1676_v37 = vld [vmem:[#allocation5 + $0x4] sm:$0xf] }
 0x2b7   :  { %3116 = vmatmul.mubr.msk.bf16.vlgmr.msra.gmra.mrb[36].mxu1 %vm1683_vm14, %v1660_v5  ;;  %v2207_v39 = vsel %vm2159_vm15, %v1676_v37, 0 }
 0x2b8   :  { %3127 = vmatprep.mubr.msk.bf16.mxu1 %vm3539_vm0, %v3538_v0 }
 0x2b9   :  { %1634 = vrot.lane.b32.xlu1 %v1548_v52, %s3542_s21 }
 0x2ba   :  { %1632 = vrot.lane.b32.xlu0 %v1547_v46, %s3542_s21 }
 0x317   :  { %v1567_v6 = vpop.permute.xlu1 %1566  ;;  %v1582_v7 = vpop.permute.xlu0 %1581 }
 0x318   :  { %1573 = vst.msk [vmem:[#allocation3 + $0x8] sm:$0xf] %vm1549_vm13, %v1567_v6  ;;  %1588 = vst.msk [vmem:[#allocation4 + $0x8] sm:$0xf] %vm1549_vm13, %v1582_v7 }
 0x31b   :  { %v1569_v8 = vpop.permute.xlu1 %1568  ;;  %v1584_v9 = vpop.permute.xlu0 %1583 }
 0x31c   :  { %1574 = vst.msk [vmem:[#allocation3 + $0xc] sm:$0xf] %vm1549_vm13, %v1569_v8  ;;  %1589 = vst.msk [vmem:[#allocation4 + $0xc] sm:$0xf] %vm1549_vm13, %v1584_v9 }
 0x31f   :  { %v1617_v10 = vpop.permute.xlu1 %1616  ;;  %v1615_v11 = vpop.permute.xlu0 %1614  ;;  %v1669_v12 = vld [vmem:[#allocation4 + $0x8] sm:$0xf] }
 0x320   :  { %1622 = vst.msk [vmem:[#allocation4 + $0x14] sm:$0xf] %vm1549_vm13, %v1617_v10  ;;  %1621 = vst.msk [vmem:[#allocation4 + $0x10] sm:$0xf] %vm1549_vm13, %v1615_v11  ;;  %v1780_v13 = vsel %vm1683_vm14, %v1669_v12, 0 }
 0x321   :  { %3120 = vmatpush3.bf16.xpose.msra.mxu0 %v1780_v13  ;;  %v1661_v19 = vld [vmem:[#allocation3 + $0x8] sm:$0xf] }
 0x322   :  { %3131 = vmatprep.subr.bf16.mxu0 %v3538_v0 }
 0x323   :  { %v1608_v14 = vpop.permute.xlu1 %1607  ;;  %v1606_v15 = vpop.permute.xlu0 %1605  ;;  %v1670_v16 = vld [vmem:[#allocation4 + $0xc] sm:$0xf] }
 0x324   :  { %1613 = vst.msk [vmem:[#allocation3 + $0x14] sm:$0xf] %vm1549_vm13, %v1608_v14  ;;  %1612 = vst.msk [vmem:[#allocation3 + $0x10] sm:$0xf] %vm1549_vm13, %v1606_v15  ;;  %v1826_v17 = vsel %vm1683_vm14, %v1670_v16, 0 }
 0x325   :  { %3126 = vmatpush3.bf16.xpose.msra.mxu1 %v1826_v17  ;;  %v1662_v25 = vld [vmem:[#allocation3 + $0xc] sm:$0xf] }
 0x326   :  { %3137 = vmatprep.subr.bf16.mxu1 %v3538_v0 }
 0x327   :  { %v1644_v18 = vpop.permute.xlu1 %1643  ;;  %v1671_v20 = vld [vmem:[#allocation4 + $0x10] sm:$0xf]  ;;  %v1672_v23 = vld [vmem:[#allocation4 + $0x14] sm:$0xf] }
 0x328   :  { %1649 = vst.msk [vmem:[#allocation4 + $0x1c] sm:$0xf] %vm1549_vm13, %v1644_v18  ;;  %v1642_v21 = vpop.permute.xlu0 %1641  ;;  %3122 = vmatmul.mubr.msk.bf16.vlgmr.msra.gmra.mrb[40].mxu0 %vm1683_vm14, %v1661_v19  ;;  %v1872_v22 = vsel %vm1683_vm14, %v1671_v20, 0  ;;  %v1918_v27 = vsel %vm1683_vm14, %v1672_v23, 0 }
 0x329   :  { %1648 = vst.msk [vmem:[#allocation4 + $0x18] sm:$0xf] %vm1549_vm13, %v1642_v21  ;;  %3132 = vmatpush3.bf16.xpose.msra.mxu0 %v1872_v22  ;;  %3133 = vmatprep.mubr.msk.bf16.mxu0 %vm3539_vm0, %v3538_v0 }
 0x32a   :  { %3143 = vmatprep.subr.bf16.mxu0 %v3538_v0 }
 0x32b   :  { %v1635_v24 = vpop.permute.xlu1 %1634  ;;  %v1663_v28 = vld [vmem:[#allocation3 + $0x10] sm:$0xf]  ;;  %v1664_v32 = vld [vmem:[#allocation3 + $0x14] sm:$0xf] }
 0x32c   :  { %1640 = vst.msk [vmem:[#allocation3 + $0x1c] sm:$0xf] %vm1549_vm13, %v1635_v24  ;;  %v1633_v26 = vpop.permute.xlu0 %1632  ;;  %3128 = vmatmul.mubr.msk.bf16.vlgmr.msra.gmra.mrb[40].mxu1 %vm1683_vm14, %v1662_v25 }
 0x32d   :  { %1639 = vst.msk [vmem:[#allocation3 + $0x18] sm:$0xf] %vm1549_vm13, %v1633_v26  ;;  %3138 = vmatpush3.bf16.xpose.msra.mxu1 %v1918_v27  ;;  %3139 = vmatprep.mubr.msk.bf16.mxu1 %vm3539_vm0, %v3538_v0 }
 0x32e   :  { %3149 = vmatprep.subr.bf16.mxu1 %v3538_v0 }
 0x32f   :  { %v1674_v31 = vld [vmem:[#allocation4 + $0x1c] sm:$0xf] }
 0x330   :  { %3134 = vmatmul.mubr.msk.bf16.vlgmr.msra.gmra.mrb[44].mxu0 %vm1683_vm14, %v1663_v28  ;;  %v1673_v29 = vld [vmem:[#allocation4 + $0x18] sm:$0xf]  ;;  %v2010_v33 = vsel %vm1683_vm14, %v1674_v31, 0 }
 0x331   :  { %v1964_v30 = vsel %vm1683_vm14, %v1673_v29, 0  ;;  %3145 = vmatprep.mubr.msk.bf16.mxu0 %vm3539_vm0, %v3538_v0 }
 0x332   :  { %3144 = vmatpush3.bf16.xpose.msra.mxu0 %v1964_v30 }
 0x333   :  { %3155 = vmatprep.subr.bf16.mxu0 %v3538_v0  ;;  %v1666_v38 = vld [vmem:[#allocation3 + $0x1c] sm:$0xf] }
 0x334   :  { %3140 = vmatmul.mubr.msk.bf16.vlgmr.msra.gmra.mrb[44].mxu1 %vm1683_vm14, %v1664_v32  ;;  %v1665_v35 = vld [vmem:[#allocation3 + $0x18] sm:$0xf] }
 0x335   :  { %3150 = vmatpush3.bf16.xpose.msra.mxu1 %v2010_v33  ;;  %3151 = vmatprep.mubr.msk.bf16.mxu1 %vm3539_vm0, %v3538_v0 }
 0x336   :  { %3161 = vmatprep.subr.bf16.mxu1 %v3538_v0 }
 0x339   :  { %3146 = vmatmul.mubr.msk.bf16.vlgmr.msra.gmra.mrb[48].mxu0 %vm1683_vm14, %v1665_v35 }
 0x33a   :  { %3156 = vmatpush3.bf16.msra.mxu0 %v2161_v36  ;;  %3157 = vmatprep.mubr.msk.bf16.mxu0 %vm3539_vm0, %v3538_v0 }
 0x33b   :  { %3167 = vmatprep.subr.bf16.mxu0 %v3538_v0 }
 0x33c   :  { %3152 = vmatmul.mubr.msk.bf16.vlgmr.msra.gmra.mrb[48].mxu1 %vm1683_vm14, %v1666_v38 }
 0x33d   :  { %3162 = vmatpush3.bf16.msra.mxu1 %v2207_v39  ;;  %3163 = vmatprep.mubr.msk.bf16.mxu1 %vm3539_vm0, %v3538_v0 }
 0x33e   :  { %3173 = vmatprep.subr.bf16.mxu1 %v3538_v0 }
 0x388   :  { %v1724_v40 = vpop.f32.mrb[36].mxu0 }
 0x389   :  { %v4039_v41 = vmul.f32 0.35355338, %v1724_v40  ;;  %v3111_v42 = vpop.f32.mrb[37].mxu0 }
 0x38a   :  { %v1727_v43 = vpop.f32.mrb[38].mxu0  ;;  %v1770_v44 = vpop.f32.mrb[36].mxu1 }
 0x38b   :  { %v2053_v45 = vmul.f32 0.35355338, %v1770_v44  ;;  %v3112_v46 = vpop.f32.mrb[39].mxu0  ;;  %v3117_v47 = vpop.f32.mrb[37].mxu1  ;;  %v2060_v48 = vsel %vm1683_vm14, %v4039_v41, -inf }
 0x38c   :  { %v1773_v49 = vpop.f32.mrb[38].mxu1  ;;  %2061 = vmax.xlane.f32.xlu0 %v2060_v48 }
 0x38d   :  { %v3118_v50 = vpop.f32.mrb[39].mxu1  ;;  %v2063_v51 = vsel %vm1683_vm14, %v2053_v45, -inf }
 0x38e   :  { %2064 = vmax.xlane.f32.xlu1 %v2063_v51 }
 0x3fb   :  { %v1816_v52 = vpop.f32.mrb[40].mxu0 }
 0x3fc   :  { %v2054_v53 = vmul.f32 0.35355338, %v1816_v52  ;;  %v3123_v54 = vpop.f32.mrb[41].mxu0 }
 0x3fd   :  { %v1819_v55 = vpop.f32.mrb[42].mxu0 }
 0x3fe   :  { %v3124_v56 = vpop.f32.mrb[43].mxu0  ;;  %v2066_v58 = vsel %vm1683_vm14, %v2054_v53, -inf }
 0x3ff   :  { %v1862_v59 = vpop.f32.mrb[40].mxu1  ;;  %2067 = vmax.xlane.f32.xlu0 %v2066_v58 }
 0x400   :  { %v2055_v61 = vmul.f32 0.35355338, %v1862_v59  ;;  %v3129_v62 = vpop.f32.mrb[41].mxu1 }
 0x401   :  { %v1865_v1 = vpop.f32.mrb[42].mxu1 }
 0x402   :  { %v3130_v63 = vpop.f32.mrb[43].mxu1  ;;  %v2069_v2 = vsel %vm1683_vm14, %v2055_v61, -inf }
 0x403   :  { %2070 = vmax.xlane.f32.xlu0 %v2069_v2  ;;  %v1908_v3 = vpop.f32.mrb[44].mxu0 }
 0x404   :  { %v2056_v4 = vmul.f32 0.35355338, %v1908_v3  ;;  %v3135_v5 = vpop.f32.mrb[45].mxu0 }
 0x405   :  { %v1911_v6 = vpop.f32.mrb[46].mxu0 }
 0x406   :  { %v3136_v7 = vpop.f32.mrb[47].mxu0  ;;  %v2072_v8 = vsel %vm1683_vm14, %v2056_v4, -inf }
 0x407   :  { %v1954_v9 = vpop.f32.mrb[44].mxu1  ;;  %2073 = vmax.xlane.f32.xlu1 %v2072_v8 }
 0x408   :  { %v2057_v10 = vmul.f32 0.35355338, %v1954_v9  ;;  %v3141_v11 = vpop.f32.mrb[45].mxu1 }
 0x409   :  { %v1957_v12 = vpop.f32.mrb[46].mxu1 }
 0x40a   :  { %v3142_v13 = vpop.f32.mrb[47].mxu1  ;;  %v2075_v14 = vsel %vm1683_vm14, %v2057_v10, -inf }
 0x40b   :  { %2076 = vmax.xlane.f32.xlu0 %v2075_v14 }
 0x40c   :  { %v2000_v15 = vpop.f32.mrb[48].mxu0 }
 0x40d   :  { %v2058_v16 = vmul.f32 0.35355338, %v2000_v15  ;;  %v3147_v17 = vpop.f32.mrb[49].mxu0 }
 0x40e   :  { %v2003_v18 = vpop.f32.mrb[50].mxu0 }
 0x40f   :  { %v3148_v19 = vpop.f32.mrb[51].mxu0  ;;  %v2046_v20 = vpop.f32.mrb[48].mxu1  ;;  %v2078_v21 = vsel %vm1683_vm14, %v2058_v16, -inf }
 0x410   :  { %v2059_v22 = vmul.f32 0.35355338, %v2046_v20  ;;  %2079 = vmax.xlane.f32.xlu1 %v2078_v21  ;;  %v3153_v23 = vpop.f32.mrb[49].mxu1 }
 0x411   :  { %v2049_v24 = vpop.f32.mrb[50].mxu1 }
 0x412   :  { %v3154_v25 = vpop.f32.mrb[51].mxu1  ;;  %v2081_v26 = vsel %vm1683_vm14, %v2059_v22, -inf }
 0x413   :  { %2082 = vmax.xlane.f32.xlu0 %v2081_v26 }
 0x419   :  { %v2062_v29 = vpop.xlane.xlu0 %2061 }
 0x41a   :  { %v2084_v31 = vsub.f32 %v4039_v41, %v2062_v29 }
 0x41b   :  { %v2065_v27 = vpop.xlane.xlu1 %2064 }
 0x41c   :  { %v2085_v28 = vsub.f32 %v2053_v45, %v2065_v27  ;;  %v2092_v32 = vmul.f32 1.442695, %v2084_v31 }
 0x41e   :  { %v2094_v30 = vmul.f32 1.442695, %v2085_v28 }
 0x420   :  { %3284 = vpow2.f32 %v2094_v30 }
 0x421   :  { %1596 = vrot.lane.b32.xlu1 %v3967_v60, %s3540_s5  ;;  %3286 = vpow2.f32 %v2092_v32 }
 0x425   :  { %1623 = vrot.lane.b32.xlu1 %v3967_v60, %s3541_s19 }
 0x429   :  { %1625 = vrot.lane.b32.xlu1 %v3971_v57, %s3541_s19  ;;  %1598 = vrot.lane.b32.xlu0 %v3971_v57, %s3540_s5 }
 0x42a   :  { %v4059_v33 = vpop.eup %3284 }
 0x42b   :  { %v2111_v34 = vsel %vm1683_vm14, %v4059_v33, 0.0  ;;  %v4063_v35 = vpop.eup %3286 }
 0x42c   :  { %v2108_v36 = vsel %vm1683_vm14, %v4063_v35, 0.0 }
 0x448   :  { %2112 = vadd.xlane.f32.xlu0 %v2111_v34 }
 0x44d   :  { %2109 = vadd.xlane.f32.xlu1 %v2108_v36 }
 0x48c   :  { %v2068_v37 = vpop.xlane.xlu0 %2067 }
 0x48d   :  { %v2086_v38 = vsub.f32 %v2054_v53, %v2068_v37 }
 0x48f   :  { %v2096_v39 = vmul.f32 1.442695, %v2086_v38 }
 0x490   :  { %v2071_v40 = vpop.xlane.xlu0 %2070 }
 0x491   :  { %3288 = vpow2.f32 %v2096_v39  ;;  %v2087_v41 = vsub.f32 %v2055_v61, %v2071_v40 }
 0x493   :  { %v2098_v42 = vmul.f32 1.442695, %v2087_v41 }
 0x494   :  { %v2074_v43 = vpop.xlane.xlu1 %2073 }
 0x495   :  { %3290 = vpow2.f32 %v2098_v42  ;;  %v2088_v44 = vsub.f32 %v2056_v4, %v2074_v43 }
 0x497   :  { %v2100_v45 = vmul.f32 1.442695, %v2088_v44 }
 0x498   :  { %v2077_v46 = vpop.xlane.xlu0 %2076 }
 0x499   :  { %3292 = vpow2.f32 %v2100_v45  ;;  %v2089_v47 = vsub.f32 %v2057_v10, %v2077_v46 }
 0x49b   :  { %v4067_v48 = vpop.eup %3288  ;;  %v2102_v49 = vmul.f32 1.442695, %v2089_v47 }
 0x49c   :  { %v2114_v50 = vsel %vm1683_vm14, %v4067_v48, 0.0 }
 0x49d   :  { %3294 = vpow2.f32 %v2102_v49  ;;  %v2080_v51 = vpop.xlane.xlu1 %2079  ;;  %2115 = vadd.xlane.f32.xlu1 %v2114_v50  ;;  %v2526_v49 = vld [vmem:[%s4197_s9] sm:$0xf] }
 0x49e   :  { %v2090_v52 = vsub.f32 %v2058_v16, %v2080_v51 }
 0x49f   :  { %v4071_v53 = vpop.eup %3290 }
 0x4a0   :  { %v2104_v54 = vmul.f32 1.442695, %v2090_v52  ;;  %v2083_v55 = vpop.xlane.xlu0 %2082  ;;  %v2117_v56 = vsel %vm1683_vm14, %v4071_v53, 0.0 }
 0x4a1   :  { %v2091_v58 = vsub.f32 %v2059_v22, %v2083_v55  ;;  %v1597_v59 = vpop.permute.xlu1 %1596  ;;  %2118 = vadd.xlane.f32.xlu0 %v2117_v56  ;;  %v2855_v56 = vld [vmem:[%s4197_s9 + $0x4] sm:$0xf] }
 0x4a2   :  { %3296 = vpow2.f32 %v2104_v54  ;;  %1603 = vst.msk [vmem:[#allocation5 + $0x8] sm:$0xf] %vm1549_vm13, %v1597_v59  ;;  %v2581_v54 = vsel %vm2159_vm15, %v2526_v49, 0 }
 0x4a3   :  { %v4076_v61 = vpop.eup %3292  ;;  %v2106_v62 = vmul.f32 1.442695, %v2091_v58  ;;  %v2534_v58 = vsel %vm2159_vm15, %v2855_v56, 0 }
 0x4a4   :  { %v1599_v1 = vpop.permute.xlu0 %1598  ;;  %v2120_v63 = vsel %vm1683_vm14, %v4076_v61, 0.0 }
 0x4a5   :  { %3298 = vpow2.f32 %v2106_v62  ;;  %1604 = vst.msk [vmem:[#allocation5 + $0xc] sm:$0xf] %vm1549_vm13, %v1599_v1  ;;  %v1624_v2 = vpop.permute.xlu1 %1623  ;;  %2121 = vadd.xlane.f32.xlu1 %v2120_v63  ;;  %v2860_v63 = vld [vmem:[%s4197_s9 + $0xc] sm:$0xf] }
 0x4a6   :  { %1630 = vst.msk [vmem:[#allocation5 + $0x10] sm:$0xf] %vm1549_vm13, %v1624_v2 }
 0x4a7   :  { %v4082_v3 = vpop.eup %3294 }
 0x4a8   :  { %v2123_v4 = vsel %vm1683_vm14, %v4082_v3, 0.0 }
 0x4a9   :  { %v1626_v5 = vpop.permute.xlu1 %1625  ;;  %2124 = vadd.xlane.f32.xlu0 %v2123_v4 }
 0x4aa   :  { %1631 = vst.msk [vmem:[#allocation5 + $0x14] sm:$0xf] %vm1549_vm13, %v1626_v5  ;;  %v2683_v5 = vsel %vm2159_vm15, %v2860_v63, 0 }
 0x4ac   :  { %v4087_v6 = vpop.eup %3296  ;;  %v1678_v14 = vld [vmem:[#allocation5 + $0xc] sm:$0xf] }
 0x4ad   :  { %v2126_v7 = vsel %vm1683_vm14, %v4087_v6, 0.0  ;;  %v2299_v17 = vsel %vm2159_vm15, %v1678_v14, 0  ;;  %v1679_v26 = vld [vmem:[#allocation5 + $0x10] sm:$0xf] }
 0x4ae   :  { %2127 = vadd.xlane.f32.xlu1 %v2126_v7  ;;  %v2345_v30 = vsel %vm2159_vm15, %v1679_v26, 0 }
 0x4af   :  { %v4091_v8 = vpop.eup %3298 }
 0x4b0   :  { %v2129_v9 = vsel %vm1683_vm14, %v4091_v8, 0.0 }
 0x4b1   :  { %2130 = vadd.xlane.f32.xlu0 %v2129_v9  ;;  %v1680_v32 = vld [vmem:[#allocation5 + $0x14] sm:$0xf] }
 0x4b2   :  { %v2391_v37 = vsel %vm2159_vm15, %v1680_v32, 0 }
 0x4bf   :  { %1652 = vrot.lane.b32.xlu1 %v3971_v57, %s3542_s21 }
 0x4c7   :  { %1650 = vrot.lane.b32.xlu0 %v3967_v60, %s3542_s21  ;;  %v1677_v60 = vld [vmem:[#allocation5 + $0x8] sm:$0xf] }
 0x4c8   :  { %v2253_v19 = vsel %vm2159_vm15, %v1677_v60, 0 }
 0x4d5   :  { %v2113_v10 = vpop.xlane.xlu0 %2112 }
 0x4d6   :  { %3300 = vrcp.f32 %v2113_v10 }
 0x4da   :  { %v2110_v11 = vpop.xlane.xlu1 %2109 }
 0x4db   :  { %3302 = vrcp.f32 %v2110_v11  ;;  %v2858_v11 = vld [vmem:[%s4197_s9 + $0x8] sm:$0xf] }
 0x4e0   :  { %v3301_v12 = vpop.eup %3300 }
 0x4e1   :  { %v2141_v13 = vmul.f32 %v3301_v12, %v4059_v33 }
 0x4e3   :  { %v2149_v15 = vpack.c.bf16 %v2141_v13, %v2141_v13 }
 0x4e5   :  { %v3303_v16 = vpop.eup %3302  ;;  %3164 = vmatmul.mubr.msk.bf16.vlgmr.msra.gmra.mrb[52].mxu1 %vm1683_vm14, %v2149_v15 }
 0x4e6   :  { %v2140_v18 = vmul.f32 %v3303_v16, %v4063_v35  ;;  %3174 = vmatpush3.bf16.msra.mxu1 %v2299_v17  ;;  %3175 = vmatprep.mubr.msk.bf16.mxu1 %vm3539_vm0, %v3538_v0  ;;  %v2631_v16 = vsel %vm2159_vm15, %v2858_v11, 0 }
 0x4e7   :  { %3185 = vmatprep.subr.bf16.mxu1 %v3538_v0 }
 0x4e8   :  { %v2148_v57 = vpack.c.bf16 %v2140_v18, %v2140_v18 }
 0x4ea   :  { %3158 = vmatmul.mubr.msk.bf16.vlgmr.msra.gmra.mrb[52].mxu0 %vm1683_vm14, %v2148_v57 }
 0x4eb   :  { %3168 = vmatpush3.bf16.msra.mxu0 %v2253_v19  ;;  %3169 = vmatprep.mubr.msk.bf16.mxu0 %vm3539_vm0, %v3538_v0 }
 0x4ec   :  { %3179 = vmatprep.subr.bf16.mxu0 %v3538_v0 }
 0x52a   :  { %v2116_v20 = vpop.xlane.xlu1 %2115 }
 0x52b   :  { %3304 = vrcp.f32 %v2116_v20 }
 0x52e   :  { %v2119_v21 = vpop.xlane.xlu0 %2118 }
 0x52f   :  { %3306 = vrcp.f32 %v2119_v21 }
 0x532   :  { %v2122_v22 = vpop.xlane.xlu1 %2121 }
 0x533   :  { %3308 = vrcp.f32 %v2122_v22 }
 0x535   :  { %v3305_v23 = vpop.eup %3304 }
 0x536   :  { %v2142_v24 = vmul.f32 %v3305_v23, %v4067_v48  ;;  %v2125_v25 = vpop.xlane.xlu0 %2124 }
 0x537   :  { %3310 = vrcp.f32 %v2125_v25 }
 0x538   :  { %v2150_v27 = vpack.c.bf16 %v2142_v24, %v2142_v24 }
 0x539   :  { %v3307_v28 = vpop.eup %3306 }
 0x53a   :  { %v2143_v29 = vmul.f32 %v3307_v28, %v4071_v53  ;;  %3170 = vmatmul.mubr.msk.bf16.vlgmr.msra.gmra.mrb[56].mxu0 %vm1683_vm14, %v2150_v27 }
 0x53b   :  { %3180 = vmatpush3.bf16.msra.mxu0 %v2345_v30  ;;  %v2128_v31 = vpop.xlane.xlu1 %2127  ;;  %3181 = vmatprep.mubr.msk.bf16.mxu0 %vm3539_vm0, %v3538_v0 }
 0x53c   :  { %3312 = vrcp.f32 %v2128_v31  ;;  %v2151_v33 = vpack.c.bf16 %v2143_v29, %v2143_v29  ;;  %3191 = vmatprep.subr.bf16.mxu0 %v3538_v0 }
 0x53d   :  { %v3309_v34 = vpop.eup %3308 }
 0x53e   :  { %v2144_v35 = vmul.f32 %v3309_v34, %v4076_v61  ;;  %3176 = vmatmul.mubr.msk.bf16.vlgmr.msra.gmra.mrb[56].mxu1 %vm1683_vm14, %v2151_v33  ;;  %v2131_v36 = vpop.xlane.xlu0 %2130 }
 0x53f   :  { %3314 = vrcp.f32 %v2131_v36  ;;  %3186 = vmatpush3.bf16.msra.mxu1 %v2391_v37  ;;  %v1653_v38 = vpop.permute.xlu1 %1652  ;;  %3187 = vmatprep.mubr.msk.bf16.mxu1 %vm3539_vm0, %v3538_v0 }
 0x540   :  { %1658 = vst.msk [vmem:[#allocation5 + $0x1c] sm:$0xf] %vm1549_vm13, %v1653_v38  ;;  %v2152_v39 = vpack.c.bf16 %v2144_v35, %v2144_v35  ;;  %3197 = vmatprep.subr.bf16.mxu1 %v3538_v0 }
 0x541   :  { %v3311_v40 = vpop.eup %3310 }
 0x542   :  { %v2145_v41 = vmul.f32 %v3311_v40, %v4082_v3  ;;  %v1651_v42 = vpop.permute.xlu0 %1650  ;;  %3182 = vmatmul.mubr.msk.bf16.vlgmr.msra.gmra.mrb[60].mxu0 %vm1683_vm14, %v2152_v39 }
 0x543   :  { %1657 = vst.msk [vmem:[#allocation5 + $0x18] sm:$0xf] %vm1549_vm13, %v1651_v42  ;;  %3193 = vmatprep.mubr.msk.bf16.mxu0 %vm3539_vm0, %v3538_v0 }
 0x544   :  { %v2153_v43 = vpack.c.bf16 %v2145_v41, %v2145_v41 }
 0x546   :  { %v3313_v44 = vpop.eup %3312  ;;  %3188 = vmatmul.mubr.msk.bf16.vlgmr.msra.gmra.mrb[60].mxu1 %vm1683_vm14, %v2153_v43 }
 0x547   :  { %v1682_v45 = vld [vmem:[#allocation5 + $0x1c] sm:$0xf]  ;;  %3199 = vmatprep.mubr.msk.bf16.mxu1 %vm3539_vm0, %v3538_v0  ;;  %v2146_v48 = vmul.f32 %v3313_v44, %v4087_v6 }
 0x548   :  { %v2483_v46 = vsel %vm2159_vm15, %v1682_v45, 0 }
 0x549   :  { %v3315_v47 = vpop.eup %3314  ;;  %3198 = vmatpush3.bf16.msra.mxu1 %v2483_v46  ;;  %v2154_v55 = vpack.c.bf16 %v2146_v48, %v2146_v48 }
 0x54a   :  { %v2147_v50 = vmul.f32 %v3315_v47, %v4091_v8  ;;  %v1681_v51 = vld [vmem:[#allocation5 + $0x18] sm:$0xf]  ;;  %3209 = vmatprep.subr.bf16.mxu1 %v3538_v0 }
 0x54b   :  { %v2437_v52 = vsel %vm2159_vm15, %v1681_v51, 0  ;;  %v2862_v51 = vld [vmem:[%s4198_s10] ss:$0 sm:$0xff] }
 0x54c   :  { %3192 = vmatpush3.bf16.msra.mxu0 %v2437_v52  ;;  %v2155_v53 = vpack.c.bf16 %v2147_v50, %v2147_v50 }
 0x54d   :  { %3203 = vmatprep.subr.bf16.mxu0 %v3538_v0 }
 0x54e   :  { %3200 = vmatmul.mubr.msk.bf16.vlgmr.msra.gmra.mrb[64].mxu1 %vm1683_vm14, %v2155_v53 }
 0x54f   :  { %3194 = vmatmul.mubr.msk.bf16.vlgmr.msra.gmra.mrb[64].mxu0 %vm1683_vm14, %v2154_v55  ;;  %3210 = vmatpush3.bf16.msra.mxu1 %v2581_v54 }
 0x550   :  { %3211 = vmatprep.mubr.msk.bf16.mxu1 %vm3539_vm0, %v3538_v0  ;;  %3205 = vmatprep.mubr.msk.bf16.mxu0 %vm3539_vm0, %v3538_v0 }
 0x551   :  { %3221 = vmatprep.subr.bf16.mxu1 %v3538_v0  ;;  %3204 = vmatpush3.bf16.msra.mxu0 %v2534_v58 }
 0x552   :  { %3215 = vmatprep.subr.bf16.mxu0 %v3538_v0 }
 0x5b8   :  { %v2243_v59 = vpop.f32.mrb[52].mxu1 }
 0x5b9   :  { %v3165_v61 = vpop.f32.mrb[53].mxu1 }
 0x5ba   :  { %v2246_v62 = vpop.f32.mrb[54].mxu1 }
 0x5bb   :  { %v3166_v1 = vpop.f32.mrb[55].mxu1 }
 0x5bd   :  { %v2197_v2 = vpop.f32.mrb[52].mxu0 }
 0x5be   :  { %v2525_v3 = vpack.c.bf16 %v2243_v59, %v2197_v2  ;;  %v3159_v4 = vpop.f32.mrb[53].mxu0 }
 0x5bf   :  { %v2200_v6 = vpop.f32.mrb[54].mxu0 }
 0x5c0   :  { %v3160_v7 = vpop.f32.mrb[55].mxu0  ;;  %3212 = vmatmul.mubr.msk.bf16.vlgmr.msra.gmra.mrb[68].mxu1 %vm1683_vm14, %v2525_v3 }
 0x5c1   :  { %3222 = vmatpush3.bf16.msra.mxu1 %v2683_v5  ;;  %3223 = vmatprep.mubr.msk.bf16.mxu1 %vm3539_vm0, %v3538_v0 }
 0x60d   :  { %v2289_v8 = vpop.f32.mrb[56].mxu0 }
 0x60e   :  { %v3171_v9 = vpop.f32.mrb[57].mxu0 }
 0x60f   :  { %v2292_v10 = vpop.f32.mrb[58].mxu0 }
 0x610   :  { %v3172_v12 = vpop.f32.mrb[59].mxu0 }
 0x611   :  { %v2335_v13 = vpop.f32.mrb[56].mxu1 }
 0x612   :  { %v2527_v14 = vpack.c.bf16 %v2335_v13, %v2289_v8  ;;  %v3177_v15 = vpop.f32.mrb[57].mxu1 }
 0x613   :  { %v2338_v17 = vpop.f32.mrb[58].mxu1 }
 0x614   :  { %v3178_v18 = vpop.f32.mrb[59].mxu1  ;;  %3206 = vmatmul.mubr.msk.bf16.vlgmr.msra.gmra.mrb[68].mxu0 %vm1683_vm14, %v2527_v14 }
 0x615   :  { %v2381_v60 = vpop.f32.mrb[60].mxu0  ;;  %3216 = vmatpush3.bf16.msra.mxu0 %v2631_v16  ;;  %3217 = vmatprep.mubr.msk.bf16.mxu0 %vm3539_vm0, %v3538_v0 }
 0x616   :  { %v3183_v57 = vpop.f32.mrb[61].mxu0 }
 0x617   :  { %v2384_v19 = vpop.f32.mrb[62].mxu0 }
 0x618   :  { %v3184_v20 = vpop.f32.mrb[63].mxu0 }
 0x619   :  { %v2427_v21 = vpop.f32.mrb[60].mxu1 }
 0x61a   :  { %v2624_v22 = vpack.c.bf16 %v2427_v21, %v2381_v60  ;;  %v3189_v23 = vpop.f32.mrb[61].mxu1 }
 0x61b   :  { %v2430_v24 = vpop.f32.mrb[62].mxu1 }
 0x61c   :  { %v3190_v25 = vpop.f32.mrb[63].mxu1  ;;  %3218 = vmatmul.mubr.msk.bf16.vlgmr.msra.gmra.mrb[72].mxu0 %vm1683_vm14, %v2624_v22 }
 0x621   :  { %v2519_v26 = vpop.f32.mrb[64].mxu1 }
 0x622   :  { %v2473_v27 = vpop.f32.mrb[64].mxu0  ;;  %v3201_v28 = vpop.f32.mrb[65].mxu1 }
 0x623   :  { %v2676_v29 = vpack.c.bf16 %v2519_v26, %v2473_v27  ;;  %v3195_v30 = vpop.f32.mrb[65].mxu0  ;;  %v2522_v31 = vpop.f32.mrb[66].mxu1 }
 0x624   :  { %v2476_v32 = vpop.f32.mrb[66].mxu0  ;;  %v3202_v33 = vpop.f32.mrb[67].mxu1 }
 0x625   :  { %v3196_v34 = vpop.f32.mrb[67].mxu0  ;;  %3224 = vmatmul.mubr.msk.bf16.vlgmr.msra.gmra.mrb[72].mxu1 %vm1683_vm14, %v2676_v29 }
 0x693   :  { %v2617_v0 = vpop.f32.mrb[68].mxu1 }
 0x694   :  { %v3213_v35 = vpop.f32.mrb[69].mxu1 }
 0x695   :  { %v2620_v36 = vpop.f32.mrb[70].mxu1 }
 0x696   :  { %v3214_v37 = vpop.f32.mrb[71].mxu1 }
 0x6e7   :  { %v2570_v38 = vpop.f32.mrb[68].mxu0 }
 0x6e8   :  { %v2618_v39 = vadd.f32 %v2617_v0, %v2570_v38  ;;  %v3207_v40 = vpop.f32.mrb[69].mxu0 }
 0x6e9   :  { %v2573_v41 = vpop.f32.mrb[70].mxu0 }
 0x6ea   :  { %v2621_v42 = vadd.f32 %v2620_v36, %v2573_v41  ;;  %v3208_v43 = vpop.f32.mrb[71].mxu0 }
 0x6ef   :  { %v2667_v44 = vpop.f32.mrb[72].mxu0 }
 0x6f0   :  { %v2674_v45 = vadd.f32 %v2667_v44, %v2618_v39  ;;  %v3219_v46 = vpop.f32.mrb[73].mxu0 }
 0x6f1   :  { %v2670_v47 = vpop.f32.mrb[74].mxu0 }
 0x6f2   :  { %v2675_v48 = vadd.f32 %v2670_v47, %v2621_v42  ;;  %v3220_v49 = vpop.f32.mrb[75].mxu0 }
 0x6f8   :  { %v2719_v50 = vpop.f32.mrb[72].mxu1 }
 0x6f9   :  { %v2726_v52 = vadd.f32 %v2719_v50, %v2674_v45  ;;  %v3225_v53 = vpop.f32.mrb[73].mxu1 }
 0x6fa   :  { %v2722_v54 = vpop.f32.mrb[74].mxu1 }
 0x6fb   :  { %v2735_v55 = vadd.f32 %v2862_v51, %v2726_v52  ;;  %v2727_v56 = vadd.f32 %v2722_v54, %v2675_v48  ;;  %v3226_v58 = vpop.f32.mrb[75].mxu1 }
 0x6fd   :  { %2737 = vst.msk [vmem:[#allocation20] sm:$0xff] %vm268_vm9, %v2735_v55  ;;  %v2736_v59 = vadd.f32 %v2862_v51, %v2727_v56 }
 0x6ff   :  { %2738 = vst.msk [vmem:[#allocation20 + $0x8] sm:$0xff] %vm268_vm9, %v2736_v59 }
 0x700   :  { %3503 = shalt.err (!%p3500_p12)
}
 0x701   :  { %s3504_s12 = scalar_lea.hbm %s4199_s11, 256 }
 0x702   :  { %p3505_p13 = scmp.ne.s32.totalorder %s4199_s11, %s3504_s12  ;;  %p3508_p0 = scmp.lt.u32.totalorder %s3504_s12, %s4199_s11 }
 0x704   :  { %p3510_p1 = pnand %p3508_p0, %p3505_p13 }
 0x706   :  { %3513 = shalt.err (!%p3510_p1)
}
 0x707   :  { %s3544_s7 = smov 128   ;;  %s3545_s29 = smov 8  }
 0x708   :  { %2750 = dma.vmem_to_hbm [thread:$0]  %s2745_s28, 256, %s4199_s11, [#allocation8], %s3544_s7, %s3544_s7, %s3545_s29  }
 0x709   :  { %3524 = dma.done.wait [#allocation8], 256  }
 0x70a   :  { %3525 = vsyncadd [#allocation8], 4294967040 }
 0x70b   :  { %2754 = vsyncpa [#allocation7], 1 }
 0x70c   :  { %2755 = vsyncpa [#allocation10], 1 }
 0x70d   :  { %2756 = vsyncpa [#allocation13], 1 }
 0x70e   :  { %2757 = vsyncpa [#allocation16], 1 }
 0x70f   :  { %2758 = vsyncpa [#allocation19], 1 }
 0x710   :  { %2759 = vsyncpa [#allocation8], 1 }

</bundles_post_ra>
